<compile_context>
chip_gen: v7x
topology: tpu7x:2x2x1
jax: 0.10.0
libtpu: 0.0.40
codegen_flags: <defaults>
</compile_context>

<pallas_src>
import functools

import jax
import jax.numpy as jnp
from jax import lax
from jax.experimental import pallas as pl
from jax.experimental.pallas import tpu as pltpu

EPS = 1e-5


# ---------------------------------------------------------------------------
# Fused kernel: conv3x3(+BN folded)+ReLU -> conv3x3(+BN folded) -> +res -> ReLU
# ---------------------------------------------------------------------------
def residual_unit_kernel(x_ref, w1_ref, b1_ref, w2_ref, b2_ref,
                         out_ref, xpad_ref, patch_ref, *, H, W, C):
    """One batch element per grid step.

    x_ref    : (1, H, W, C)     input block (also the residual)
    w{1,2}   : (9*C, C)         repacked conv weights (rows dy,dx,cin),
                                BN scale already folded into the columns
    b{1,2}   : (1, C)           folded shift (BN beta/mean + conv bias)
    out_ref  : (1, H, W, C)
    xpad_ref : VMEM (H+2, W+2, C) scratch -- in-kernel halo padding
    patch_ref: VMEM (H*W, 9*C)    scratch -- im2col patch (single K=9C matmul)
    """
    # Zero the halo-padded scratch.  Re-zeroed every grid step on purpose:
    # with dimension_semantics=("parallel",) each TensorCore has its OWN
    # scratch, so a program_id == 0 guard would be wrong on megacore parts.
    # The interior is fully overwritten by each conv stage; only the (cheap)
    # border zeros actually matter.
    xpad_ref[...] = jnp.zeros((H + 2, W + 2, C), jnp.float32)

    def conv3x3_affine(inp_hwc, w_ref, b_ref):
        # Write the interior of the halo-padded scratch.
        xpad_ref[1:H + 1, 1:W + 1, :] = inp_hwc
        # Build the im2col patch (H*W, 9*C): one lane-group per tap.
        for dy in range(3):
            for dx in range(3):
                t = dy * 3 + dx
                patch_ref[:, t * C:(t + 1) * C] = (
                    xpad_ref[dy:dy + H, dx:dx + W, :].reshape(H * W, C))
        # Single MXU contraction with K = 9*C.
        acc = jnp.dot(patch_ref[...], w_ref[...],
                      preferred_element_type=jnp.float32)
        # BN scale already folded into w; only the broadcast shift remains.
        return acc + b_ref[...]                       # (H*W, C)

    x = x_ref[...].reshape(H, W, C)

    # conv1 + bn1 + relu   (intermediate stays on-chip)
    out1 = jnp.maximum(conv3x3_affine(x, w1_ref, b1_ref), 0.0)

    # conv2 + bn2 + residual add + relu
    out2 = conv3x3_affine(out1.reshape(H, W, C), w2_ref, b2_ref)
    out2 = jnp.maximum(out2 + x.reshape(H * W, C), 0.0)

    out_ref[...] = out2.reshape(1, H, W, C)


# ---------------------------------------------------------------------------
# Parameter repacking: fold BN (+ conv bias) and reshape weights for im2col
# ---------------------------------------------------------------------------
def _fold_bn_into_conv(w_oihw, bias, gamma, beta, mean, var):
    inv = lax.rsqrt(var + EPS)
    scale = gamma * inv                                   # (Cout,)
    shift = beta + (bias - mean) * scale                  # (Cout,)
    cout, cin = w_oihw.shape[0], w_oihw.shape[1]
    # (Cout, Cin, 3, 3) -> (3, 3, Cin, Cout) -> (9*Cin, Cout): rows (dy,dx,cin)
    w = jnp.transpose(w_oihw, (2, 3, 1, 0)).reshape(9 * cin, cout)
    w = w * scale.reshape(1, cout)                        # fold scale into w
    return w, shift.reshape(1, cout)


# ---------------------------------------------------------------------------
# ResidualUnit forward (stride=1, downsample=None, Cin == Cout)
# ---------------------------------------------------------------------------
@jax.jit
def residual_unit_forward(x_nchw, params):
    x = jnp.transpose(x_nchw, (0, 2, 3, 1)).astype(jnp.float32)   # NHWC
    N, H, W, C = x.shape
    assert params["w1"].shape[0] == C, "requires in_channels == out_channels"

    w1, b1 = _fold_bn_into_conv(params["w1"], params["b1"], params["g1"],
                                params["be1"], params["m1"], params["v1"])
    w2, b2 = _fold_bn_into_conv(params["w2"], params["b2"], params["g2"],
                                params["be2"], params["m2"], params["v2"])

    kern = functools.partial(residual_unit_kernel, H=H, W=W, C=C)

    flops = 2 * 2 * N * H * W * (9 * C) * C            # two conv matmuls
    bytes_accessed = 4 * (2 * N * H * W * C            # activations in+out
                          + 2 * 9 * C * C + 2 * C)     # weights + shifts

    out = pl.pallas_call(
        kern,
        out_shape=jax.ShapeDtypeStruct((N, H, W, C), jnp.float32),
        grid=(N,),
        in_specs=[
            pl.BlockSpec((1, H, W, C), lambda n: (n, 0, 0, 0)),   # x / residual
            pl.BlockSpec((9 * C, C), lambda n: (0, 0)),           # w1 (resident)
            pl.BlockSpec((1, C), lambda n: (0, 0)),               # shift1
            pl.BlockSpec((9 * C, C), lambda n: (0, 0)),           # w2 (resident)
            pl.BlockSpec((1, C), lambda n: (0, 0)),               # shift2
        ],
        out_specs=pl.BlockSpec((1, H, W, C), lambda n: (n, 0, 0, 0)),
        scratch_shapes=[
            pltpu.VMEM((H + 2, W + 2, C), jnp.float32),           # halo pad
            pltpu.VMEM((H * W, 9 * C), jnp.float32),              # im2col patch
        ],
        compiler_params=pltpu.CompilerParams(
            dimension_semantics=("parallel",),        # split batch across TCs
            vmem_limit_bytes=32 * 1024 * 1024),       # safe on v5e/v6e/v7x
        cost_estimate=pl.CostEstimate(flops=flops, transcendentals=0,
                                      bytes_accessed=bytes_accessed),
    )(x, w1, b1, w2, b2)

    return jnp.transpose(out, (0, 3, 1, 2))   # back to NCHW


# ---------------------------------------------------------------------------
# Pure-JAX reference (eval-mode BN) for verification
# ---------------------------------------------------------------------------
def ref_forward(x, params):
    def conv(x, w, b):
        y = lax.conv_general_dilated(
            x, w, window_strides=(1, 1), padding=((1, 1), (1, 1)),
            dimension_numbers=("NCHW", "OIHW", "NCHW"))
        return y + b.reshape(1, -1, 1, 1)

    def bn(y, g, be, m, v):
        return (y - m.reshape(1, -1, 1, 1)) / jnp.sqrt(
            v.reshape(1, -1, 1, 1) + EPS) * g.reshape(1, -1, 1, 1) + \
            be.reshape(1, -1, 1, 1)

    out = conv(x, params["w1"], params["b1"])
    out = bn(out, params["g1"], params["be1"], params["m1"], params["v1"])
    out = jnp.maximum(out, 0.0)
    out = conv(out, params["w2"], params["b2"])
    out = bn(out, params["g2"], params["be2"], params["m2"], params["v2"])
    out = out + x
    return jnp.maximum(out, 0.0)


# ---------------------------------------------------------------------------
if __name__ == "__main__":
    N, C, H, W = 2, 8, 16, 16  # in_channels == out_channels, stride=1

    key = jax.random.PRNGKey(0)
    ks = jax.random.split(key, 12)

    params = {
        "w1": jax.random.normal(ks[0], (C, C, 3, 3), jnp.float32) * 0.1,
        "b1": jax.random.normal(ks[1], (C,), jnp.float32) * 0.1,
        "g1": 1.0 + 0.1 * jax.random.normal(ks[2], (C,), jnp.float32),
        "be1": 0.1 * jax.random.normal(ks[3], (C,), jnp.float32),
        "m1": 0.1 * jax.random.normal(ks[4], (C,), jnp.float32),
        "v1": jax.random.uniform(ks[5], (C,), jnp.float32, 0.5, 1.5),
        "w2": jax.random.normal(ks[6], (C, C, 3, 3), jnp.float32) * 0.1,
        "b2": jax.random.normal(ks[7], (C,), jnp.float32) * 0.1,
        "g2": 1.0 + 0.1 * jax.random.normal(ks[8], (C,), jnp.float32),
        "be2": 0.1 * jax.random.normal(ks[9], (C,), jnp.float32),
        "m2": 0.1 * jax.random.normal(ks[10], (C,), jnp.float32),
        "v2": jax.random.uniform(ks[11], (C,), jnp.float32, 0.5, 1.5),
    }

    x = jax.random.normal(jax.random.PRNGKey(0), (N, C, H, W), jnp.float32)

    out = residual_unit_forward(x, params)
    out = jax.block_until_ready(out)

    ref = ref_forward(x, params)
    assert out.shape == (N, C, H, W)
    assert bool(jnp.allclose(out, ref, rtol=1e-4, atol=1e-4)), \
        f"max abs err {float(jnp.max(jnp.abs(out - ref)))}"

    print("KERNEL_OK")
</pallas_src>

<mosaic_0001>
module attributes {stable_mosaic.version = 11 : i64} {
  func.func @residual_unit_kernel(%arg0: i32, %arg1: memref<1x16x16x8xf32, #tpu.memory_space<vmem>>, %arg2: memref<72x8xf32, #tpu.memory_space<vmem>>, %arg3: memref<1x8xf32, #tpu.memory_space<vmem>>, %arg4: memref<72x8xf32, #tpu.memory_space<vmem>>, %arg5: memref<1x8xf32, #tpu.memory_space<vmem>>, %arg6: memref<1x16x16x8xf32, #tpu.memory_space<vmem>>, %arg7: memref<18x18x8xf32, #tpu.memory_space<vmem>>, %arg8: memref<256x72xf32, #tpu.memory_space<vmem>>) attributes {dimension_semantics = [#tpu.dimension_semantics<parallel>], iteration_bounds = array<i64: 2>, scalar_prefetch = 0 : i64, scratch_operands = 2 : i64, tpu.core_type = #tpu.core_type<tc>, window_params = [{transform_indices = @transform_0, window_bounds = array<i64: 1, 16, 16, 8>}, {pipeline_mode = #tpu.pipeline_mode<synchronous>, transform_indices = @transform_1, window_bounds = array<i64: 72, 8>}, {pipeline_mode = #tpu.pipeline_mode<synchronous>, transform_indices = @transform_2, window_bounds = array<i64: 1, 8>}, {pipeline_mode = #tpu.pipeline_mode<synchronous>, transform_indices = @transform_3, window_bounds = array<i64: 72, 8>}, {pipeline_mode = #tpu.pipeline_mode<synchronous>, transform_indices = @transform_4, window_bounds = array<i64: 1, 8>}, {transform_indices = @transform_5, window_bounds = array<i64: 1, 16, 16, 8>}]} {
    %cst = arith.constant 0.000000e+00 : f32
    %0 = vector.broadcast %cst : f32 to vector<18x18x8xf32>
    %c0 = arith.constant 0 : index
    %c0_0 = arith.constant 0 : index
    %c0_1 = arith.constant 0 : index
    %1 = vector.load %arg7[%c0, %c0_0, %c0_1] : memref<18x18x8xf32, #tpu.memory_space<vmem>>, vector<18x18x8xf32>
    tpu.vector_store %arg7[%c0, %c0_0, %c0_1], %0 {strides = array<i32>} : memref<18x18x8xf32, #tpu.memory_space<vmem>>, vector<18x18x8xf32>,
    %c0_2 = arith.constant 0 : index
    %c0_3 = arith.constant 0 : index
    %c0_4 = arith.constant 0 : index
    %c0_5 = arith.constant 0 : index
    %2 = vector.load %arg1[%c0_2, %c0_3, %c0_4, %c0_5] : memref<1x16x16x8xf32, #tpu.memory_space<vmem>>, vector<1x16x16x8xf32>
    %3 = vector.shape_cast %2 : vector<1x16x16x8xf32> to vector<16x16x8xf32>
    %c1 = arith.constant 1 : index
    %c1_6 = arith.constant 1 : index
    %c0_7 = arith.constant 0 : index
    %4 = vector.load %arg7[%c1, %c1_6, %c0_7] : memref<18x18x8xf32, #tpu.memory_space<vmem>>, vector<16x16x8xf32>
    tpu.vector_store %arg7[%c1, %c1_6, %c0_7], %3 {strides = array<i32>} : memref<18x18x8xf32, #tpu.memory_space<vmem>>, vector<16x16x8xf32>,
    %c0_8 = arith.constant 0 : index
    %c0_9 = arith.constant 0 : index
    %c0_10 = arith.constant 0 : index
    %5 = vector.load %arg7[%c0_8, %c0_9, %c0_10] : memref<18x18x8xf32, #tpu.memory_space<vmem>>, vector<16x16x8xf32>
    %6 = vector.shape_cast %5 : vector<16x16x8xf32> to vector<256x8xf32>
    %c0_11 = arith.constant 0 : index
    %c0_12 = arith.constant 0 : index
    %7 = vector.load %arg8[%c0_11, %c0_12] : memref<256x72xf32, #tpu.memory_space<vmem>>, vector<256x8xf32>
    tpu.vector_store %arg8[%c0_11, %c0_12], %6 {strides = array<i32>} : memref<256x72xf32, #tpu.memory_space<vmem>>, vector<256x8xf32>,
    %c0_13 = arith.constant 0 : index
    %c1_14 = arith.constant 1 : index
    %c0_15 = arith.constant 0 : index
    %8 = vector.load %arg7[%c0_13, %c1_14, %c0_15] : memref<18x18x8xf32, #tpu.memory_space<vmem>>, vector<16x16x8xf32>
    %9 = vector.shape_cast %8 : vector<16x16x8xf32> to vector<256x8xf32>
    %c0_16 = arith.constant 0 : index
    %c8 = arith.constant 8 : index
    %10 = vector.load %arg8[%c0_16, %c8] : memref<256x72xf32, #tpu.memory_space<vmem>>, vector<256x8xf32>
    tpu.vector_store %arg8[%c0_16, %c8], %9 {strides = array<i32>} : memref<256x72xf32, #tpu.memory_space<vmem>>, vector<256x8xf32>,
    %c0_17 = arith.constant 0 : index
    %c2 = arith.constant 2 : index
    %c0_18 = arith.constant 0 : index
    %11 = vector.load %arg7[%c0_17, %c2, %c0_18] : memref<18x18x8xf32, #tpu.memory_space<vmem>>, vector<16x16x8xf32>
    %12 = vector.shape_cast %11 : vector<16x16x8xf32> to vector<256x8xf32>
    %c0_19 = arith.constant 0 : index
    %c16 = arith.constant 16 : index
    %13 = vector.load %arg8[%c0_19, %c16] : memref<256x72xf32, #tpu.memory_space<vmem>>, vector<256x8xf32>
    tpu.vector_store %arg8[%c0_19, %c16], %12 {strides = array<i32>} : memref<256x72xf32, #tpu.memory_space<vmem>>, vector<256x8xf32>,
    %c1_20 = arith.constant 1 : index
    %c0_21 = arith.constant 0 : index
    %c0_22 = arith.constant 0 : index
    %14 = vector.load %arg7[%c1_20, %c0_21, %c0_22] : memref<18x18x8xf32, #tpu.memory_space<vmem>>, vector<16x16x8xf32>
    %15 = vector.shape_cast %14 : vector<16x16x8xf32> to vector<256x8xf32>
    %c0_23 = arith.constant 0 : index
    %c24 = arith.constant 24 : index
    %16 = vector.load %arg8[%c0_23, %c24] : memref<256x72xf32, #tpu.memory_space<vmem>>, vector<256x8xf32>
    tpu.vector_store %arg8[%c0_23, %c24], %15 {strides = array<i32>} : memref<256x72xf32, #tpu.memory_space<vmem>>, vector<256x8xf32>,
    %c1_24 = arith.constant 1 : index
    %c1_25 = arith.constant 1 : index
    %c0_26 = arith.constant 0 : index
    %17 = vector.load %arg7[%c1_24, %c1_25, %c0_26] : memref<18x18x8xf32, #tpu.memory_space<vmem>>, vector<16x16x8xf32>
    %18 = vector.shape_cast %17 : vector<16x16x8xf32> to vector<256x8xf32>
    %c0_27 = arith.constant 0 : index
    %c32 = arith.constant 32 : index
    %19 = vector.load %arg8[%c0_27, %c32] : memref<256x72xf32, #tpu.memory_space<vmem>>, vector<256x8xf32>
    tpu.vector_store %arg8[%c0_27, %c32], %18 {strides = array<i32>} : memref<256x72xf32, #tpu.memory_space<vmem>>, vector<256x8xf32>,
    %c1_28 = arith.constant 1 : index
    %c2_29 = arith.constant 2 : index
    %c0_30 = arith.constant 0 : index
    %20 = vector.load %arg7[%c1_28, %c2_29, %c0_30] : memref<18x18x8xf32, #tpu.memory_space<vmem>>, vector<16x16x8xf32>
    %21 = vector.shape_cast %20 : vector<16x16x8xf32> to vector<256x8xf32>
    %c0_31 = arith.constant 0 : index
    %c40 = arith.constant 40 : index
    %22 = vector.load %arg8[%c0_31, %c40] : memref<256x72xf32, #tpu.memory_space<vmem>>, vector<256x8xf32>
    tpu.vector_store %arg8[%c0_31, %c40], %21 {strides = array<i32>} : memref<256x72xf32, #tpu.memory_space<vmem>>, vector<256x8xf32>,
    %c2_32 = arith.constant 2 : index
    %c0_33 = arith.constant 0 : index
    %c0_34 = arith.constant 0 : index
    %23 = vector.load %arg7[%c2_32, %c0_33, %c0_34] : memref<18x18x8xf32, #tpu.memory_space<vmem>>, vector<16x16x8xf32>
    %24 = vector.shape_cast %23 : vector<16x16x8xf32> to vector<256x8xf32>
    %c0_35 = arith.constant 0 : index
    %c48 = arith.constant 48 : index
    %25 = vector.load %arg8[%c0_35, %c48] : memref<256x72xf32, #tpu.memory_space<vmem>>, vector<256x8xf32>
    tpu.vector_store %arg8[%c0_35, %c48], %24 {strides = array<i32>} : memref<256x72xf32, #tpu.memory_space<vmem>>, vector<256x8xf32>,
    %c2_36 = arith.constant 2 : index
    %c1_37 = arith.constant 1 : index
    %c0_38 = arith.constant 0 : index
    %26 = vector.load %arg7[%c2_36, %c1_37, %c0_38] : memref<18x18x8xf32, #tpu.memory_space<vmem>>, vector<16x16x8xf32>
    %27 = vector.shape_cast %26 : vector<16x16x8xf32> to vector<256x8xf32>
    %c0_39 = arith.constant 0 : index
    %c56 = arith.constant 56 : index
    %28 = vector.load %arg8[%c0_39, %c56] : memref<256x72xf32, #tpu.memory_space<vmem>>, vector<256x8xf32>
    tpu.vector_store %arg8[%c0_39, %c56], %27 {strides = array<i32>} : memref<256x72xf32, #tpu.memory_space<vmem>>, vector<256x8xf32>,
    %c2_40 = arith.constant 2 : index
    %c2_41 = arith.constant 2 : index
    %c0_42 = arith.constant 0 : index
    %29 = vector.load %arg7[%c2_40, %c2_41, %c0_42] : memref<18x18x8xf32, #tpu.memory_space<vmem>>, vector<16x16x8xf32>
    %30 = vector.shape_cast %29 : vector<16x16x8xf32> to vector<256x8xf32>
    %c0_43 = arith.constant 0 : index
    %c64 = arith.constant 64 : index
    %31 = vector.load %arg8[%c0_43, %c64] : memref<256x72xf32, #tpu.memory_space<vmem>>, vector<256x8xf32>
    tpu.vector_store %arg8[%c0_43, %c64], %30 {strides = array<i32>} : memref<256x72xf32, #tpu.memory_space<vmem>>, vector<256x8xf32>,
    %c0_44 = arith.constant 0 : index
    %c0_45 = arith.constant 0 : index
    %32 = vector.load %arg8[%c0_44, %c0_45] : memref<256x72xf32, #tpu.memory_space<vmem>>, vector<256x72xf32>
    %c0_46 = arith.constant 0 : index
    %c0_47 = arith.constant 0 : index
    %33 = vector.load %arg2[%c0_46, %c0_47] : memref<72x8xf32, #tpu.memory_space<vmem>>, vector<72x8xf32>
    %cst_48 = arith.constant dense<0.000000e+00> : vector<256x8xf32>
    %34 = tpu.matmul %32, %33, %cst_48 {dimension_numbers = #tpu.dot_dimension_numbers<[1], [0], [0], [1], [0, 0, 1, 1], [], []>} : vector<256x72xf32>, vector<72x8xf32>, vector<256x8xf32> -> vector<256x8xf32>
    %c0_49 = arith.constant 0 : index
    %c0_50 = arith.constant 0 : index
    %35 = vector.load %arg3[%c0_49, %c0_50] : memref<1x8xf32, #tpu.memory_space<vmem>>, vector<1x8xf32>
    %36 = vector.broadcast %35 : vector<1x8xf32> to vector<256x8xf32>
    %37 = arith.addf %34, %36 : vector<256x8xf32>
    %cst_51 = arith.constant 0.000000e+00 : f32
    %38 = vector.broadcast %cst_51 : f32 to vector<256x8xf32>
    %39 = arith.maximumf %37, %38 : vector<256x8xf32>
    %40 = vector.shape_cast %39 : vector<256x8xf32> to vector<16x16x8xf32>
    %c1_52 = arith.constant 1 : index
    %c1_53 = arith.constant 1 : index
    %c0_54 = arith.constant 0 : index
    %41 = vector.load %arg7[%c1_52, %c1_53, %c0_54] : memref<18x18x8xf32, #tpu.memory_space<vmem>>, vector<16x16x8xf32>
    tpu.vector_store %arg7[%c1_52, %c1_53, %c0_54], %40 {strides = array<i32>} : memref<18x18x8xf32, #tpu.memory_space<vmem>>, vector<16x16x8xf32>,
    %c0_55 = arith.constant 0 : index
    %c0_56 = arith.constant 0 : index
    %c0_57 = arith.constant 0 : index
    %42 = vector.load %arg7[%c0_55, %c0_56, %c0_57] : memref<18x18x8xf32, #tpu.memory_space<vmem>>, vector<16x16x8xf32>
    %43 = vector.shape_cast %42 : vector<16x16x8xf32> to vector<256x8xf32>
    %c0_58 = arith.constant 0 : index
    %c0_59 = arith.constant 0 : index
    %44 = vector.load %arg8[%c0_58, %c0_59] : memref<256x72xf32, #tpu.memory_space<vmem>>, vector<256x8xf32>
    tpu.vector_store %arg8[%c0_58, %c0_59], %43 {strides = array<i32>} : memref<256x72xf32, #tpu.memory_space<vmem>>, vector<256x8xf32>,
    %c0_60 = arith.constant 0 : index
    %c1_61 = arith.constant 1 : index
    %c0_62 = arith.constant 0 : index
    %45 = vector.load %arg7[%c0_60, %c1_61, %c0_62] : memref<18x18x8xf32, #tpu.memory_space<vmem>>, vector<16x16x8xf32>
    %46 = vector.shape_cast %45 : vector<16x16x8xf32> to vector<256x8xf32>
    %c0_63 = arith.constant 0 : index
    %c8_64 = arith.constant 8 : index
    %47 = vector.load %arg8[%c0_63, %c8_64] : memref<256x72xf32, #tpu.memory_space<vmem>>, vector<256x8xf32>
    tpu.vector_store %arg8[%c0_63, %c8_64], %46 {strides = array<i32>} : memref<256x72xf32, #tpu.memory_space<vmem>>, vector<256x8xf32>,
    %c0_65 = arith.constant 0 : index
    %c2_66 = arith.constant 2 : index
    %c0_67 = arith.constant 0 : index
    %48 = vector.load %arg7[%c0_65, %c2_66, %c0_67] : memref<18x18x8xf32, #tpu.memory_space<vmem>>, vector<16x16x8xf32>
    %49 = vector.shape_cast %48 : vector<16x16x8xf32> to vector<256x8xf32>
    %c0_68 = arith.constant 0 : index
    %c16_69 = arith.constant 16 : index
    %50 = vector.load %arg8[%c0_68, %c16_69] : memref<256x72xf32, #tpu.memory_space<vmem>>, vector<256x8xf32>
    tpu.vector_store %arg8[%c0_68, %c16_69], %49 {strides = array<i32>} : memref<256x72xf32, #tpu.memory_space<vmem>>, vector<256x8xf32>,
    %c1_70 = arith.constant 1 : index
    %c0_71 = arith.constant 0 : index
    %c0_72 = arith.constant 0 : index
    %51 = vector.load %arg7[%c1_70, %c0_71, %c0_72] : memref<18x18x8xf32, #tpu.memory_space<vmem>>, vector<16x16x8xf32>
    %52 = vector.shape_cast %51 : vector<16x16x8xf32> to vector<256x8xf32>
    %c0_73 = arith.constant 0 : index
    %c24_74 = arith.constant 24 : index
    %53 = vector.load %arg8[%c0_73, %c24_74] : memref<256x72xf32, #tpu.memory_space<vmem>>, vector<256x8xf32>
    tpu.vector_store %arg8[%c0_73, %c24_74], %52 {strides = array<i32>} : memref<256x72xf32, #tpu.memory_space<vmem>>, vector<256x8xf32>,
    %c1_75 = arith.constant 1 : index
    %c1_76 = arith.constant 1 : index
    %c0_77 = arith.constant 0 : index
    %54 = vector.load %arg7[%c1_75, %c1_76, %c0_77] : memref<18x18x8xf32, #tpu.memory_space<vmem>>, vector<16x16x8xf32>
    %55 = vector.shape_cast %54 : vector<16x16x8xf32> to vector<256x8xf32>
    %c0_78 = arith.constant 0 : index
    %c32_79 = arith.constant 32 : index
    %56 = vector.load %arg8[%c0_78, %c32_79] : memref<256x72xf32, #tpu.memory_space<vmem>>, vector<256x8xf32>
    tpu.vector_store %arg8[%c0_78, %c32_79], %55 {strides = array<i32>} : memref<256x72xf32, #tpu.memory_space<vmem>>, vector<256x8xf32>,
    %c1_80 = arith.constant 1 : index
    %c2_81 = arith.constant 2 : index
    %c0_82 = arith.constant 0 : index
    %57 = vector.load %arg7[%c1_80, %c2_81, %c0_82] : memref<18x18x8xf32, #tpu.memory_space<vmem>>, vector<16x16x8xf32>
    %58 = vector.shape_cast %57 : vector<16x16x8xf32> to vector<256x8xf32>
    %c0_83 = arith.constant 0 : index
    %c40_84 = arith.constant 40 : index
    %59 = vector.load %arg8[%c0_83, %c40_84] : memref<256x72xf32, #tpu.memory_space<vmem>>, vector<256x8xf32>
    tpu.vector_store %arg8[%c0_83, %c40_84], %58 {strides = array<i32>} : memref<256x72xf32, #tpu.memory_space<vmem>>, vector<256x8xf32>,
    %c2_85 = arith.constant 2 : index
    %c0_86 = arith.constant 0 : index
    %c0_87 = arith.constant 0 : index
    %60 = vector.load %arg7[%c2_85, %c0_86, %c0_87] : memref<18x18x8xf32, #tpu.memory_space<vmem>>, vector<16x16x8xf32>
    %61 = vector.shape_cast %60 : vector<16x16x8xf32> to vector<256x8xf32>
    %c0_88 = arith.constant 0 : index
    %c48_89 = arith.constant 48 : index
    %62 = vector.load %arg8[%c0_88, %c48_89] : memref<256x72xf32, #tpu.memory_space<vmem>>, vector<256x8xf32>
    tpu.vector_store %arg8[%c0_88, %c48_89], %61 {strides = array<i32>} : memref<256x72xf32, #tpu.memory_space<vmem>>, vector<256x8xf32>,
    %c2_90 = arith.constant 2 : index
    %c1_91 = arith.constant 1 : index
    %c0_92 = arith.constant 0 : index
    %63 = vector.load %arg7[%c2_90, %c1_91, %c0_92] : memref<18x18x8xf32, #tpu.memory_space<vmem>>, vector<16x16x8xf32>
    %64 = vector.shape_cast %63 : vector<16x16x8xf32> to vector<256x8xf32>
    %c0_93 = arith.constant 0 : index
    %c56_94 = arith.constant 56 : index
    %65 = vector.load %arg8[%c0_93, %c56_94] : memref<256x72xf32, #tpu.memory_space<vmem>>, vector<256x8xf32>
    tpu.vector_store %arg8[%c0_93, %c56_94], %64 {strides = array<i32>} : memref<256x72xf32, #tpu.memory_space<vmem>>, vector<256x8xf32>,
    %c2_95 = arith.constant 2 : index
    %c2_96 = arith.constant 2 : index
    %c0_97 = arith.constant 0 : index
    %66 = vector.load %arg7[%c2_95, %c2_96, %c0_97] : memref<18x18x8xf32, #tpu.memory_space<vmem>>, vector<16x16x8xf32>
    %67 = vector.shape_cast %66 : vector<16x16x8xf32> to vector<256x8xf32>
    %c0_98 = arith.constant 0 : index
    %c64_99 = arith.constant 64 : index
    %68 = vector.load %arg8[%c0_98, %c64_99] : memref<256x72xf32, #tpu.memory_space<vmem>>, vector<256x8xf32>
    tpu.vector_store %arg8[%c0_98, %c64_99], %67 {strides = array<i32>} : memref<256x72xf32, #tpu.memory_space<vmem>>, vector<256x8xf32>,
    %c0_100 = arith.constant 0 : index
    %c0_101 = arith.constant 0 : index
    %69 = vector.load %arg8[%c0_100, %c0_101] : memref<256x72xf32, #tpu.memory_space<vmem>>, vector<256x72xf32>
    %c0_102 = arith.constant 0 : index
    %c0_103 = arith.constant 0 : index
    %70 = vector.load %arg4[%c0_102, %c0_103] : memref<72x8xf32, #tpu.memory_space<vmem>>, vector<72x8xf32>
    %cst_104 = arith.constant dense<0.000000e+00> : vector<256x8xf32>
    %71 = tpu.matmul %69, %70, %cst_104 {dimension_numbers = #tpu.dot_dimension_numbers<[1], [0], [0], [1], [0, 0, 1, 1], [], []>} : vector<256x72xf32>, vector<72x8xf32>, vector<256x8xf32> -> vector<256x8xf32>
    %c0_105 = arith.constant 0 : index
    %c0_106 = arith.constant 0 : index
    %72 = vector.load %arg5[%c0_105, %c0_106] : memref<1x8xf32, #tpu.memory_space<vmem>>, vector<1x8xf32>
    %73 = vector.broadcast %72 : vector<1x8xf32> to vector<256x8xf32>
    %74 = arith.addf %71, %73 : vector<256x8xf32>
    %75 = vector.shape_cast %3 : vector<16x16x8xf32> to vector<256x8xf32>
    %76 = arith.addf %74, %75 : vector<256x8xf32>
    %cst_107 = arith.constant 0.000000e+00 : f32
    %77 = vector.broadcast %cst_107 : f32 to vector<256x8xf32>
    %78 = arith.maximumf %76, %77 : vector<256x8xf32>
    %79 = vector.shape_cast %78 : vector<256x8xf32> to vector<1x16x16x8xf32>
    %c0_108 = arith.constant 0 : index
    %c0_109 = arith.constant 0 : index
    %c0_110 = arith.constant 0 : index
    %c0_111 = arith.constant 0 : index
    %80 = vector.load %arg6[%c0_108, %c0_109, %c0_110, %c0_111] : memref<1x16x16x8xf32, #tpu.memory_space<vmem>>, vector<1x16x16x8xf32>
    tpu.vector_store %arg6[%c0_108, %c0_109, %c0_110, %c0_111], %79 {strides = array<i32>} : memref<1x16x16x8xf32, #tpu.memory_space<vmem>>, vector<1x16x16x8xf32>,
    return
  }
  func.func @transform_0(%arg0: i32) -> (i32, i32, i32, i32) {
    %c0_i32 = arith.constant 0 : i32
    %c0_i32_0 = arith.constant 0 : i32
    %c0_i32_1 = arith.constant 0 : i32
    %c0_i32_2 = arith.constant 0 : i32
    return %arg0, %c0_i32, %c0_i32_0, %c0_i32_1 : i32, i32, i32, i32
  }
  func.func @transform_1(%arg0: i32) -> (i32, i32) {
    %c0_i32 = arith.constant 0 : i32
    %c0_i32_0 = arith.constant 0 : i32
    %c0_i32_1 = arith.constant 0 : i32
    return %c0_i32, %c0_i32_0 : i32, i32
  }
  func.func @transform_2(%arg0: i32) -> (i32, i32) {
    %c0_i32 = arith.constant 0 : i32
    %c0_i32_0 = arith.constant 0 : i32
    %c0_i32_1 = arith.constant 0 : i32
    return %c0_i32, %c0_i32_0 : i32, i32
  }
  func.func @transform_3(%arg0: i32) -> (i32, i32) {
    %c0_i32 = arith.constant 0 : i32
    %c0_i32_0 = arith.constant 0 : i32
    %c0_i32_1 = arith.constant 0 : i32
    return %c0_i32, %c0_i32_0 : i32, i32
  }
  func.func @transform_4(%arg0: i32) -> (i32, i32) {
    %c0_i32 = arith.constant 0 : i32
    %c0_i32_0 = arith.constant 0 : i32
    %c0_i32_1 = arith.constant 0 : i32
    return %c0_i32, %c0_i32_0 : i32, i32
  }
  func.func @transform_5(%arg0: i32) -> (i32, i32, i32, i32) {
    %c0_i32 = arith.constant 0 : i32
    %c0_i32_0 = arith.constant 0 : i32
    %c0_i32_1 = arith.constant 0 : i32
    %c0_i32_2 = arith.constant 0 : i32
    return %arg0, %c0_i32, %c0_i32_0, %c0_i32_1 : i32, i32, i32, i32
  }
}

</mosaic_0001>

<bundles_post_ra>
// kernel: residual_unit_forward.1
= control target key start
LH: loop header
LB: loop body
LE: loop exit
PB: predicated region body
PF: predicated region fallthrough
CT: control target
= control target key end

     0   :  { %s4898_s18 = smov 0   ;;  %s7223_s0 = inlined_call_operand.vmem [shape: f32[2,16,16,8], index: 0, kind: input, shape index: {}]   ;;  %s7224_s1 = inlined_call_operand.vmem [shape: f32[72,8], index: 1, kind: input, shape index: {}]   ;;  %s7225_s2 = inlined_call_operand.vmem [shape: f32[1,8], index: 2, kind: input, shape index: {}]   ;;  %s7226_s3 = inlined_call_operand.vmem [shape: f32[72,8], index: 3, kind: input, shape index: {}]   ;;  %s7227_s4 = inlined_call_operand.vmem [shape: f32[1,8], index: 4, kind: input, shape index: {}]   ;;  %s7228_s5 = inlined_call_operand.vmem [shape: f32[2,16,16,8], index: 5, kind: output, shape index: {}]  }
   0x1 LB: > { %s4509_s19 = sadd.s32 4294967295, %s4857_s18   ;;  %p4513_p0 = scmp.ge.s32.totalorder %s4857_s18, 1  ;;  %s4857_s18 = sphi %s4898_s18, %s15_s18  }
   0x2   : > { %p187_p1 = scmp.lt.s32.totalorder %s4857_s18, 3 }
   0x4   : > { %p188_p2 = pnand %p4513_p0, %p187_p1 }
   0x6   : > { %191 = sbr.rel (%p188_p2) target bundleno = 1686 (0x696), region = 40 }
   0xd   : > { %vm225_vm0 = vcmask 64512   ;;  %p4908_p3 = scmp.lt.s32.totalorder %s4509_s19, 1  ;;  %vm228_vm1 = vcmask 58368   ;;  %v4859_v0 = vmov 0.0   ;;  %s4860_s25 = smov 8   ;;  %vm570_vm2 = vcmask 130112  }
   0xe   : > { %226 = vst.msk [vmem:[#allocation2] sm:$0xff] %vm225_vm0, %v4859_v0  ;;  %227 = vst.msk [vmem:[#allocation2 + $0x8] sm:$0xff] %vm225_vm0, %v4859_v0  ;;  %s4861_s26 = smov 16   ;;  %s4862_s27 = smov 24   ;;  %vm763_vm3 = vcmask 195712   ;;  %vm956_vm4 = vcmask 261312  }
   0xf   : > { %230 = vst.msk [vmem:[#allocation2 + $0x18] sm:$0xff] %vm225_vm0, %v4859_v0  ;;  %231 = vst.msk [vmem:[#allocation2 + $0x20] sm:$0xff] %vm225_vm0, %v4859_v0  ;;  %s7417_s19 = smov (!%p4908_p3, %s4509_s19), 1  ;;  %s4863_s28 = smov 32   ;;  %vm1149_vm5 = vcmask 326912   ;;  %vm1342_vm6 = vcmask 392512  }
  0x10   : > { %233 = vst.msk [vmem:[#allocation2 + $0x30] sm:$0xff] %vm225_vm0, %v4859_v0  ;;  %234 = vst.msk [vmem:[#allocation2 + $0x38] sm:$0xff] %vm225_vm0, %v4859_v0  ;;  %s4586_s21 = sshll.u32 %s7417_s19, 8  ;;  %s4864_s29 = smov 40   ;;  %vm1536_vm7 = vcmask 458112   ;;  %vm1729_vm8 = vcmask 523712  }
  0x11   : > { %236 = vst.msk [vmem:[#allocation2 + $0x48] sm:$0xff] %vm225_vm0, %v4859_v0  ;;  %237 = vst.msk [vmem:[#allocation2 + $0x50] sm:$0xff] %vm225_vm0, %v4859_v0  ;;  %s4978_s24 = scalar_lea.vmem %s7223_s0, %s4586_s21  ;;  %s4865_s30 = smov 48   ;;  %vm1922_vm9 = vcmask 589312   ;;  %vm2003_vm10 = vcmask 588800  }
  0x12   : > { %239 = vst.msk [vmem:[#allocation2 + $0x60] sm:$0xff] %vm225_vm0, %v4859_v0  ;;  %240 = vst.msk [vmem:[#allocation2 + $0x68] sm:$0xff] %vm225_vm0, %v4859_v0  ;;  %v4981_v1 = vld [vmem:[%s4978_s24] sm:$0xff]  ;;  %v4984_v2 = vld [vmem:[%s4978_s24 + $0x8] sm:$0xff]  ;;  %s4866_s6 = smov 56   ;;  %s4867_s9 = smov 64  }
  0x13   : > { %242 = vst.msk [vmem:[#allocation2 + $0x78] sm:$0xff] %vm225_vm0, %v4859_v0  ;;  %243 = vst.msk [vmem:[#allocation2 + $0x80] sm:$0xff] %vm225_vm0, %v4859_v0  ;;  %v4987_v3 = vld [vmem:[%s4978_s24 + $0x10] sm:$0xff]  ;;  %v4996_v4 = vld [vmem:[%s4978_s24 + $0x18] sm:$0xff] }
  0x14   : > { %245 = vst.msk [vmem:[#allocation2 + $0x90] sm:$0xff] %vm225_vm0, %v4859_v0  ;;  %246 = vst.msk [vmem:[#allocation2 + $0x98] sm:$0xff] %vm225_vm0, %v4859_v0  ;;  %v4999_v5 = vld [vmem:[%s4978_s24 + $0x20] sm:$0xff]  ;;  %v5002_v6 = vld [vmem:[%s4978_s24 + $0x28] sm:$0xff] }
  0x15   : > { %248 = vst.msk [vmem:[#allocation2 + $0xa8] sm:$0xff] %vm225_vm0, %v4859_v0  ;;  %249 = vst.msk [vmem:[#allocation2 + $0xb0] sm:$0xff] %vm225_vm0, %v4859_v0  ;;  %v410_v7 = vld [vmem:[#allocation2 + $0x1] sm:$0xff]  ;;  %v5011_v9 = vld [vmem:[%s4978_s24 + $0x30] sm:$0xff] }
  0x16   : > { %251 = vst.msk [vmem:[#allocation2 + $0xc0] sm:$0xff] %vm225_vm0, %v4859_v0  ;;  %252 = vst.msk [vmem:[#allocation2 + $0xc8] sm:$0xff] %vm225_vm0, %v4859_v0  ;;  %474 = vrot.lane.b32.xlu0 %v410_v7, %s4860_s25  ;;  %v5017_v10 = vld [vmem:[%s4978_s24 + $0x38] sm:$0xff]  ;;  %v5020_v11 = vld [vmem:[%s4978_s24 + $0x40] sm:$0xff] }
  0x17   : > { %254 = vst.msk [vmem:[#allocation2 + $0xd8] sm:$0xff] %vm225_vm0, %v4859_v0  ;;  %255 = vst.msk [vmem:[#allocation2 + $0xe0] sm:$0xff] %vm225_vm0, %v4859_v0  ;;  %v5023_v12 = vld [vmem:[%s4978_s24 + $0x48] sm:$0xff]  ;;  %v5032_v13 = vld [vmem:[%s4978_s24 + $0x50] sm:$0xff] }
  0x18   : > { %257 = vst.msk [vmem:[#allocation2 + $0xf0] sm:$0xff] %vm225_vm0, %v4859_v0  ;;  %258 = vst.msk [vmem:[#allocation2 + $0xf8] sm:$0xff] %vm225_vm0, %v4859_v0  ;;  %v5035_v14 = vld [vmem:[%s4978_s24 + $0x58] sm:$0xff]  ;;  %v5038_v15 = vld [vmem:[%s4978_s24 + $0x60] sm:$0xff] }
  0x19   : > { %260 = vst.msk [vmem:[#allocation2 + $0x108] sm:$0xff] %vm225_vm0, %v4859_v0  ;;  %261 = vst.msk [vmem:[#allocation2 + $0x110] sm:$0xff] %vm225_vm0, %v4859_v0  ;;  %v5047_v16 = vld [vmem:[%s4978_s24 + $0x68] sm:$0xff]  ;;  %v5050_v17 = vld [vmem:[%s4978_s24 + $0x70] sm:$0xff] }
  0x1a   : > { %263 = vst.msk [vmem:[#allocation2 + $0x120] sm:$0xff] %vm225_vm0, %v4859_v0  ;;  %264 = vst.msk [vmem:[#allocation2 + $0x128] sm:$0xff] %vm225_vm0, %v4859_v0  ;;  %v5053_v18 = vld [vmem:[%s4978_s24 + $0x78] sm:$0xff]  ;;  %v5062_v19 = vld [vmem:[%s4978_s24 + $0x80] sm:$0xff] }
  0x1b   : > { %266 = vst.msk [vmem:[#allocation2 + $0x138] sm:$0xff] %vm225_vm0, %v4859_v0  ;;  %267 = vst.msk [vmem:[#allocation2 + $0x140] sm:$0xff] %vm225_vm0, %v4859_v0  ;;  %v5065_v20 = vld [vmem:[%s4978_s24 + $0x88] sm:$0xff]  ;;  %v5068_v21 = vld [vmem:[%s4978_s24 + $0x90] sm:$0xff] }
  0x1c   : > { %269 = vst.msk [vmem:[#allocation2 + $0x150] sm:$0xff] %vm225_vm0, %v4859_v0  ;;  %270 = vst.msk [vmem:[#allocation2 + $0x158] sm:$0xff] %vm225_vm0, %v4859_v0  ;;  %v5078_v22 = vld [vmem:[%s4978_s24 + $0x98] sm:$0xff]  ;;  %v5081_v23 = vld [vmem:[%s4978_s24 + $0xa0] sm:$0xff] }
  0x1d   : > { %272 = vst.msk [vmem:[#allocation2 + $0x168] sm:$0xff] %vm225_vm0, %v4859_v0  ;;  %273 = vst.msk [vmem:[#allocation2 + $0x170] sm:$0xff] %vm225_vm0, %v4859_v0  ;;  %v5084_v24 = vld [vmem:[%s4978_s24 + $0xa8] sm:$0xff]  ;;  %v5101_v28 = vld [vmem:[%s4978_s24 + $0xb0] sm:$0xff] }
  0x1e   : > { %275 = vst.msk [vmem:[#allocation2 + $0x180] sm:$0xff] %vm225_vm0, %v4859_v0  ;;  %276 = vst.msk [vmem:[#allocation2 + $0x188] sm:$0xff] %vm225_vm0, %v4859_v0  ;;  %v5104_v29 = vld [vmem:[%s4978_s24 + $0xb8] sm:$0xff]  ;;  %v5123_v33 = vld [vmem:[%s4978_s24 + $0xc0] sm:$0xff] }
  0x1f   : > { %278 = vst.msk [vmem:[#allocation2 + $0x198] sm:$0xff] %vm225_vm0, %v4859_v0  ;;  %279 = vst.msk [vmem:[#allocation2 + $0x1a0] sm:$0xff] %vm225_vm0, %v4859_v0  ;;  %v5126_v34 = vld [vmem:[%s4978_s24 + $0xc8] sm:$0xff]  ;;  %v5129_v35 = vld [vmem:[%s4978_s24 + $0xd0] sm:$0xff] }
  0x20   : > { %229 = vst.msk [vmem:[#allocation2 + $0x10] sm:$0x3] %vm228_vm1, %v4859_v0  ;;  %232 = vst.msk [vmem:[#allocation2 + $0x28] sm:$0x3] %vm228_vm1, %v4859_v0  ;;  %v5140_v36 = vld [vmem:[%s4978_s24 + $0xd8] sm:$0xff]  ;;  %v5143_v37 = vld [vmem:[%s4978_s24 + $0xe0] sm:$0xff] }
  0x21   : > { %235 = vst.msk [vmem:[#allocation2 + $0x40] sm:$0x3] %vm228_vm1, %v4859_v0  ;;  %238 = vst.msk [vmem:[#allocation2 + $0x58] sm:$0x3] %vm228_vm1, %v4859_v0  ;;  %v5146_v38 = vld [vmem:[%s4978_s24 + $0xe8] sm:$0xff]  ;;  %v346_v45 = vld [vmem:[#allocation2] sm:$0xff] }
  0x22   : > { %241 = vst.msk [vmem:[#allocation2 + $0x70] sm:$0x3] %vm228_vm1, %v4859_v0  ;;  %244 = vst.msk [vmem:[#allocation2 + $0x88] sm:$0x3] %vm228_vm1, %v4859_v0  ;;  %v347_v48 = vld [vmem:[#allocation2 + $0x8] sm:$0xff] }
  0x23   : > { %247 = vst.msk [vmem:[#allocation2 + $0xa0] sm:$0x3] %vm228_vm1, %v4859_v0  ;;  %250 = vst.msk [vmem:[#allocation2 + $0xb8] sm:$0x3] %vm228_vm1, %v4859_v0 }
  0x24   : > { %253 = vst.msk [vmem:[#allocation2 + $0xd0] sm:$0x3] %vm228_vm1, %v4859_v0  ;;  %256 = vst.msk [vmem:[#allocation2 + $0xe8] sm:$0x3] %vm228_vm1, %v4859_v0 }
  0x25   : > { %259 = vst.msk [vmem:[#allocation2 + $0x100] sm:$0x3] %vm228_vm1, %v4859_v0  ;;  %262 = vst.msk [vmem:[#allocation2 + $0x118] sm:$0x3] %vm228_vm1, %v4859_v0 }
  0x26   : > { %265 = vst.msk [vmem:[#allocation2 + $0x130] sm:$0x3] %vm228_vm1, %v4859_v0  ;;  %268 = vst.msk [vmem:[#allocation2 + $0x148] sm:$0x3] %vm228_vm1, %v4859_v0 }
  0x27   : > { %271 = vst.msk [vmem:[#allocation2 + $0x160] sm:$0x3] %vm228_vm1, %v4859_v0  ;;  %274 = vst.msk [vmem:[#allocation2 + $0x178] sm:$0x3] %vm228_vm1, %v4859_v0  ;;  %v411_v8 = vld [vmem:[#allocation2 + $0x9] sm:$0xff] }
  0x28   : > { %277 = vst.msk [vmem:[#allocation2 + $0x190] sm:$0x3] %vm228_vm1, %v4859_v0  ;;  %280 = vst.msk [vmem:[#allocation2 + $0x1a8] sm:$0x3] %vm228_vm1, %v4859_v0  ;;  %476 = vrot.lane.b32.xlu0 %v411_v8, %s4860_s25 }
  0x29   : > { %7292 = vst [vmem:[#allocation4_spill] sm:$0xff] %v4981_v1  ;;  %7293 = vst [vmem:[#allocation5_spill] sm:$0xff] %v4984_v2 }
  0x2a   : > { %7294 = vst [vmem:[#allocation6_spill] sm:$0xff] %v4987_v3  ;;  %314 = vst.msk [vmem:[#allocation2 + $0x19] sm:$0xff] %vm225_vm0, %v4981_v1 }
  0x2b   : > { %315 = vst.msk [vmem:[#allocation2 + $0x21] sm:$0xff] %vm225_vm0, %v4984_v2  ;;  %316 = vst.msk [vmem:[#allocation2 + $0x31] sm:$0xff] %vm225_vm0, %v4987_v3 }
  0x2c   : > { %7295 = vst [vmem:[#allocation7_spill] sm:$0xff] %v4996_v4  ;;  %7296 = vst [vmem:[#allocation8_spill] sm:$0xff] %v4999_v5 }
  0x2d   : > { %7297 = vst [vmem:[#allocation9_spill] sm:$0xff] %v5002_v6  ;;  %317 = vst.msk [vmem:[#allocation2 + $0x39] sm:$0xff] %vm225_vm0, %v4996_v4  ;;  %v603_v4 = vld [vmem:[#allocation2 + $0x2] sm:$0xff] }
  0x2e   : > { %318 = vst.msk [vmem:[#allocation2 + $0x49] sm:$0xff] %vm225_vm0, %v4999_v5  ;;  %319 = vst.msk [vmem:[#allocation2 + $0x51] sm:$0xff] %vm225_vm0, %v5002_v6  ;;  %v5368_v6 = vld [vmem:[%s4978_s24 + $0xf8] sm:$0xff] }
  0x2f   : > { %7298 = vst [vmem:[#allocation10_spill] sm:$0xff] %v5011_v9  ;;  %320 = vst.msk [vmem:[#allocation2 + $0x61] sm:$0xff] %vm225_vm0, %v5011_v9 }
  0x30   : > { %7299 = vst [vmem:[#allocation11_spill] sm:$0xff] %v5017_v10  ;;  %7300 = vst [vmem:[#allocation12_spill] sm:$0xff] %v5020_v11 }
  0x31   : > { %7301 = vst [vmem:[#allocation13_spill] sm:$0xff] %v5023_v12  ;;  %321 = vst.msk [vmem:[#allocation2 + $0x69] sm:$0xff] %vm225_vm0, %v5017_v10  ;;  %v5086_v25 = vld [vmem:[#allocation2 + $0x19] sm:$0xff]  ;;  %v5361_v10 = vld [vmem:[%s4978_s24 + $0xf0] sm:$0xff] }
  0x32   : > { %322 = vst.msk [vmem:[#allocation2 + $0x79] sm:$0xff] %vm225_vm0, %v5020_v11  ;;  %323 = vst.msk [vmem:[#allocation2 + $0x81] sm:$0xff] %vm225_vm0, %v5023_v12  ;;  %v5088_v26 = vld [vmem:[#allocation2 + $0x31] sm:$0xff]  ;;  %478 = vrot.lane.b32.xlu1 %v5086_v25, %s4860_s25  ;;  %v5098_v27 = vld [vmem:[#allocation2 + $0x21] sm:$0xff] }
  0x33   : > { %7302 = vst [vmem:[#allocation14_spill] sm:$0xff] %v5032_v13  ;;  %7303 = vst [vmem:[#allocation15_spill] sm:$0xff] %v5035_v14  ;;  %482 = vrot.lane.b32.xlu0 %v5088_v26, %s4860_s25  ;;  %v5178_v46 = vld [vmem:[#allocation2 + $0x18] sm:$0xff]  ;;  %v5188_v49 = vld [vmem:[#allocation2 + $0x20] sm:$0xff] }
  0x34   : > { %7304 = vst [vmem:[#allocation16_spill] sm:$0xff] %v5038_v15  ;;  %324 = vst.msk [vmem:[#allocation2 + $0x91] sm:$0xff] %vm225_vm0, %v5032_v13  ;;  %v5116_v31 = vld [vmem:[#allocation2 + $0x39] sm:$0xff]  ;;  %v5194_v51 = vld [vmem:[#allocation2 + $0x30] sm:$0xff] }
  0x35   : > { %325 = vst.msk [vmem:[#allocation2 + $0x99] sm:$0xff] %vm225_vm0, %v5035_v14  ;;  %326 = vst.msk [vmem:[#allocation2 + $0xa9] sm:$0xff] %vm225_vm0, %v5038_v15  ;;  %v5112_v30 = vld [vmem:[#allocation2 + $0x49] sm:$0xff]  ;;  %v5148_v39 = vld [vmem:[#allocation2 + $0x51] sm:$0xff] }
  0x36   : > { %7305 = vst [vmem:[#allocation17_spill] sm:$0xff] %v5047_v16  ;;  %7306 = vst [vmem:[#allocation18_spill] sm:$0xff] %v5050_v17  ;;  %480 = vrot.lane.b32.xlu1 %v5098_v27, %s4860_s25  ;;  %v5120_v32 = vld [vmem:[#allocation2 + $0x61] sm:$0xff]  ;;  %v5196_v52 = vld [vmem:[#allocation2 + $0x38] sm:$0xff] }
  0x37   : > { %7307 = vst [vmem:[#allocation19_spill] sm:$0xff] %v5053_v18  ;;  %327 = vst.msk [vmem:[#allocation2 + $0xb1] sm:$0xff] %vm225_vm0, %v5047_v16  ;;  %486 = vrot.lane.b32.xlu0 %v5112_v30, %s4860_s25  ;;  %v5206_v54 = vld [vmem:[#allocation2 + $0x48] sm:$0xff]  ;;  %v5208_v55 = vld [vmem:[#allocation2 + $0x50] sm:$0xff] }
  0x38   : > { %328 = vst.msk [vmem:[#allocation2 + $0xc1] sm:$0xff] %vm225_vm0, %v5050_v17  ;;  %329 = vst.msk [vmem:[#allocation2 + $0xc9] sm:$0xff] %vm225_vm0, %v5053_v18  ;;  %v5162_v41 = vld [vmem:[#allocation2 + $0x69] sm:$0xff]  ;;  %v5216_v57 = vld [vmem:[#allocation2 + $0x60] sm:$0xff] }
  0x39   : > { %7308 = vst [vmem:[#allocation20_spill] sm:$0xff] %v5062_v19  ;;  %7309 = vst [vmem:[#allocation21_spill] sm:$0xff] %v5065_v20  ;;  %v5158_v40 = vld [vmem:[#allocation2 + $0x79] sm:$0xff]  ;;  %v5170_v43 = vld [vmem:[#allocation2 + $0x81] sm:$0xff] }
  0x3a   : > { %7310 = vst [vmem:[#allocation22_spill] sm:$0xff] %v5068_v21  ;;  %330 = vst.msk [vmem:[#allocation2 + $0xd9] sm:$0xff] %vm225_vm0, %v5062_v19  ;;  %484 = vrot.lane.b32.xlu1 %v5116_v31, %s4860_s25  ;;  %v5218_v58 = vld [vmem:[#allocation2 + $0x68] sm:$0xff]  ;;  %v5220_v59 = vld [vmem:[#allocation2 + $0x78] sm:$0xff] }
  0x3b   : > { %331 = vst.msk [vmem:[#allocation2 + $0xe1] sm:$0xff] %vm225_vm0, %v5065_v20  ;;  %332 = vst.msk [vmem:[#allocation2 + $0xf1] sm:$0xff] %vm225_vm0, %v5068_v21  ;;  %490 = vrot.lane.b32.xlu0 %v5120_v32, %s4860_s25  ;;  %v5166_v42 = vld [vmem:[#allocation2 + $0x91] sm:$0xff]  ;;  %v5230_v60 = vld [vmem:[#allocation2 + $0x80] sm:$0xff] }
  0x3c   : > { %7311 = vst [vmem:[#allocation23_spill] sm:$0xff] %v5078_v22  ;;  %7312 = vst [vmem:[#allocation24_spill] sm:$0xff] %v5081_v23  ;;  %v5174_v44 = vld [vmem:[#allocation2 + $0xa9] sm:$0xff]  ;;  %v5180_v47 = vld [vmem:[#allocation2 + $0x99] sm:$0xff] }
  0x3d   : > { %7313 = vst [vmem:[#allocation25_spill] sm:$0xff] %v5084_v24  ;;  %333 = vst.msk [vmem:[#allocation2 + $0xf9] sm:$0xff] %vm225_vm0, %v5078_v22  ;;  %v5232_v61 = vld [vmem:[#allocation2 + $0x90] sm:$0xff]  ;;  %v5234_v62 = vld [vmem:[#allocation2 + $0x98] sm:$0xff] }
  0x3e   : > { %334 = vst.msk [vmem:[#allocation2 + $0x109] sm:$0xff] %vm225_vm0, %v5081_v23  ;;  %335 = vst.msk [vmem:[#allocation2 + $0x111] sm:$0xff] %vm225_vm0, %v5084_v24  ;;  %488 = vrot.lane.b32.xlu1 %v5148_v39, %s4860_s25  ;;  %v5200_v53 = vld [vmem:[#allocation2 + $0xb1] sm:$0xff]  ;;  %v5244_v0 = vld [vmem:[#allocation2 + $0xa8] sm:$0xff] }
  0x3f   : > { %7314 = vst [vmem:[#allocation26_spill] sm:$0xff] %v5101_v28  ;;  %7315 = vst [vmem:[#allocation27_spill] sm:$0xff] %v5104_v29  ;;  %494 = vrot.lane.b32.xlu0 %v5158_v40, %s4860_s25  ;;  %v5190_v50 = vld [vmem:[#allocation2 + $0xc1] sm:$0xff]  ;;  %v5236_v63 = vld [vmem:[#allocation2 + $0xc9] sm:$0xff] }
  0x40   : > { %336 = vst.msk [vmem:[#allocation2 + $0x121] sm:$0xff] %vm225_vm0, %v5101_v28  ;;  %337 = vst.msk [vmem:[#allocation2 + $0x129] sm:$0xff] %vm225_vm0, %v5104_v29  ;;  %v5246_v7 = vld [vmem:[#allocation2 + $0xb0] sm:$0xff]  ;;  %v5248_v8 = vld [vmem:[#allocation2 + $0xc0] sm:$0xff] }
  0x41   : > { %7316 = vst [vmem:[#allocation28_spill] sm:$0xff] %v5123_v33  ;;  %7317 = vst [vmem:[#allocation29_spill] sm:$0xff] %v5126_v34  ;;  %v5210_v56 = vld [vmem:[#allocation2 + $0xd9] sm:$0xff] }
  0x42   : > { %7318 = vst [vmem:[#allocation30_spill] sm:$0xff] %v5129_v35  ;;  %338 = vst.msk [vmem:[#allocation2 + $0x139] sm:$0xff] %vm225_vm0, %v5123_v33  ;;  %492 = vrot.lane.b32.xlu1 %v5162_v41, %s4860_s25  ;;  %v5296_v23 = vld [vmem:[#allocation2 + $0xe1] sm:$0xff]  ;;  %v5389_v2 = vld [vmem:[#allocation2 + $0x32] sm:$0xff] }
  0x43   : > { %339 = vst.msk [vmem:[#allocation2 + $0x141] sm:$0xff] %vm225_vm0, %v5126_v34  ;;  %340 = vst.msk [vmem:[#allocation2 + $0x151] sm:$0xff] %vm225_vm0, %v5129_v35  ;;  %498 = vrot.lane.b32.xlu0 %v5166_v42, %s4860_s25  ;;  %v5286_v34 = vld [vmem:[#allocation2 + $0xf1] sm:$0xff] }
  0x44   : > { %7319 = vst [vmem:[#allocation31_spill] sm:$0xff] %v5140_v36  ;;  %7320 = vst [vmem:[#allocation32_spill] sm:$0xff] %v5143_v37  ;;  %v5272_v35 = vld [vmem:[#allocation2 + $0xf8] sm:$0xff] }
  0x45   : > { %7321 = vst [vmem:[#allocation33_spill] sm:$0xff] %v5146_v38  ;;  %341 = vst.msk [vmem:[#allocation2 + $0x159] sm:$0xff] %vm225_vm0, %v5140_v36  ;;  %v5274_v36 = vld [vmem:[#allocation2 + $0x108] sm:$0xff]  ;;  %v5284_v33 = vld [vmem:[#allocation2 + $0x110] sm:$0xff] }
  0x46   : > { %342 = vst.msk [vmem:[#allocation2 + $0x169] sm:$0xff] %vm225_vm0, %v5143_v37  ;;  %343 = vst.msk [vmem:[#allocation2 + $0x171] sm:$0xff] %vm225_vm0, %v5146_v38  ;;  %496 = vrot.lane.b32.xlu1 %v5170_v43, %s4860_s25  ;;  %v5262_v37 = vld [vmem:[#allocation2 + $0xe0] sm:$0xff]  ;;  %v5270_v38 = vld [vmem:[#allocation2 + $0xf0] sm:$0xff] }
  0x47   : > { %378 = vst.msk [vmem:[#allocation3] sm:$0xff] %vm225_vm0, %v346_v45  ;;  %380 = vst.msk [vmem:[#allocation3 + $0x10] sm:$0xff] %vm225_vm0, %v5178_v46  ;;  %502 = vrot.lane.b32.xlu0 %v5174_v44, %s4860_s25  ;;  %v5258_v45 = vld [vmem:[#allocation2 + $0xc8] sm:$0xff]  ;;  %v5292_v28 = vld [vmem:[#allocation2 + $0x120] sm:$0xff] }
  0x48   : > { %379 = vst.msk [vmem:[#allocation3 + $0x8] sm:$0xff] %vm225_vm0, %v347_v48  ;;  %381 = vst.msk [vmem:[#allocation3 + $0x18] sm:$0xff] %vm225_vm0, %v5188_v49  ;;  %v5260_v48 = vld [vmem:[#allocation2 + $0xd8] sm:$0xff]  ;;  %v5294_v29 = vld [vmem:[#allocation2 + $0x128] sm:$0xff] }
  0x49   : > { %382 = vst.msk [vmem:[#allocation3 + $0x20] sm:$0xff] %vm225_vm0, %v5194_v51  ;;  %383 = vst.msk [vmem:[#allocation3 + $0x28] sm:$0xff] %vm225_vm0, %v5196_v52  ;;  %v5304_v24 = vld [vmem:[#allocation2 + $0x109] sm:$0xff]  ;;  %v5308_v21 = vld [vmem:[#allocation2 + $0x138] sm:$0xff] }
  0x4a   : > { %500 = vrot.lane.b32.xlu1 %v5180_v47, %s4860_s25  ;;  %384 = vst.msk [vmem:[#allocation3 + $0x30] sm:$0xff] %vm225_vm0, %v5206_v54  ;;  %385 = vst.msk [vmem:[#allocation3 + $0x38] sm:$0xff] %vm225_vm0, %v5208_v55  ;;  %v5310_v22 = vld [vmem:[#allocation2 + $0x140] sm:$0xff]  ;;  %v5324_v17 = vld [vmem:[#allocation2 + $0x150] sm:$0xff] }
  0x4b   : > { %506 = vrot.lane.b32.xlu0 %v5190_v50, %s4860_s25  ;;  %386 = vst.msk [vmem:[#allocation3 + $0x40] sm:$0xff] %vm225_vm0, %v5216_v57  ;;  %387 = vst.msk [vmem:[#allocation3 + $0x48] sm:$0xff] %vm225_vm0, %v5218_v58  ;;  %v5312_v19 = vld [vmem:[#allocation2 + $0xf9] sm:$0xff]  ;;  %v5320_v20 = vld [vmem:[#allocation2 + $0x121] sm:$0xff] }
  0x4c   : > { %388 = vst.msk [vmem:[#allocation3 + $0x50] sm:$0xff] %vm225_vm0, %v5220_v59  ;;  %389 = vst.msk [vmem:[#allocation3 + $0x58] sm:$0xff] %vm225_vm0, %v5230_v60  ;;  %v5326_v18 = vld [vmem:[#allocation2 + $0x158] sm:$0xff]  ;;  %v5344_v11 = vld [vmem:[#allocation2 + $0x129] sm:$0xff] }
  0x4d   : > { %390 = vst.msk [vmem:[#allocation3 + $0x60] sm:$0xff] %vm225_vm0, %v5232_v61  ;;  %391 = vst.msk [vmem:[#allocation3 + $0x68] sm:$0xff] %vm225_vm0, %v5234_v62  ;;  %v5328_v15 = vld [vmem:[#allocation2 + $0x111] sm:$0xff]  ;;  %v5336_v16 = vld [vmem:[#allocation2 + $0x139] sm:$0xff] }
  0x4e   : > { %504 = vrot.lane.b32.xlu1 %v5200_v53, %s4860_s25  ;;  %392 = vst.msk [vmem:[#allocation3 + $0x70] sm:$0xff] %vm225_vm0, %v5244_v0  ;;  %393 = vst.msk [vmem:[#allocation3 + $0x78] sm:$0xff] %vm225_vm0, %v5246_v7  ;;  %v5340_v13 = vld [vmem:[#allocation2 + $0x168] sm:$0xff]  ;;  %v5342_v14 = vld [vmem:[#allocation2 + $0x170] sm:$0xff] }
  0x4f   : > { %394 = vst.msk [vmem:[#allocation3 + $0x80] sm:$0xff] %vm225_vm0, %v5248_v8  ;;  %395 = vst.msk [vmem:[#allocation3 + $0x88] sm:$0xff] %vm225_vm0, %v5258_v45  ;;  %510 = vrot.lane.b32.xlu0 %v5210_v56, %s4860_s25  ;;  %v5352_v12 = vld [vmem:[#allocation2 + $0x151] sm:$0xff]  ;;  %v5356_v9 = vld [vmem:[#allocation2 + $0x141] sm:$0xff] }
  0x50   : > { %396 = vst.msk [vmem:[#allocation3 + $0x90] sm:$0xff] %vm225_vm0, %v5260_v48  ;;  %397 = vst.msk [vmem:[#allocation3 + $0x98] sm:$0xff] %vm225_vm0, %v5262_v37  ;;  %v5363_v5 = vld [vmem:[#allocation2 + $0x169] sm:$0xff]  ;;  %v5374_v3 = vld [vmem:[#allocation2 + $0x159] sm:$0xff] }
  0x51   : > { %398 = vst.msk [vmem:[#allocation3 + $0xa0] sm:$0xff] %vm225_vm0, %v5270_v38  ;;  %399 = vst.msk [vmem:[#allocation3 + $0xa8] sm:$0xff] %vm225_vm0, %v5272_v35  ;;  %v5380_v1 = vld [vmem:[#allocation2 + $0x171] sm:$0xff] }
  0x52   : > { %400 = vst.msk [vmem:[#allocation3 + $0xb0] sm:$0xff] %vm225_vm0, %v5274_v36  ;;  %401 = vst.msk [vmem:[#allocation3 + $0xb8] sm:$0xff] %vm225_vm0, %v5284_v33  ;;  %508 = vrot.lane.b32.xlu1 %v5236_v63, %s4860_s25 }
  0x53   : > { %402 = vst.msk [vmem:[#allocation3 + $0xc0] sm:$0xff] %vm225_vm0, %v5292_v28  ;;  %403 = vst.msk [vmem:[#allocation3 + $0xc8] sm:$0xff] %vm225_vm0, %v5294_v29  ;;  %514 = vrot.lane.b32.xlu0 %v5286_v34, %s4860_s25 }
  0x54   : > { %404 = vst.msk [vmem:[#allocation3 + $0xd0] sm:$0xff] %vm225_vm0, %v5308_v21  ;;  %405 = vst.msk [vmem:[#allocation3 + $0xd8] sm:$0xff] %vm225_vm0, %v5310_v22 }
  0x55   : > { %406 = vst.msk [vmem:[#allocation3 + $0xe0] sm:$0xff] %vm225_vm0, %v5324_v17  ;;  %407 = vst.msk [vmem:[#allocation3 + $0xe8] sm:$0xff] %vm225_vm0, %v5326_v18 }
  0x56   : > { %512 = vrot.lane.b32.xlu1 %v5296_v23, %s4860_s25  ;;  %408 = vst.msk [vmem:[#allocation3 + $0xf0] sm:$0xff] %vm225_vm0, %v5340_v13  ;;  %409 = vst.msk [vmem:[#allocation3 + $0xf8] sm:$0xff] %vm225_vm0, %v5342_v14 }
  0x57   : > { %518 = vrot.lane.b32.xlu0 %v5304_v24, %s4860_s25  ;;  %7322 = vst [vmem:[#allocation34_spill] sm:$0xff] %v5356_v9  ;;  %7323 = vst [vmem:[#allocation35_spill] sm:$0xff] %v5361_v10 }
  0x58   : > { %7324 = vst [vmem:[#allocation36_spill] sm:$0xff] %v5363_v5  ;;  %344 = vst.msk [vmem:[#allocation2 + $0x181] sm:$0xff] %vm225_vm0, %v5361_v10  ;;  %v5383_v10 = vld [vmem:[#allocation2 + $0x1a] sm:$0xff] }
  0x59   : > { %7325 = vst [vmem:[#allocation37_spill] sm:$0xff] %v5368_v6  ;;  %345 = vst.msk [vmem:[#allocation2 + $0x189] sm:$0xff] %vm225_vm0, %v5368_v6  ;;  %v604_v6 = vld [vmem:[#allocation2 + $0xa] sm:$0xff] }
  0x5a   : > { %516 = vrot.lane.b32.xlu1 %v5312_v19, %s4860_s25  ;;  %7326 = vst [vmem:[#allocation38_spill] sm:$0xff] %v5374_v3  ;;  %7327 = vst [vmem:[#allocation39_spill] sm:$0xff] %v5380_v1 }
  0x5b   : > { %522 = vrot.lane.b32.xlu0 %v5320_v20, %s4860_s25  ;;  %7328 = vst [vmem:[#allocation40_spill] sm:$0xff] %v5383_v10  ;;  %7329 = vst [vmem:[#allocation41_spill] sm:$0xff] %v5389_v2 }
  0x5e   : > { %520 = vrot.lane.b32.xlu1 %v5328_v15, %s4860_s25 }
  0x5f   : > { %526 = vrot.lane.b32.xlu0 %v5336_v16, %s4860_s25 }
  0x62   : > { %524 = vrot.lane.b32.xlu1 %v5344_v11, %s4860_s25 }
  0x63   : > { %530 = vrot.lane.b32.xlu0 %v5352_v12, %s4860_s25 }
  0x66   : > { %528 = vrot.lane.b32.xlu1 %v5356_v9, %s4860_s25 }
  0x67   : > { %534 = vrot.lane.b32.xlu0 %v5363_v5, %s4860_s25  ;;  %v5392_v5 = vld [vmem:[#allocation2 + $0x22] sm:$0xff] }
  0x68   : > { %7330 = vst [vmem:[#allocation42_spill] sm:$0xff] %v5392_v5 }
  0x6a   : > { %532 = vrot.lane.b32.xlu1 %v5374_v3, %s4860_s25  ;;  %v5396_v3 = vld [vmem:[#allocation2 + $0x4a] sm:$0xff] }
  0x6b   : > { %667 = vrot.lane.b32.xlu0 %v603_v4, %s4861_s26  ;;  %7331 = vst [vmem:[#allocation43_spill] sm:$0xff] %v5396_v3  ;;  %v5400_v4 = vld [vmem:[#allocation2 + $0x3a] sm:$0xff] }
  0x6c   : > { %7332 = vst [vmem:[#allocation44_spill] sm:$0xff] %v5400_v4 }
  0x6e   : > { %536 = vrot.lane.b32.xlu1 %v5380_v1, %s4860_s25  ;;  %v5480_v1 = vld [vmem:[#allocation2 + $0x12a] sm:$0xff] }
  0x6f   : > { %671 = vrot.lane.b32.xlu0 %v5383_v10, %s4861_s26  ;;  %v5404_v10 = vld [vmem:[#allocation2 + $0x62] sm:$0xff]  ;;  %7352 = vst [vmem:[#allocation64_spill] sm:$0xff] %v5480_v1 }
  0x70   : > { %7333 = vst [vmem:[#allocation45_spill] sm:$0xff] %v5404_v10 }
  0x72   : > { %669 = vrot.lane.b32.xlu1 %v604_v6, %s4861_s26  ;;  %v5408_v6 = vld [vmem:[#allocation2 + $0x52] sm:$0xff] }
  0x73   : > { %675 = vrot.lane.b32.xlu0 %v5389_v2, %s4861_s26  ;;  %7334 = vst [vmem:[#allocation46_spill] sm:$0xff] %v5408_v6  ;;  %v5412_v2 = vld [vmem:[#allocation2 + $0x7a] sm:$0xff] }
  0x74   : > { %7335 = vst [vmem:[#allocation47_spill] sm:$0xff] %v5412_v2 }
  0x76   : > { %673 = vrot.lane.b32.xlu1 %v5392_v5, %s4861_s26  ;;  %v5416_v5 = vld [vmem:[#allocation2 + $0x6a] sm:$0xff] }
  0x77   : > { %679 = vrot.lane.b32.xlu0 %v5396_v3, %s4861_s26  ;;  %7336 = vst [vmem:[#allocation48_spill] sm:$0xff] %v5416_v5  ;;  %v5420_v3 = vld [vmem:[#allocation2 + $0x92] sm:$0xff] }
  0x78   : > { %7337 = vst [vmem:[#allocation49_spill] sm:$0xff] %v5420_v3 }
  0x7a   : > { %677 = vrot.lane.b32.xlu1 %v5400_v4, %s4861_s26  ;;  %v5424_v4 = vld [vmem:[#allocation2 + $0x82] sm:$0xff] }
  0x7b   : > { %683 = vrot.lane.b32.xlu0 %v5404_v10, %s4861_s26  ;;  %7338 = vst [vmem:[#allocation50_spill] sm:$0xff] %v5424_v4  ;;  %v5428_v10 = vld [vmem:[#allocation2 + $0xaa] sm:$0xff] }
  0x7c   : > { %7339 = vst [vmem:[#allocation51_spill] sm:$0xff] %v5428_v10 }
  0x7e   : > { %681 = vrot.lane.b32.xlu1 %v5408_v6, %s4861_s26  ;;  %v5432_v6 = vld [vmem:[#allocation2 + $0x9a] sm:$0xff] }
  0x7f   : > { %687 = vrot.lane.b32.xlu0 %v5412_v2, %s4861_s26  ;;  %7340 = vst [vmem:[#allocation52_spill] sm:$0xff] %v5432_v6  ;;  %v5436_v2 = vld [vmem:[#allocation2 + $0xc2] sm:$0xff] }
  0x80   : > { %7341 = vst [vmem:[#allocation53_spill] sm:$0xff] %v5436_v2 }
  0x82   : > { %685 = vrot.lane.b32.xlu1 %v5416_v5, %s4861_s26  ;;  %v5440_v5 = vld [vmem:[#allocation2 + $0xb2] sm:$0xff] }
  0x83   : > { %691 = vrot.lane.b32.xlu0 %v5420_v3, %s4861_s26  ;;  %7342 = vst [vmem:[#allocation54_spill] sm:$0xff] %v5440_v5  ;;  %v5444_v3 = vld [vmem:[#allocation2 + $0xda] sm:$0xff] }
  0x84   : > { %7343 = vst [vmem:[#allocation55_spill] sm:$0xff] %v5444_v3 }
  0x86   : > { %689 = vrot.lane.b32.xlu1 %v5424_v4, %s4861_s26  ;;  %v5448_v4 = vld [vmem:[#allocation2 + $0xca] sm:$0xff] }
  0x87   : > { %695 = vrot.lane.b32.xlu0 %v5428_v10, %s4861_s26  ;;  %7344 = vst [vmem:[#allocation56_spill] sm:$0xff] %v5448_v4  ;;  %v5452_v10 = vld [vmem:[#allocation2 + $0xf2] sm:$0xff] }
  0x88   : > { %7345 = vst [vmem:[#allocation57_spill] sm:$0xff] %v5452_v10 }
  0x8a   : > { %693 = vrot.lane.b32.xlu1 %v5432_v6, %s4861_s26  ;;  %v5456_v6 = vld [vmem:[#allocation2 + $0xe2] sm:$0xff] }
  0x8b   : > { %699 = vrot.lane.b32.xlu0 %v5436_v2, %s4861_s26  ;;  %7346 = vst [vmem:[#allocation58_spill] sm:$0xff] %v5456_v6  ;;  %v5460_v2 = vld [vmem:[#allocation2 + $0x10a] sm:$0xff] }
  0x8c   : > { %7347 = vst [vmem:[#allocation59_spill] sm:$0xff] %v5460_v2 }
  0x8e   : > { %697 = vrot.lane.b32.xlu1 %v5440_v5, %s4861_s26  ;;  %v5464_v5 = vld [vmem:[#allocation2 + $0xfa] sm:$0xff] }
  0x8f   : > { %703 = vrot.lane.b32.xlu0 %v5444_v3, %s4861_s26  ;;  %7348 = vst [vmem:[#allocation60_spill] sm:$0xff] %v5464_v5  ;;  %v5468_v3 = vld [vmem:[#allocation2 + $0x122] sm:$0xff] }
  0x90   : > { %7349 = vst [vmem:[#allocation61_spill] sm:$0xff] %v5468_v3 }
  0x92   : > { %701 = vrot.lane.b32.xlu1 %v5448_v4, %s4861_s26  ;;  %v5472_v4 = vld [vmem:[#allocation2 + $0x112] sm:$0xff] }
  0x93   : > { %707 = vrot.lane.b32.xlu0 %v5452_v10, %s4861_s26  ;;  %7350 = vst [vmem:[#allocation62_spill] sm:$0xff] %v5472_v4  ;;  %v5476_v10 = vld [vmem:[#allocation2 + $0x13a] sm:$0xff] }
  0x94   : > { %7351 = vst [vmem:[#allocation63_spill] sm:$0xff] %v5476_v10 }
  0x96   : > { %705 = vrot.lane.b32.xlu1 %v5456_v6, %s4861_s26  ;;  %v475_v6 = vpop.permute.xlu0 %474 }
  0x97   : > { %711 = vrot.lane.b32.xlu0 %v5460_v2, %s4861_s26  ;;  %571 = vst.msk [vmem:[#allocation3] sm:$0xff] %vm570_vm2, %v475_v6  ;;  %v5489_v2 = vld [vmem:[#allocation2 + $0x142] sm:$0xff]  ;;  %v5495_v6 = vld [vmem:[#allocation2 + $0x16a] sm:$0xff] }
  0x98   : > { %7353 = vst [vmem:[#allocation65_spill] sm:$0xff] %v5489_v2 }
  0x9a   : > { %709 = vrot.lane.b32.xlu1 %v5464_v5, %s4861_s26  ;;  %v5485_v5 = vld [vmem:[#allocation2 + $0x152] sm:$0xff] }
  0x9b   : > { %715 = vrot.lane.b32.xlu0 %v5468_v3, %s4861_s26  ;;  %v477_v3 = vpop.permute.xlu0 %476 }
  0x9c   : > { %572 = vst.msk [vmem:[#allocation3 + $0x8] sm:$0xff] %vm570_vm2, %v477_v3 }
  0x9e   : > { %713 = vrot.lane.b32.xlu1 %v5472_v4, %s4861_s26  ;;  %v5499_v4 = vld [vmem:[#allocation2 + $0x15a] sm:$0xff] }
  0x9f   : > { %719 = vrot.lane.b32.xlu0 %v5476_v10, %s4861_s26 }
  0xa2   : > { %717 = vrot.lane.b32.xlu1 %v5480_v1, %s4861_s26 }
  0xa3   : > { %723 = vrot.lane.b32.xlu0 %v5485_v5, %s4861_s26 }
  0xa4   : > { %v479_v9 = vpop.permute.xlu1 %478 }
  0xa5   : > { %573 = vst.msk [vmem:[#allocation3 + $0x10] sm:$0xff] %vm570_vm2, %v479_v9  ;;  %v483_v10 = vpop.permute.xlu0 %482  ;;  %v5507_v9 = vld [vmem:[#allocation2 + $0x172] sm:$0xff] }
  0xa6   : > { %721 = vrot.lane.b32.xlu1 %v5489_v2, %s4861_s26  ;;  %575 = vst.msk [vmem:[#allocation3 + $0x20] sm:$0xff] %vm570_vm2, %v483_v10 }
  0xa7   : > { %727 = vrot.lane.b32.xlu0 %v5495_v6, %s4861_s26 }
  0xa8   : > { %v481_v1 = vpop.permute.xlu1 %480 }
  0xa9   : > { %574 = vst.msk [vmem:[#allocation3 + $0x18] sm:$0xff] %vm570_vm2, %v481_v1  ;;  %v487_v3 = vpop.permute.xlu0 %486 }
  0xaa   : > { %725 = vrot.lane.b32.xlu1 %v5499_v4, %s4861_s26  ;;  %577 = vst.msk [vmem:[#allocation3 + $0x30] sm:$0xff] %vm570_vm2, %v487_v3 }
  0xab   : > { %860 = vrot.lane.b32.xlu0 %v5178_v46, %s4862_s27 }
  0xac   : > { %v485_v2 = vpop.permute.xlu1 %484 }
  0xad   : > { %576 = vst.msk [vmem:[#allocation3 + $0x28] sm:$0xff] %vm570_vm2, %v485_v2  ;;  %v491_v10 = vpop.permute.xlu0 %490 }
  0xae   : > { %729 = vrot.lane.b32.xlu1 %v5507_v9, %s4861_s26  ;;  %579 = vst.msk [vmem:[#allocation3 + $0x40] sm:$0xff] %vm570_vm2, %v491_v10 }
  0xaf   : > { %864 = vrot.lane.b32.xlu0 %v5194_v51, %s4862_s27 }
  0xb0   : > { %v489_v1 = vpop.permute.xlu1 %488 }
  0xb1   : > { %578 = vst.msk [vmem:[#allocation3 + $0x38] sm:$0xff] %vm570_vm2, %v489_v1  ;;  %v495_v3 = vpop.permute.xlu0 %494 }
  0xb2   : > { %862 = vrot.lane.b32.xlu1 %v5188_v49, %s4862_s27  ;;  %581 = vst.msk [vmem:[#allocation3 + $0x50] sm:$0xff] %vm570_vm2, %v495_v3 }
  0xb3   : > { %868 = vrot.lane.b32.xlu0 %v5206_v54, %s4862_s27 }
  0xb4   : > { %v493_v46 = vpop.permute.xlu1 %492 }
  0xb5   : > { %580 = vst.msk [vmem:[#allocation3 + $0x48] sm:$0xff] %vm570_vm2, %v493_v46  ;;  %v499_v2 = vpop.permute.xlu0 %498 }
  0xb6   : > { %866 = vrot.lane.b32.xlu1 %v5196_v52, %s4862_s27  ;;  %583 = vst.msk [vmem:[#allocation3 + $0x60] sm:$0xff] %vm570_vm2, %v499_v2 }
  0xb7   : > { %872 = vrot.lane.b32.xlu0 %v5216_v57, %s4862_s27 }
  0xb8   : > { %v497_v10 = vpop.permute.xlu1 %496 }
  0xb9   : > { %582 = vst.msk [vmem:[#allocation3 + $0x58] sm:$0xff] %vm570_vm2, %v497_v10  ;;  %v503_v49 = vpop.permute.xlu0 %502 }
  0xba   : > { %870 = vrot.lane.b32.xlu1 %v5208_v55, %s4862_s27  ;;  %585 = vst.msk [vmem:[#allocation3 + $0x70] sm:$0xff] %vm570_vm2, %v503_v49 }
  0xbb   : > { %876 = vrot.lane.b32.xlu0 %v5220_v59, %s4862_s27 }
  0xbc   : > { %v501_v1 = vpop.permute.xlu1 %500 }
  0xbd   : > { %584 = vst.msk [vmem:[#allocation3 + $0x68] sm:$0xff] %vm570_vm2, %v501_v1  ;;  %v507_v3 = vpop.permute.xlu0 %506 }
  0xbe   : > { %874 = vrot.lane.b32.xlu1 %v5218_v58, %s4862_s27  ;;  %587 = vst.msk [vmem:[#allocation3 + $0x80] sm:$0xff] %vm570_vm2, %v507_v3 }
  0xbf   : > { %880 = vrot.lane.b32.xlu0 %v5232_v61, %s4862_s27 }
  0xc0   : > { %v505_v46 = vpop.permute.xlu1 %504 }
  0xc1   : > { %586 = vst.msk [vmem:[#allocation3 + $0x78] sm:$0xff] %vm570_vm2, %v505_v46  ;;  %v511_v2 = vpop.permute.xlu0 %510 }
  0xc2   : > { %878 = vrot.lane.b32.xlu1 %v5230_v60, %s4862_s27  ;;  %589 = vst.msk [vmem:[#allocation3 + $0x90] sm:$0xff] %vm570_vm2, %v511_v2 }
  0xc3   : > { %884 = vrot.lane.b32.xlu0 %v5244_v0, %s4862_s27 }
  0xc4   : > { %v509_v10 = vpop.permute.xlu1 %508 }
  0xc5   : > { %588 = vst.msk [vmem:[#allocation3 + $0x88] sm:$0xff] %vm570_vm2, %v509_v10  ;;  %v515_v49 = vpop.permute.xlu0 %514 }
  0xc6   : > { %882 = vrot.lane.b32.xlu1 %v5234_v62, %s4862_s27  ;;  %591 = vst.msk [vmem:[#allocation3 + $0xa0] sm:$0xff] %vm570_vm2, %v515_v49 }
  0xc7   : > { %888 = vrot.lane.b32.xlu0 %v5248_v8, %s4862_s27 }
  0xc8   : > { %v513_v1 = vpop.permute.xlu1 %512 }
  0xc9   : > { %590 = vst.msk [vmem:[#allocation3 + $0x98] sm:$0xff] %vm570_vm2, %v513_v1  ;;  %v519_v3 = vpop.permute.xlu0 %518 }
  0xca   : > { %886 = vrot.lane.b32.xlu1 %v5246_v7, %s4862_s27  ;;  %593 = vst.msk [vmem:[#allocation3 + $0xb0] sm:$0xff] %vm570_vm2, %v519_v3 }
  0xcb   : > { %892 = vrot.lane.b32.xlu0 %v5260_v48, %s4862_s27 }
  0xcc   : > { %v517_v46 = vpop.permute.xlu1 %516 }
  0xcd   : > { %592 = vst.msk [vmem:[#allocation3 + $0xa8] sm:$0xff] %vm570_vm2, %v517_v46  ;;  %v523_v2 = vpop.permute.xlu0 %522 }
  0xce   : > { %890 = vrot.lane.b32.xlu1 %v5258_v45, %s4862_s27  ;;  %595 = vst.msk [vmem:[#allocation3 + $0xc0] sm:$0xff] %vm570_vm2, %v523_v2 }
  0xcf   : > { %896 = vrot.lane.b32.xlu0 %v5270_v38, %s4862_s27 }
  0xd0   : > { %v521_v10 = vpop.permute.xlu1 %520 }
  0xd1   : > { %594 = vst.msk [vmem:[#allocation3 + $0xb8] sm:$0xff] %vm570_vm2, %v521_v10  ;;  %v527_v49 = vpop.permute.xlu0 %526 }
  0xd2   : > { %894 = vrot.lane.b32.xlu1 %v5262_v37, %s4862_s27  ;;  %597 = vst.msk [vmem:[#allocation3 + $0xd0] sm:$0xff] %vm570_vm2, %v527_v49 }
  0xd3   : > { %900 = vrot.lane.b32.xlu0 %v5274_v36, %s4862_s27 }
  0xd4   : > { %v525_v1 = vpop.permute.xlu1 %524 }
  0xd5   : > { %596 = vst.msk [vmem:[#allocation3 + $0xc8] sm:$0xff] %vm570_vm2, %v525_v1  ;;  %v531_v3 = vpop.permute.xlu0 %530 }
  0xd6   : > { %898 = vrot.lane.b32.xlu1 %v5272_v35, %s4862_s27  ;;  %599 = vst.msk [vmem:[#allocation3 + $0xe0] sm:$0xff] %vm570_vm2, %v531_v3 }
  0xd7   : > { %904 = vrot.lane.b32.xlu0 %v5292_v28, %s4862_s27 }
  0xd8   : > { %v529_v46 = vpop.permute.xlu1 %528 }
  0xd9   : > { %598 = vst.msk [vmem:[#allocation3 + $0xd8] sm:$0xff] %vm570_vm2, %v529_v46  ;;  %v535_v2 = vpop.permute.xlu0 %534 }
  0xda   : > { %902 = vrot.lane.b32.xlu1 %v5284_v33, %s4862_s27  ;;  %601 = vst.msk [vmem:[#allocation3 + $0xf0] sm:$0xff] %vm570_vm2, %v535_v2  ;;  %v5597_v2 = vld [vmem:[#allocation2 + $0x180] sm:$0xff] }
  0xdb   : > { %908 = vrot.lane.b32.xlu0 %v5308_v21, %s4862_s27 }
  0xdc   : > { %v533_v10 = vpop.permute.xlu1 %532 }
  0xdd   : > { %600 = vst.msk [vmem:[#allocation3 + $0xe8] sm:$0xff] %vm570_vm2, %v533_v10  ;;  %v668_v49 = vpop.permute.xlu0 %667 }
  0xde   : > { %906 = vrot.lane.b32.xlu1 %v5294_v29, %s4862_s27  ;;  %764 = vst.msk [vmem:[#allocation3] sm:$0xff] %vm763_vm3, %v668_v49 }
  0xdf   : > { %912 = vrot.lane.b32.xlu0 %v5324_v17, %s4862_s27 }
  0xe0   : > { %v537_v1 = vpop.permute.xlu1 %536 }
  0xe1   : > { %602 = vst.msk [vmem:[#allocation3 + $0xf8] sm:$0xff] %vm570_vm2, %v537_v1  ;;  %v672_v3 = vpop.permute.xlu0 %671 }
  0xe2   : > { %910 = vrot.lane.b32.xlu1 %v5310_v22, %s4862_s27  ;;  %766 = vst.msk [vmem:[#allocation3 + $0x10] sm:$0xff] %vm763_vm3, %v672_v3  ;;  %v5607_v3 = vld [vmem:[#allocation2 + $0x188] sm:$0xff] }
  0xe3   : > { %916 = vrot.lane.b32.xlu0 %v5340_v13, %s4862_s27 }
  0xe4   : > { %v670_v46 = vpop.permute.xlu1 %669 }
  0xe5   : > { %765 = vst.msk [vmem:[#allocation3 + $0x8] sm:$0xff] %vm763_vm3, %v670_v46  ;;  %v676_v10 = vpop.permute.xlu0 %675 }
  0xe6   : > { %914 = vrot.lane.b32.xlu1 %v5326_v18, %s4862_s27  ;;  %768 = vst.msk [vmem:[#allocation3 + $0x20] sm:$0xff] %vm763_vm3, %v676_v10 }
  0xe7   : > { %920 = vrot.lane.b32.xlu0 %v5597_v2, %s4862_s27 }
  0xe8   : > { %v674_v49 = vpop.permute.xlu1 %673 }
  0xe9   : > { %767 = vst.msk [vmem:[#allocation3 + $0x18] sm:$0xff] %vm763_vm3, %v674_v49  ;;  %v680_v1 = vpop.permute.xlu0 %679 }
  0xea   : > { %918 = vrot.lane.b32.xlu1 %v5342_v14, %s4862_s27  ;;  %770 = vst.msk [vmem:[#allocation3 + $0x30] sm:$0xff] %vm763_vm3, %v680_v1 }
  0xeb   : > { %1053 = vrot.lane.b32.xlu0 %v5086_v25, %s4863_s28 }
  0xec   : > { %v678_v46 = vpop.permute.xlu1 %677 }
  0xed   : > { %769 = vst.msk [vmem:[#allocation3 + $0x28] sm:$0xff] %vm763_vm3, %v678_v46  ;;  %v684_v10 = vpop.permute.xlu0 %683 }
  0xee   : > { %922 = vrot.lane.b32.xlu1 %v5607_v3, %s4862_s27  ;;  %772 = vst.msk [vmem:[#allocation3 + $0x40] sm:$0xff] %vm763_vm3, %v684_v10 }
  0xef   : > { %1057 = vrot.lane.b32.xlu0 %v5088_v26, %s4863_s28 }
  0xf0   : > { %v682_v49 = vpop.permute.xlu1 %681 }
  0xf1   : > { %771 = vst.msk [vmem:[#allocation3 + $0x38] sm:$0xff] %vm763_vm3, %v682_v49  ;;  %v688_v1 = vpop.permute.xlu0 %687  ;;  %v7355_v49 = vld [vmem:[#allocation36_spill] sm:$0xff] }
  0xf2   : > { %1055 = vrot.lane.b32.xlu1 %v5098_v27, %s4863_s28  ;;  %774 = vst.msk [vmem:[#allocation3 + $0x50] sm:$0xff] %vm763_vm3, %v688_v1  ;;  %v7356_v1 = vld [vmem:[#allocation38_spill] sm:$0xff] }
  0xf3   : > { %1061 = vrot.lane.b32.xlu0 %v5112_v30, %s4863_s28 }
  0xf4   : > { %v686_v25 = vpop.permute.xlu1 %685 }
  0xf5   : > { %773 = vst.msk [vmem:[#allocation3 + $0x48] sm:$0xff] %vm763_vm3, %v686_v25  ;;  %v692_v46 = vpop.permute.xlu0 %691 }
  0xf6   : > { %1059 = vrot.lane.b32.xlu1 %v5116_v31, %s4863_s28  ;;  %776 = vst.msk [vmem:[#allocation3 + $0x60] sm:$0xff] %vm763_vm3, %v692_v46  ;;  %v7357_v46 = vld [vmem:[#allocation39_spill] sm:$0xff] }
  0xf7   : > { %1065 = vrot.lane.b32.xlu0 %v5120_v32, %s4863_s28 }
  0xf8   : > { %v690_v26 = vpop.permute.xlu1 %689 }
  0xf9   : > { %775 = vst.msk [vmem:[#allocation3 + $0x58] sm:$0xff] %vm763_vm3, %v690_v26  ;;  %v696_v27 = vpop.permute.xlu0 %695 }
  0xfa   : > { %1063 = vrot.lane.b32.xlu1 %v5148_v39, %s4863_s28  ;;  %778 = vst.msk [vmem:[#allocation3 + $0x70] sm:$0xff] %vm763_vm3, %v696_v27  ;;  %v5707_v27 = vld [vmem:[#allocation2 + $0x189] sm:$0xff] }
  0xfb   : > { %1069 = vrot.lane.b32.xlu0 %v5158_v40, %s4863_s28 }
  0xfc   : > { %v694_v30 = vpop.permute.xlu1 %693 }
  0xfd   : > { %777 = vst.msk [vmem:[#allocation3 + $0x68] sm:$0xff] %vm763_vm3, %v694_v30  ;;  %v700_v31 = vpop.permute.xlu0 %699 }
  0xfe   : > { %1067 = vrot.lane.b32.xlu1 %v5162_v41, %s4863_s28  ;;  %780 = vst.msk [vmem:[#allocation3 + $0x80] sm:$0xff] %vm763_vm3, %v700_v31  ;;  %v7358_v31 = vld [vmem:[#allocation40_spill] sm:$0xff] }
  0xff   : > { %1073 = vrot.lane.b32.xlu0 %v5166_v42, %s4863_s28 }
 0x100   : > { %v698_v32 = vpop.permute.xlu1 %697 }
 0x101   : > { %779 = vst.msk [vmem:[#allocation3 + $0x78] sm:$0xff] %vm763_vm3, %v698_v32  ;;  %v704_v39 = vpop.permute.xlu0 %703 }
 0x102   : > { %1071 = vrot.lane.b32.xlu1 %v5170_v43, %s4863_s28  ;;  %782 = vst.msk [vmem:[#allocation3 + $0x90] sm:$0xff] %vm763_vm3, %v704_v39 }
 0x103   : > { %1077 = vrot.lane.b32.xlu0 %v5174_v44, %s4863_s28 }
 0x104   : > { %v702_v40 = vpop.permute.xlu1 %701 }
 0x105   : > { %781 = vst.msk [vmem:[#allocation3 + $0x88] sm:$0xff] %vm763_vm3, %v702_v40  ;;  %v708_v41 = vpop.permute.xlu0 %707  ;;  %v7359_v40 = vld [vmem:[#allocation41_spill] sm:$0xff] }
 0x106   : > { %1075 = vrot.lane.b32.xlu1 %v5180_v47, %s4863_s28  ;;  %784 = vst.msk [vmem:[#allocation3 + $0xa0] sm:$0xff] %vm763_vm3, %v708_v41  ;;  %v7360_v41 = vld [vmem:[#allocation42_spill] sm:$0xff] }
 0x107   : > { %1081 = vrot.lane.b32.xlu0 %v5190_v50, %s4863_s28 }
 0x108   : > { %v706_v42 = vpop.permute.xlu1 %705 }
 0x109   : > { %783 = vst.msk [vmem:[#allocation3 + $0x98] sm:$0xff] %vm763_vm3, %v706_v42  ;;  %v712_v43 = vpop.permute.xlu0 %711 }
 0x10a   : > { %1079 = vrot.lane.b32.xlu1 %v5200_v53, %s4863_s28  ;;  %786 = vst.msk [vmem:[#allocation3 + $0xb0] sm:$0xff] %vm763_vm3, %v712_v43 }
 0x10b   : > { %1085 = vrot.lane.b32.xlu0 %v5210_v56, %s4863_s28 }
 0x10c   : > { %v710_v44 = vpop.permute.xlu1 %709 }
 0x10d   : > { %785 = vst.msk [vmem:[#allocation3 + $0xa8] sm:$0xff] %vm763_vm3, %v710_v44  ;;  %v716_v47 = vpop.permute.xlu0 %715  ;;  %v7361_v44 = vld [vmem:[#allocation43_spill] sm:$0xff] }
 0x10e   : > { %1083 = vrot.lane.b32.xlu1 %v5236_v63, %s4863_s28  ;;  %788 = vst.msk [vmem:[#allocation3 + $0xc0] sm:$0xff] %vm763_vm3, %v716_v47  ;;  %v7362_v47 = vld [vmem:[#allocation44_spill] sm:$0xff] }
 0x10f   : > { %1089 = vrot.lane.b32.xlu0 %v5286_v34, %s4863_s28 }
 0x110   : > { %v714_v50 = vpop.permute.xlu1 %713 }
 0x111   : > { %787 = vst.msk [vmem:[#allocation3 + $0xb8] sm:$0xff] %vm763_vm3, %v714_v50  ;;  %v720_v53 = vpop.permute.xlu0 %719 }
 0x112   : > { %1087 = vrot.lane.b32.xlu1 %v5296_v23, %s4863_s28  ;;  %790 = vst.msk [vmem:[#allocation3 + $0xd0] sm:$0xff] %vm763_vm3, %v720_v53 }
 0x113   : > { %1093 = vrot.lane.b32.xlu0 %v5304_v24, %s4863_s28 }
 0x114   : > { %v718_v56 = vpop.permute.xlu1 %717 }
 0x115   : > { %789 = vst.msk [vmem:[#allocation3 + $0xc8] sm:$0xff] %vm763_vm3, %v718_v56  ;;  %v724_v63 = vpop.permute.xlu0 %723  ;;  %v7363_v56 = vld [vmem:[#allocation45_spill] sm:$0xff] }
 0x116   : > { %1091 = vrot.lane.b32.xlu1 %v5312_v19, %s4863_s28  ;;  %792 = vst.msk [vmem:[#allocation3 + $0xe0] sm:$0xff] %vm763_vm3, %v724_v63  ;;  %v7364_v63 = vld [vmem:[#allocation46_spill] sm:$0xff] }
 0x117   : > { %1097 = vrot.lane.b32.xlu0 %v5320_v20, %s4863_s28 }
 0x118   : > { %v722_v34 = vpop.permute.xlu1 %721 }
 0x119   : > { %791 = vst.msk [vmem:[#allocation3 + $0xd8] sm:$0xff] %vm763_vm3, %v722_v34  ;;  %v728_v23 = vpop.permute.xlu0 %727 }
 0x11a   : > { %1095 = vrot.lane.b32.xlu1 %v5328_v15, %s4863_s28  ;;  %794 = vst.msk [vmem:[#allocation3 + $0xf0] sm:$0xff] %vm763_vm3, %v728_v23  ;;  %v7354_v15 = vld [vmem:[#allocation34_spill] sm:$0xff] }
 0x11b   : > { %1101 = vrot.lane.b32.xlu0 %v5336_v16, %s4863_s28 }
 0x11c   : > { %v726_v24 = vpop.permute.xlu1 %725 }
 0x11d   : > { %793 = vst.msk [vmem:[#allocation3 + $0xe8] sm:$0xff] %vm763_vm3, %v726_v24  ;;  %v861_v19 = vpop.permute.xlu0 %860  ;;  %v7365_v24 = vld [vmem:[#allocation47_spill] sm:$0xff] }
 0x11e   : > { %1099 = vrot.lane.b32.xlu1 %v5344_v11, %s4863_s28  ;;  %957 = vst.msk [vmem:[#allocation3] sm:$0xff] %vm956_vm4, %v861_v19  ;;  %v5697_v11 = vld [vmem:[#allocation2 + $0x181] sm:$0xff]  ;;  %v7366_v19 = vld [vmem:[#allocation48_spill] sm:$0xff] }
 0x11f   : > { %1105 = vrot.lane.b32.xlu0 %v5352_v12, %s4863_s28 }
 0x120   : > { %v730_v20 = vpop.permute.xlu1 %729 }
 0x121   : > { %795 = vst.msk [vmem:[#allocation3 + $0xf8] sm:$0xff] %vm763_vm3, %v730_v20  ;;  %v865_v10 = vpop.permute.xlu0 %864 }
 0x122   : > { %1103 = vrot.lane.b32.xlu1 %v7354_v15, %s4863_s28  ;;  %959 = vst.msk [vmem:[#allocation3 + $0x10] sm:$0xff] %vm956_vm4, %v865_v10  ;;  %v7367_v10 = vld [vmem:[#allocation49_spill] sm:$0xff] }
 0x123   : > { %1109 = vrot.lane.b32.xlu0 %v7355_v49, %s4863_s28 }
 0x124   : > { %v863_v16 = vpop.permute.xlu1 %862 }
 0x125   : > { %958 = vst.msk [vmem:[#allocation3 + $0x8] sm:$0xff] %vm956_vm4, %v863_v16  ;;  %v869_v12 = vpop.permute.xlu0 %868  ;;  %v7368_v16 = vld [vmem:[#allocation50_spill] sm:$0xff] }
 0x126   : > { %1107 = vrot.lane.b32.xlu1 %v7356_v1, %s4863_s28  ;;  %961 = vst.msk [vmem:[#allocation3 + $0x20] sm:$0xff] %vm956_vm4, %v869_v12  ;;  %v7369_v12 = vld [vmem:[#allocation51_spill] sm:$0xff] }
 0x127   : > { %1113 = vrot.lane.b32.xlu0 %v5697_v11, %s4863_s28 }
 0x128   : > { %v867_v25 = vpop.permute.xlu1 %866 }
 0x129   : > { %960 = vst.msk [vmem:[#allocation3 + $0x18] sm:$0xff] %vm956_vm4, %v867_v25  ;;  %v873_v26 = vpop.permute.xlu0 %872  ;;  %v7370_v25 = vld [vmem:[#allocation52_spill] sm:$0xff] }
 0x12a   : > { %1111 = vrot.lane.b32.xlu1 %v7357_v46, %s4863_s28  ;;  %963 = vst.msk [vmem:[#allocation3 + $0x30] sm:$0xff] %vm956_vm4, %v873_v26 }
 0x12b   : > { %1246 = vrot.lane.b32.xlu0 %v7358_v31, %s4864_s29  ;;  %v7372_v31 = vld [vmem:[#allocation54_spill] sm:$0xff] }
 0x12c   : > { %v871_v30 = vpop.permute.xlu1 %870 }
 0x12d   : > { %962 = vst.msk [vmem:[#allocation3 + $0x28] sm:$0xff] %vm956_vm4, %v871_v30  ;;  %v877_v32 = vpop.permute.xlu0 %876  ;;  %v7371_v30 = vld [vmem:[#allocation53_spill] sm:$0xff] }
 0x12e   : > { %1115 = vrot.lane.b32.xlu1 %v5707_v27, %s4863_s28  ;;  %965 = vst.msk [vmem:[#allocation3 + $0x40] sm:$0xff] %vm956_vm4, %v877_v32 }
 0x12f   : > { %1250 = vrot.lane.b32.xlu0 %v7359_v40, %s4864_s29  ;;  %v7373_v40 = vld [vmem:[#allocation55_spill] sm:$0xff] }
 0x130   : > { %v875_v39 = vpop.permute.xlu1 %874 }
 0x131   : > { %964 = vst.msk [vmem:[#allocation3 + $0x38] sm:$0xff] %vm956_vm4, %v875_v39  ;;  %v881_v42 = vpop.permute.xlu0 %880 }
 0x132   : > { %1248 = vrot.lane.b32.xlu1 %v7360_v41, %s4864_s29  ;;  %967 = vst.msk [vmem:[#allocation3 + $0x50] sm:$0xff] %vm956_vm4, %v881_v42  ;;  %v7374_v41 = vld [vmem:[#allocation56_spill] sm:$0xff] }
 0x133   : > { %1254 = vrot.lane.b32.xlu0 %v7361_v44, %s4864_s29  ;;  %v7375_v44 = vld [vmem:[#allocation57_spill] sm:$0xff] }
 0x134   : > { %v879_v43 = vpop.permute.xlu1 %878 }
 0x135   : > { %966 = vst.msk [vmem:[#allocation3 + $0x48] sm:$0xff] %vm956_vm4, %v879_v43  ;;  %v885_v50 = vpop.permute.xlu0 %884 }
 0x136   : > { %1252 = vrot.lane.b32.xlu1 %v7362_v47, %s4864_s29  ;;  %969 = vst.msk [vmem:[#allocation3 + $0x60] sm:$0xff] %vm956_vm4, %v885_v50  ;;  %v7376_v47 = vld [vmem:[#allocation58_spill] sm:$0xff] }
 0x137   : > { %1258 = vrot.lane.b32.xlu0 %v7363_v56, %s4864_s29  ;;  %v7377_v56 = vld [vmem:[#allocation59_spill] sm:$0xff] }
 0x138   : > { %v883_v53 = vpop.permute.xlu1 %882 }
 0x139   : > { %968 = vst.msk [vmem:[#allocation3 + $0x58] sm:$0xff] %vm956_vm4, %v883_v53  ;;  %v889_v34 = vpop.permute.xlu0 %888 }
 0x13a   : > { %1256 = vrot.lane.b32.xlu1 %v7364_v63, %s4864_s29  ;;  %971 = vst.msk [vmem:[#allocation3 + $0x70] sm:$0xff] %vm956_vm4, %v889_v34  ;;  %v7378_v63 = vld [vmem:[#allocation60_spill] sm:$0xff] }
 0x13b   : > { %1262 = vrot.lane.b32.xlu0 %v7365_v24, %s4864_s29  ;;  %v7379_v24 = vld [vmem:[#allocation61_spill] sm:$0xff] }
 0x13c   : > { %v887_v23 = vpop.permute.xlu1 %886 }
 0x13d   : > { %970 = vst.msk [vmem:[#allocation3 + $0x68] sm:$0xff] %vm956_vm4, %v887_v23  ;;  %v893_v20 = vpop.permute.xlu0 %892 }
 0x13e   : > { %1260 = vrot.lane.b32.xlu1 %v7366_v19, %s4864_s29  ;;  %973 = vst.msk [vmem:[#allocation3 + $0x80] sm:$0xff] %vm956_vm4, %v893_v20  ;;  %v7380_v19 = vld [vmem:[#allocation62_spill] sm:$0xff] }
 0x13f   : > { %1266 = vrot.lane.b32.xlu0 %v7367_v10, %s4864_s29  ;;  %v7381_v10 = vld [vmem:[#allocation63_spill] sm:$0xff] }
 0x140   : > { %v891_v15 = vpop.permute.xlu1 %890 }
 0x141   : > { %972 = vst.msk [vmem:[#allocation3 + $0x78] sm:$0xff] %vm956_vm4, %v891_v15  ;;  %v897_v49 = vpop.permute.xlu0 %896 }
 0x142   : > { %1264 = vrot.lane.b32.xlu1 %v7368_v16, %s4864_s29  ;;  %975 = vst.msk [vmem:[#allocation3 + $0x90] sm:$0xff] %vm956_vm4, %v897_v49  ;;  %v7382_v16 = vld [vmem:[#allocation64_spill] sm:$0xff] }
 0x143   : > { %1270 = vrot.lane.b32.xlu0 %v7369_v12, %s4864_s29  ;;  %v7383_v12 = vld [vmem:[#allocation65_spill] sm:$0xff] }
 0x144   : > { %v895_v1 = vpop.permute.xlu1 %894 }
 0x145   : > { %974 = vst.msk [vmem:[#allocation3 + $0x88] sm:$0xff] %vm956_vm4, %v895_v1  ;;  %v901_v46 = vpop.permute.xlu0 %900 }
 0x146   : > { %1268 = vrot.lane.b32.xlu1 %v7370_v25, %s4864_s29  ;;  %977 = vst.msk [vmem:[#allocation3 + $0xa0] sm:$0xff] %vm956_vm4, %v901_v46 }
 0x147   : > { %1274 = vrot.lane.b32.xlu0 %v7371_v30, %s4864_s29 }
 0x148   : > { %v899_v26 = vpop.permute.xlu1 %898 }
 0x149   : > { %976 = vst.msk [vmem:[#allocation3 + $0x98] sm:$0xff] %vm956_vm4, %v899_v26  ;;  %v905_v32 = vpop.permute.xlu0 %904  ;;  %v5797_v26 = vld [vmem:[#allocation2 + $0x182] sm:$0xff] }
 0x14a   : > { %1272 = vrot.lane.b32.xlu1 %v7372_v31, %s4864_s29  ;;  %979 = vst.msk [vmem:[#allocation3 + $0xb0] sm:$0xff] %vm956_vm4, %v905_v32  ;;  %v5807_v31 = vld [vmem:[#allocation2 + $0x18a] sm:$0xff] }
 0x14b   : > { %1278 = vrot.lane.b32.xlu0 %v7373_v40, %s4864_s29 }
 0x14c   : > { %v903_v39 = vpop.permute.xlu1 %902 }
 0x14d   : > { %978 = vst.msk [vmem:[#allocation3 + $0xa8] sm:$0xff] %vm956_vm4, %v903_v39  ;;  %v909_v42 = vpop.permute.xlu0 %908 }
 0x14e   : > { %1276 = vrot.lane.b32.xlu1 %v7374_v41, %s4864_s29  ;;  %981 = vst.msk [vmem:[#allocation3 + $0xc0] sm:$0xff] %vm956_vm4, %v909_v42 }
 0x14f   : > { %1282 = vrot.lane.b32.xlu0 %v7375_v44, %s4864_s29 }
 0x150   : > { %v907_v43 = vpop.permute.xlu1 %906 }
 0x151   : > { %980 = vst.msk [vmem:[#allocation3 + $0xb8] sm:$0xff] %vm956_vm4, %v907_v43  ;;  %v913_v50 = vpop.permute.xlu0 %912  ;;  %v1990_v43 = vld [vmem:[%s7224_s1 + $0x18] sm:$0xff] }
 0x152   : > { %1280 = vrot.lane.b32.xlu1 %v7376_v47, %s4864_s29  ;;  %983 = vst.msk [vmem:[#allocation3 + $0xd0] sm:$0xff] %vm956_vm4, %v913_v50  ;;  %v1991_v47 = vld [vmem:[%s7224_s1 + $0x20] sm:$0xff]  ;;  %v1992_v50 = vld [vmem:[%s7224_s1 + $0x28] sm:$0xff] }
 0x153   : > { %1286 = vrot.lane.b32.xlu0 %v7377_v56, %s4864_s29  ;;  %v1993_v56 = vld [vmem:[%s7224_s1 + $0x30] sm:$0xff] }
 0x154   : > { %v911_v53 = vpop.permute.xlu1 %910 }
 0x155   : > { %982 = vst.msk [vmem:[#allocation3 + $0xc8] sm:$0xff] %vm956_vm4, %v911_v53  ;;  %v917_v34 = vpop.permute.xlu0 %916 }
 0x156   : > { %1284 = vrot.lane.b32.xlu1 %v7378_v63, %s4864_s29  ;;  %985 = vst.msk [vmem:[#allocation3 + $0xe0] sm:$0xff] %vm956_vm4, %v917_v34  ;;  %v1994_v63 = vld [vmem:[%s7224_s1 + $0x38] sm:$0xff] }
 0x157   : > { %1290 = vrot.lane.b32.xlu0 %v7379_v24, %s4864_s29  ;;  %v4814_v34 = vpack.c.bf16 %v1994_v63, %v1993_v56  ;;  %v1762_v24 = vld [vmem:[#allocation2 + $0x32] sm:$0xff]  ;;  %v1775_v63 = vld [vmem:[#allocation2 + $0xca] sm:$0xff] }
 0x158   : > { %v915_v23 = vpop.permute.xlu1 %914 }
 0x159   : > { %984 = vst.msk [vmem:[#allocation3 + $0xd8] sm:$0xff] %vm956_vm4, %v915_v23  ;;  %v921_v20 = vpop.permute.xlu0 %920 }
 0x15a   : > { %1288 = vrot.lane.b32.xlu1 %v7380_v19, %s4864_s29  ;;  %987 = vst.msk [vmem:[#allocation3 + $0xf0] sm:$0xff] %vm956_vm4, %v921_v20  ;;  %v1995_v19 = vld [vmem:[%s7224_s1 + $0x40] sm:$0xff] }
 0x15b   : > { %1294 = vrot.lane.b32.xlu0 %v7381_v10, %s4864_s29  ;;  %v1570_v20 = vld [vmem:[#allocation2 + $0x39] sm:$0xff]  ;;  %v1571_v10 = vld [vmem:[#allocation2 + $0x49] sm:$0xff] }
 0x15c   : > { %v919_v15 = vpop.permute.xlu1 %918 }
 0x15d   : > { %986 = vst.msk [vmem:[#allocation3 + $0xe8] sm:$0xff] %vm956_vm4, %v919_v15  ;;  %v1054_v49 = vpop.permute.xlu0 %1053 }
 0x15e   : > { %1292 = vrot.lane.b32.xlu1 %v7382_v16, %s4864_s29  ;;  %1150 = vst.msk [vmem:[#allocation3] sm:$0xff] %vm1149_vm5, %v1054_v49  ;;  %v1763_v49 = vld [vmem:[#allocation2 + $0x3a] sm:$0xff] }
 0x15f   : > { %1298 = vrot.lane.b32.xlu0 %v5485_v5, %s4864_s29 }
 0x160   : > { %v923_v1 = vpop.permute.xlu1 %922 }
 0x161   : > { %988 = vst.msk [vmem:[#allocation3 + $0xf8] sm:$0xff] %vm956_vm4, %v923_v1  ;;  %v1058_v25 = vpop.permute.xlu0 %1057  ;;  %v1764_v1 = vld [vmem:[#allocation2 + $0x4a] sm:$0xff] }
 0x162   : > { %1296 = vrot.lane.b32.xlu1 %v7383_v12, %s4864_s29  ;;  %1152 = vst.msk [vmem:[#allocation3 + $0x10] sm:$0xff] %vm1149_vm5, %v1058_v25  ;;  %v1572_v25 = vld [vmem:[#allocation2 + $0x51] sm:$0xff] }
 0x163   : > { %1302 = vrot.lane.b32.xlu0 %v5495_v6, %s4864_s29 }
 0x164   : > { %v1056_v46 = vpop.permute.xlu1 %1055 }
 0x165   : > { %1151 = vst.msk [vmem:[#allocation3 + $0x8] sm:$0xff] %vm1149_vm5, %v1056_v46  ;;  %v1062_v5 = vpop.permute.xlu0 %1061 }
 0x166   : > { %1300 = vrot.lane.b32.xlu1 %v5499_v4, %s4864_s29  ;;  %1154 = vst.msk [vmem:[#allocation3 + $0x20] sm:$0xff] %vm1149_vm5, %v1062_v5  ;;  %v1573_v5 = vld [vmem:[#allocation2 + $0x61] sm:$0xff] }
 0x167   : > { %1306 = vrot.lane.b32.xlu0 %v5797_v26, %s4864_s29 }
 0x168   : > { %v1060_v30 = vpop.permute.xlu1 %1059 }
 0x169   : > { %1153 = vst.msk [vmem:[#allocation3 + $0x18] sm:$0xff] %vm1149_vm5, %v1060_v30  ;;  %v1066_v6 = vpop.permute.xlu0 %1065 }
 0x16a   : > { %1304 = vrot.lane.b32.xlu1 %v5507_v9, %s4864_s29  ;;  %1156 = vst.msk [vmem:[#allocation3 + $0x30] sm:$0xff] %vm1149_vm5, %v1066_v6  ;;  %v1765_v6 = vld [vmem:[#allocation2 + $0x52] sm:$0xff] }
 0x16b   : > { %1440 = vrot.lane.b32.xlu0 %v5194_v51, %s4865_s30 }
 0x16c   : > { %v1064_v32 = vpop.permute.xlu1 %1063 }
 0x16d   : > { %1155 = vst.msk [vmem:[#allocation3 + $0x28] sm:$0xff] %vm1149_vm5, %v1064_v32  ;;  %v1070_v4 = vpop.permute.xlu0 %1069 }
 0x16e   : > { %1308 = vrot.lane.b32.xlu1 %v5807_v31, %s4864_s29  ;;  %1158 = vst.msk [vmem:[#allocation3 + $0x40] sm:$0xff] %vm1149_vm5, %v1070_v4  ;;  %v1766_v4 = vld [vmem:[#allocation2 + $0x62] sm:$0xff] }
 0x16f   : > { %1444 = vrot.lane.b32.xlu0 %v5206_v54, %s4865_s30 }
 0x170   : > { %v1068_v39 = vpop.permute.xlu1 %1067 }
 0x171   : > { %1157 = vst.msk [vmem:[#allocation3 + $0x38] sm:$0xff] %vm1149_vm5, %v1068_v39  ;;  %v1074_v9 = vpop.permute.xlu0 %1073 }
 0x172   : > { %1442 = vrot.lane.b32.xlu1 %v5196_v52, %s4865_s30  ;;  %1160 = vst.msk [vmem:[#allocation3 + $0x50] sm:$0xff] %vm1149_vm5, %v1074_v9  ;;  %v1574_v9 = vld [vmem:[#allocation2 + $0x69] sm:$0xff] }
 0x173   : > { %1448 = vrot.lane.b32.xlu0 %v5216_v57, %s4865_s30 }
 0x174   : > { %v1072_v51 = vpop.permute.xlu1 %1071 }
 0x175   : > { %1159 = vst.msk [vmem:[#allocation3 + $0x48] sm:$0xff] %vm1149_vm5, %v1072_v51  ;;  %v1078_v40 = vpop.permute.xlu0 %1077 }
 0x176   : > { %1446 = vrot.lane.b32.xlu1 %v5208_v55, %s4865_s30  ;;  %1162 = vst.msk [vmem:[#allocation3 + $0x60] sm:$0xff] %vm1149_vm5, %v1078_v40  ;;  %v1575_v40 = vld [vmem:[#allocation2 + $0x79] sm:$0xff] }
 0x177   : > { %1452 = vrot.lane.b32.xlu0 %v5220_v59, %s4865_s30 }
 0x178   : > { %v1076_v54 = vpop.permute.xlu1 %1075 }
 0x179   : > { %1161 = vst.msk [vmem:[#allocation3 + $0x58] sm:$0xff] %vm1149_vm5, %v1076_v54  ;;  %v1082_v52 = vpop.permute.xlu0 %1081 }
 0x17a   : > { %1450 = vrot.lane.b32.xlu1 %v5218_v58, %s4865_s30  ;;  %1164 = vst.msk [vmem:[#allocation3 + $0x70] sm:$0xff] %vm1149_vm5, %v1082_v52  ;;  %v1767_v52 = vld [vmem:[#allocation2 + $0x6a] sm:$0xff] }
 0x17b   : > { %1456 = vrot.lane.b32.xlu0 %v5232_v61, %s4865_s30 }
 0x17c   : > { %v1080_v57 = vpop.permute.xlu1 %1079 }
 0x17d   : > { %1163 = vst.msk [vmem:[#allocation3 + $0x68] sm:$0xff] %vm1149_vm5, %v1080_v57  ;;  %v1086_v55 = vpop.permute.xlu0 %1085 }
 0x17e   : > { %1454 = vrot.lane.b32.xlu1 %v5230_v60, %s4865_s30  ;;  %1166 = vst.msk [vmem:[#allocation3 + $0x80] sm:$0xff] %vm1149_vm5, %v1086_v55  ;;  %v1768_v55 = vld [vmem:[#allocation2 + $0x7a] sm:$0xff] }
 0x17f   : > { %1460 = vrot.lane.b32.xlu0 %v5244_v0, %s4865_s30 }
 0x180   : > { %v1084_v59 = vpop.permute.xlu1 %1083 }
 0x181   : > { %1165 = vst.msk [vmem:[#allocation3 + $0x78] sm:$0xff] %vm1149_vm5, %v1084_v59  ;;  %v1090_v58 = vpop.permute.xlu0 %1089 }
 0x182   : > { %1458 = vrot.lane.b32.xlu1 %v5234_v62, %s4865_s30  ;;  %1168 = vst.msk [vmem:[#allocation3 + $0x90] sm:$0xff] %vm1149_vm5, %v1090_v58  ;;  %v1576_v58 = vld [vmem:[#allocation2 + $0x81] sm:$0xff] }
 0x183   : > { %1464 = vrot.lane.b32.xlu0 %v5248_v8, %s4865_s30 }
 0x184   : > { %v1088_v61 = vpop.permute.xlu1 %1087 }
 0x185   : > { %1167 = vst.msk [vmem:[#allocation3 + $0x88] sm:$0xff] %vm1149_vm5, %v1088_v61  ;;  %v1094_v60 = vpop.permute.xlu0 %1093 }
 0x186   : > { %1462 = vrot.lane.b32.xlu1 %v5246_v7, %s4865_s30  ;;  %1170 = vst.msk [vmem:[#allocation3 + $0xa0] sm:$0xff] %vm1149_vm5, %v1094_v60  ;;  %v1577_v60 = vld [vmem:[#allocation2 + $0x91] sm:$0xff] }
 0x187   : > { %1468 = vrot.lane.b32.xlu0 %v5260_v48, %s4865_s30 }
 0x188   : > { %v1092_v0 = vpop.permute.xlu1 %1091 }
 0x189   : > { %1169 = vst.msk [vmem:[#allocation3 + $0x98] sm:$0xff] %vm1149_vm5, %v1092_v0  ;;  %v1098_v62 = vpop.permute.xlu0 %1097 }
 0x18a   : > { %1466 = vrot.lane.b32.xlu1 %v5258_v45, %s4865_s30  ;;  %1172 = vst.msk [vmem:[#allocation3 + $0xb0] sm:$0xff] %vm1149_vm5, %v1098_v62  ;;  %v1769_v62 = vld [vmem:[#allocation2 + $0x82] sm:$0xff] }
 0x18b   : > { %1472 = vrot.lane.b32.xlu0 %v5270_v38, %s4865_s30 }
 0x18c   : > { %v1096_v8 = vpop.permute.xlu1 %1095 }
 0x18d   : > { %1171 = vst.msk [vmem:[#allocation3 + $0xa8] sm:$0xff] %vm1149_vm5, %v1096_v8  ;;  %v1102_v7 = vpop.permute.xlu0 %1101 }
 0x18e   : > { %1470 = vrot.lane.b32.xlu1 %v5262_v37, %s4865_s30  ;;  %1174 = vst.msk [vmem:[#allocation3 + $0xc0] sm:$0xff] %vm1149_vm5, %v1102_v7  ;;  %v1770_v7 = vld [vmem:[#allocation2 + $0x92] sm:$0xff] }
 0x18f   : > { %1476 = vrot.lane.b32.xlu0 %v5274_v36, %s4865_s30 }
 0x190   : > { %v1100_v48 = vpop.permute.xlu1 %1099 }
 0x191   : > { %1173 = vst.msk [vmem:[#allocation3 + $0xb8] sm:$0xff] %vm1149_vm5, %v1100_v48  ;;  %v1106_v45 = vpop.permute.xlu0 %1105 }
 0x192   : > { %1474 = vrot.lane.b32.xlu1 %v5272_v35, %s4865_s30  ;;  %1176 = vst.msk [vmem:[#allocation3 + $0xd0] sm:$0xff] %vm1149_vm5, %v1106_v45  ;;  %v1987_v35 = vld [vmem:[%s7224_s1] sm:$0xff] }
 0x193   : > { %1480 = vrot.lane.b32.xlu0 %v5292_v28, %s4865_s30  ;;  %v1988_v28 = vld [vmem:[%s7224_s1 + $0x8] sm:$0xff]  ;;  %v1578_v45 = vld [vmem:[#allocation2 + $0x99] sm:$0xff] }
 0x194   : > { %v1104_v38 = vpop.permute.xlu1 %1103  ;;  %v4802_v41 = vpack.c.bf16 %v1988_v28, %v1987_v35  ;;  %v1771_v35 = vld [vmem:[#allocation2 + $0x9a] sm:$0xff] }
 0x195   : > { %1175 = vst.msk [vmem:[#allocation3 + $0xc8] sm:$0xff] %vm1149_vm5, %v1104_v38  ;;  %v1110_v37 = vpop.permute.xlu0 %1109 }
 0x196   : > { %1478 = vrot.lane.b32.xlu1 %v5284_v33, %s4865_s30  ;;  %1178 = vst.msk [vmem:[#allocation3 + $0xe0] sm:$0xff] %vm1149_vm5, %v1110_v37  ;;  %4803 = vmatprep.subr.bf16.mxu0 %v4802_v41  ;;  %v1579_v37 = vld [vmem:[#allocation2 + $0xa9] sm:$0xff] }
 0x197   : > { %1484 = vrot.lane.b32.xlu0 %v5308_v21, %s4865_s30  ;;  %4805 = vmatpush3.bf16.msra.mxu0 %v4802_v41  ;;  %v1989_v21 = vld [vmem:[%s7224_s1 + $0x10] sm:$0xff] }
 0x198   : > { %v1108_v36 = vpop.permute.xlu1 %1107  ;;  %v1772_v41 = vld [vmem:[#allocation2 + $0xaa] sm:$0xff] }
 0x199   : > { %1177 = vst.msk [vmem:[#allocation3 + $0xd8] sm:$0xff] %vm1149_vm5, %v1108_v36  ;;  %v1114_v33 = vpop.permute.xlu0 %1113 }
 0x19a   : > { %1482 = vrot.lane.b32.xlu1 %v5294_v29, %s4865_s30  ;;  %1180 = vst.msk [vmem:[#allocation3 + $0xf0] sm:$0xff] %vm1149_vm5, %v1114_v33  ;;  %v4806_v29 = vpack.c.bf16 %v1990_v43, %v1989_v21  ;;  %v1581_v43 = vld [vmem:[#allocation2 + $0xc1] sm:$0xff] }
 0x19b   : > { %1488 = vrot.lane.b32.xlu0 %v5324_v17, %s4865_s30 }
 0x19c   : > { %v1112_v42 = vpop.permute.xlu1 %1111  ;;  %4807 = vmatprep.subr.bf16.mxu0 %v4806_v29 }
 0x19d   : > { %1179 = vst.msk [vmem:[#allocation3 + $0xe8] sm:$0xff] %vm1149_vm5, %v1112_v42  ;;  %v1247_v44 = vpop.permute.xlu0 %1246  ;;  %4809 = vmatpush3.bf16.msra.mxu0 %v4806_v29  ;;  %v1580_v42 = vld [vmem:[#allocation2 + $0xb1] sm:$0xff] }
 0x19e   : > { %1486 = vrot.lane.b32.xlu1 %v5310_v22, %s4865_s30  ;;  %1343 = vst.msk [vmem:[#allocation3] sm:$0xff] %vm1342_vm6, %v1247_v44  ;;  %v4810_v22 = vpack.c.bf16 %v1992_v50, %v1991_v47  ;;  %v1773_v44 = vld [vmem:[#allocation2 + $0xb2] sm:$0xff]  ;;  %v1774_v47 = vld [vmem:[#allocation2 + $0xc2] sm:$0xff] }
 0x19f   : > { %1492 = vrot.lane.b32.xlu0 %v5340_v13, %s4865_s30 }
 0x1a0   : > { %v1116_v17 = vpop.permute.xlu1 %1115  ;;  %4811 = vmatprep.subr.bf16.mxu0 %v4810_v22 }
 0x1a1   : > { %1181 = vst.msk [vmem:[#allocation3 + $0xf8] sm:$0xff] %vm1149_vm5, %v1116_v17  ;;  %v1251_v53 = vpop.permute.xlu0 %1250  ;;  %4813 = vmatpush3.bf16.msra.mxu0 %v4810_v22  ;;  %v1582_v22 = vld [vmem:[#allocation2 + $0xc9] sm:$0xff] }
 0x1a2   : > { %1490 = vrot.lane.b32.xlu1 %v5326_v18, %s4865_s30  ;;  %1345 = vst.msk [vmem:[#allocation3 + $0x10] sm:$0xff] %vm1342_vm6, %v1251_v53  ;;  %v1569_v18 = vld [vmem:[#allocation2 + $0x31] sm:$0xff]  ;;  %4815 = vmatprep.subr.bf16.mxu0 %v4814_v34 }
 0x1a3   : > { %1496 = vrot.lane.b32.xlu0 %v5597_v2, %s4865_s30 }
 0x1a4   : > { %v1249_v13 = vpop.permute.xlu1 %1248 }
 0x1a5   : > { %1344 = vst.msk [vmem:[#allocation3 + $0x8] sm:$0xff] %vm1342_vm6, %v1249_v13  ;;  %v1255_v23 = vpop.permute.xlu0 %1254  ;;  %4817 = vmatpush3.bf16.msra.mxu0 %v4814_v34  ;;  %v1583_v13 = vld [vmem:[#allocation2 + $0xd9] sm:$0xff] }
 0x1a6   : > { %1494 = vrot.lane.b32.xlu1 %v5342_v14, %s4865_s30  ;;  %1347 = vst.msk [vmem:[#allocation3 + $0x20] sm:$0xff] %vm1342_vm6, %v1255_v23  ;;  %4686 = vmatprep.subr.mxu0 %v1995_v19  ;;  %v1776_v34 = vld [vmem:[#allocation2 + $0xda] sm:$0xff] }
 0x1a7   : > { %1633 = vrot.lane.b32.xlu0 %v1569_v18, %s4866_s6 }
 0x1a8   : > { %v1253_v2 = vpop.permute.xlu1 %1252 }
 0x1a9   : > { %1346 = vst.msk [vmem:[#allocation3 + $0x18] sm:$0xff] %vm1342_vm6, %v1253_v2  ;;  %v1259_v14 = vpop.permute.xlu0 %1258  ;;  %4687 = vmatpush3.msra.mxu0 %v1995_v19  ;;  %v1584_v2 = vld [vmem:[#allocation2 + $0xe1] sm:$0xff]  ;;  %v1585_v19 = vld [vmem:[#allocation2 + $0xf1] sm:$0xff] }
 0x1aa   : > { %1498 = vrot.lane.b32.xlu1 %v5607_v3, %s4865_s30  ;;  %1349 = vst.msk [vmem:[#allocation3 + $0x30] sm:$0xff] %vm1342_vm6, %v1259_v14 }
 0x1ab   : > { %1826 = vrot.lane.b32.xlu0 %v1762_v24, %s4867_s9 }
 0x1ac   : > { %v1257_v15 = vpop.permute.xlu1 %1256 }
 0x1ad   : > { %1348 = vst.msk [vmem:[#allocation3 + $0x28] sm:$0xff] %vm1342_vm6, %v1257_v15  ;;  %v1263_v16 = vpop.permute.xlu0 %1262 }
 0x1ae   : > { %1635 = vrot.lane.b32.xlu1 %v1570_v20, %s4866_s6  ;;  %1351 = vst.msk [vmem:[#allocation3 + $0x40] sm:$0xff] %vm1342_vm6, %v1263_v16  ;;  %v1777_v20 = vld [vmem:[#allocation2 + $0xe2] sm:$0xff] }
 0x1af   : > { %1637 = vrot.lane.b32.xlu0 %v1571_v10, %s4866_s6  ;;  %v1778_v10 = vld [vmem:[#allocation2 + $0xf2] sm:$0xff] }
 0x1b0   : > { %v1261_v3 = vpop.permute.xlu1 %1260 }
 0x1b1   : > { %1350 = vst.msk [vmem:[#allocation3 + $0x38] sm:$0xff] %vm1342_vm6, %v1261_v3  ;;  %v1267_v12 = vpop.permute.xlu0 %1266 }
 0x1b2   : > { %1828 = vrot.lane.b32.xlu1 %v1763_v49, %s4867_s9  ;;  %1353 = vst.msk [vmem:[#allocation3 + $0x50] sm:$0xff] %vm1342_vm6, %v1267_v12  ;;  %v1586_v49 = vld [vmem:[#allocation2 + $0xf9] sm:$0xff] }
 0x1b3   : > { %1830 = vrot.lane.b32.xlu0 %v1764_v1, %s4867_s9  ;;  %v1587_v1 = vld [vmem:[#allocation2 + $0x109] sm:$0xff] }
 0x1b4   : > { %v1265_v46 = vpop.permute.xlu1 %1264 }
 0x1b5   : > { %1352 = vst.msk [vmem:[#allocation3 + $0x48] sm:$0xff] %vm1342_vm6, %v1265_v46  ;;  %v1271_v30 = vpop.permute.xlu0 %1270 }
 0x1b6   : > { %1639 = vrot.lane.b32.xlu1 %v1572_v25, %s4866_s6  ;;  %1355 = vst.msk [vmem:[#allocation3 + $0x60] sm:$0xff] %vm1342_vm6, %v1271_v30  ;;  %v1779_v25 = vld [vmem:[#allocation2 + $0xfa] sm:$0xff] }
 0x1b7   : > { %1641 = vrot.lane.b32.xlu0 %v1573_v5, %s4866_s6  ;;  %v1780_v5 = vld [vmem:[#allocation2 + $0x10a] sm:$0xff] }
 0x1b8   : > { %v1269_v32 = vpop.permute.xlu1 %1268 }
 0x1b9   : > { %1354 = vst.msk [vmem:[#allocation3 + $0x58] sm:$0xff] %vm1342_vm6, %v1269_v32  ;;  %v1275_v39 = vpop.permute.xlu0 %1274 }
 0x1ba   : > { %1832 = vrot.lane.b32.xlu1 %v1765_v6, %s4867_s9  ;;  %1357 = vst.msk [vmem:[#allocation3 + $0x70] sm:$0xff] %vm1342_vm6, %v1275_v39  ;;  %v1588_v6 = vld [vmem:[#allocation2 + $0x111] sm:$0xff] }
 0x1bb   : > { %1834 = vrot.lane.b32.xlu0 %v1766_v4, %s4867_s9  ;;  %v1589_v4 = vld [vmem:[#allocation2 + $0x121] sm:$0xff] }
 0x1bc   : > { %v1273_v51 = vpop.permute.xlu1 %1272 }
 0x1bd   : > { %1356 = vst.msk [vmem:[#allocation3 + $0x68] sm:$0xff] %vm1342_vm6, %v1273_v51  ;;  %v1279_v54 = vpop.permute.xlu0 %1278 }
 0x1be   : > { %1643 = vrot.lane.b32.xlu1 %v1574_v9, %s4866_s6  ;;  %1359 = vst.msk [vmem:[#allocation3 + $0x80] sm:$0xff] %vm1342_vm6, %v1279_v54  ;;  %v1781_v9 = vld [vmem:[#allocation2 + $0x112] sm:$0xff] }
 0x1bf   : > { %1645 = vrot.lane.b32.xlu0 %v1575_v40, %s4866_s6  ;;  %v1782_v40 = vld [vmem:[#allocation2 + $0x122] sm:$0xff] }
 0x1c0   : > { %v1277_v57 = vpop.permute.xlu1 %1276 }
 0x1c1   : > { %1358 = vst.msk [vmem:[#allocation3 + $0x78] sm:$0xff] %vm1342_vm6, %v1277_v57  ;;  %v1283_v59 = vpop.permute.xlu0 %1282 }
 0x1c2   : > { %1836 = vrot.lane.b32.xlu1 %v1767_v52, %s4867_s9  ;;  %1361 = vst.msk [vmem:[#allocation3 + $0x90] sm:$0xff] %vm1342_vm6, %v1283_v59  ;;  %v1590_v52 = vld [vmem:[#allocation2 + $0x129] sm:$0xff] }
 0x1c3   : > { %1838 = vrot.lane.b32.xlu0 %v1768_v55, %s4867_s9  ;;  %v1591_v55 = vld [vmem:[#allocation2 + $0x139] sm:$0xff] }
 0x1c4   : > { %v1281_v61 = vpop.permute.xlu1 %1280 }
 0x1c5   : > { %1360 = vst.msk [vmem:[#allocation3 + $0x88] sm:$0xff] %vm1342_vm6, %v1281_v61  ;;  %v1287_v0 = vpop.permute.xlu0 %1286 }
 0x1c6   : > { %1647 = vrot.lane.b32.xlu1 %v1576_v58, %s4866_s6  ;;  %1363 = vst.msk [vmem:[#allocation3 + $0xa0] sm:$0xff] %vm1342_vm6, %v1287_v0  ;;  %v1783_v58 = vld [vmem:[#allocation2 + $0x12a] sm:$0xff] }
 0x1c7   : > { %1649 = vrot.lane.b32.xlu0 %v1577_v60, %s4866_s6  ;;  %v1784_v60 = vld [vmem:[#allocation2 + $0x13a] sm:$0xff] }
 0x1c8   : > { %v1285_v8 = vpop.permute.xlu1 %1284 }
 0x1c9   : > { %1362 = vst.msk [vmem:[#allocation3 + $0x98] sm:$0xff] %vm1342_vm6, %v1285_v8  ;;  %v1291_v48 = vpop.permute.xlu0 %1290 }
 0x1ca   : > { %1840 = vrot.lane.b32.xlu1 %v1769_v62, %s4867_s9  ;;  %1365 = vst.msk [vmem:[#allocation3 + $0xb0] sm:$0xff] %vm1342_vm6, %v1291_v48  ;;  %v1592_v62 = vld [vmem:[#allocation2 + $0x141] sm:$0xff] }
 0x1cb   : > { %1842 = vrot.lane.b32.xlu0 %v1770_v7, %s4867_s9  ;;  %v1593_v7 = vld [vmem:[#allocation2 + $0x151] sm:$0xff] }
 0x1cc   : > { %v1289_v38 = vpop.permute.xlu1 %1288 }
 0x1cd   : > { %1364 = vst.msk [vmem:[#allocation3 + $0xa8] sm:$0xff] %vm1342_vm6, %v1289_v38  ;;  %v1295_v36 = vpop.permute.xlu0 %1294 }
 0x1ce   : > { %1651 = vrot.lane.b32.xlu1 %v1578_v45, %s4866_s6  ;;  %1367 = vst.msk [vmem:[#allocation3 + $0xc0] sm:$0xff] %vm1342_vm6, %v1295_v36  ;;  %v1785_v45 = vld [vmem:[#allocation2 + $0x142] sm:$0xff] }
 0x1cf   : > { %1653 = vrot.lane.b32.xlu0 %v1579_v37, %s4866_s6  ;;  %v1786_v37 = vld [vmem:[#allocation2 + $0x152] sm:$0xff] }
 0x1d0   : > { %v1293_v28 = vpop.permute.xlu1 %1292 }
 0x1d1   : > { %1366 = vst.msk [vmem:[#allocation3 + $0xb8] sm:$0xff] %vm1342_vm6, %v1293_v28  ;;  %v1299_v33 = vpop.permute.xlu0 %1298 }
 0x1d2   : > { %1844 = vrot.lane.b32.xlu1 %v1771_v35, %s4867_s9  ;;  %1369 = vst.msk [vmem:[#allocation3 + $0xd0] sm:$0xff] %vm1342_vm6, %v1299_v33  ;;  %v1594_v35 = vld [vmem:[#allocation2 + $0x159] sm:$0xff] }
 0x1d3   : > { %1846 = vrot.lane.b32.xlu0 %v1772_v41, %s4867_s9  ;;  %v1595_v41 = vld [vmem:[#allocation2 + $0x169] sm:$0xff] }
 0x1d4   : > { %v1297_v21 = vpop.permute.xlu1 %1296 }
 0x1d5   : > { %1368 = vst.msk [vmem:[#allocation3 + $0xc8] sm:$0xff] %vm1342_vm6, %v1297_v21  ;;  %v1303_v29 = vpop.permute.xlu0 %1302 }
 0x1d6   : > { %1655 = vrot.lane.b32.xlu1 %v1580_v42, %s4866_s6  ;;  %1371 = vst.msk [vmem:[#allocation3 + $0xe0] sm:$0xff] %vm1342_vm6, %v1303_v29  ;;  %v1787_v42 = vld [vmem:[#allocation2 + $0x15a] sm:$0xff] }
 0x1d7   : > { %1657 = vrot.lane.b32.xlu0 %v1581_v43, %s4866_s6  ;;  %v1788_v43 = vld [vmem:[#allocation2 + $0x16a] sm:$0xff] }
 0x1d8   : > { %v1301_v17 = vpop.permute.xlu1 %1300 }
 0x1d9   : > { %1370 = vst.msk [vmem:[#allocation3 + $0xd8] sm:$0xff] %vm1342_vm6, %v1301_v17  ;;  %v1307_v50 = vpop.permute.xlu0 %1306 }
 0x1da   : > { %1848 = vrot.lane.b32.xlu1 %v1773_v44, %s4867_s9  ;;  %1373 = vst.msk [vmem:[#allocation3 + $0xf0] sm:$0xff] %vm1342_vm6, %v1307_v50  ;;  %v1596_v44 = vld [vmem:[#allocation2 + $0x171] sm:$0xff] }
 0x1db   : > { %1850 = vrot.lane.b32.xlu0 %v1774_v47, %s4867_s9  ;;  %v1789_v50 = vld [vmem:[#allocation2 + $0x172] sm:$0xff] }
 0x1dc   : > { %v1305_v53 = vpop.permute.xlu1 %1304 }
 0x1dd   : > { %1372 = vst.msk [vmem:[#allocation3 + $0xe8] sm:$0xff] %vm1342_vm6, %v1305_v53  ;;  %v1441_v56 = vpop.permute.xlu0 %1440 }
 0x1de   : > { %1659 = vrot.lane.b32.xlu1 %v1582_v22, %s4866_s6  ;;  %1537 = vst.msk [vmem:[#allocation3] sm:$0xff] %vm1536_vm7, %v1441_v56  ;;  %v1406_v56 = vld [vmem:[#allocation2 + $0x198] sm:$0xff] }
 0x1df   : > { %1661 = vrot.lane.b32.xlu0 %v1583_v13, %s4866_s6 }
 0x1e0   : > { %v1309_v18 = vpop.permute.xlu1 %1308 }
 0x1e1   : > { %1374 = vst.msk [vmem:[#allocation3 + $0xf8] sm:$0xff] %vm1342_vm6, %v1309_v18  ;;  %v1445_v23 = vpop.permute.xlu0 %1444  ;;  %v1599_v18 = vld [vmem:[#allocation2 + $0x199] sm:$0xff] }
 0x1e2   : > { %1852 = vrot.lane.b32.xlu1 %v1775_v63, %s4867_s9  ;;  %1539 = vst.msk [vmem:[#allocation3 + $0x10] sm:$0xff] %vm1536_vm7, %v1445_v23 }
 0x1e3   : > { %1854 = vrot.lane.b32.xlu0 %v1776_v34, %s4867_s9  ;;  %v1407_v34 = vld [vmem:[#allocation2 + $0x1a0] sm:$0xff] }
 0x1e4   : > { %v1443_v24 = vpop.permute.xlu1 %1442 }
 0x1e5   : > { %1538 = vst.msk [vmem:[#allocation3 + $0x8] sm:$0xff] %vm1536_vm7, %v1443_v24  ;;  %v1449_v14 = vpop.permute.xlu0 %1448  ;;  %v1600_v24 = vld [vmem:[#allocation2 + $0x1a1] sm:$0xff] }
 0x1e6   : > { %1663 = vrot.lane.b32.xlu1 %v1584_v2, %s4866_s6  ;;  %1541 = vst.msk [vmem:[#allocation3 + $0x20] sm:$0xff] %vm1536_vm7, %v1449_v14 }
 0x1e7   : > { %1665 = vrot.lane.b32.xlu0 %v1585_v19, %s4866_s6 }
 0x1e8   : > { %v1447_v15 = vpop.permute.xlu1 %1446 }
 0x1e9   : > { %1540 = vst.msk [vmem:[#allocation3 + $0x18] sm:$0xff] %vm1536_vm7, %v1447_v15  ;;  %v1453_v16 = vpop.permute.xlu0 %1452 }
 0x1ea   : > { %1856 = vrot.lane.b32.xlu1 %v1777_v20, %s4867_s9  ;;  %1543 = vst.msk [vmem:[#allocation3 + $0x30] sm:$0xff] %vm1536_vm7, %v1453_v16 }
 0x1eb   : > { %1858 = vrot.lane.b32.xlu0 %v1778_v10, %s4867_s9 }
 0x1ec   : > { %v1451_v3 = vpop.permute.xlu1 %1450 }
 0x1ed   : > { %1542 = vst.msk [vmem:[#allocation3 + $0x28] sm:$0xff] %vm1536_vm7, %v1451_v3  ;;  %v1457_v12 = vpop.permute.xlu0 %1456 }
 0x1ee   : > { %1667 = vrot.lane.b32.xlu1 %v1586_v49, %s4866_s6  ;;  %1545 = vst.msk [vmem:[#allocation3 + $0x40] sm:$0xff] %vm1536_vm7, %v1457_v12 }
 0x1ef   : > { %1669 = vrot.lane.b32.xlu0 %v1587_v1, %s4866_s6 }
 0x1f0   : > { %v1455_v46 = vpop.permute.xlu1 %1454 }
 0x1f1   : > { %1544 = vst.msk [vmem:[#allocation3 + $0x38] sm:$0xff] %vm1536_vm7, %v1455_v46  ;;  %v1461_v30 = vpop.permute.xlu0 %1460 }
 0x1f2   : > { %1860 = vrot.lane.b32.xlu1 %v1779_v25, %s4867_s9  ;;  %1547 = vst.msk [vmem:[#allocation3 + $0x50] sm:$0xff] %vm1536_vm7, %v1461_v30 }
 0x1f3   : > { %1862 = vrot.lane.b32.xlu0 %v1780_v5, %s4867_s9 }
 0x1f4   : > { %v1459_v32 = vpop.permute.xlu1 %1458 }
 0x1f5   : > { %1546 = vst.msk [vmem:[#allocation3 + $0x48] sm:$0xff] %vm1536_vm7, %v1459_v32  ;;  %v1465_v39 = vpop.permute.xlu0 %1464 }
 0x1f6   : > { %1671 = vrot.lane.b32.xlu1 %v1588_v6, %s4866_s6  ;;  %1549 = vst.msk [vmem:[#allocation3 + $0x60] sm:$0xff] %vm1536_vm7, %v1465_v39 }
 0x1f7   : > { %1673 = vrot.lane.b32.xlu0 %v1589_v4, %s4866_s6 }
 0x1f8   : > { %v1463_v51 = vpop.permute.xlu1 %1462 }
 0x1f9   : > { %1548 = vst.msk [vmem:[#allocation3 + $0x58] sm:$0xff] %vm1536_vm7, %v1463_v51  ;;  %v1469_v54 = vpop.permute.xlu0 %1468 }
 0x1fa   : > { %1864 = vrot.lane.b32.xlu1 %v1781_v9, %s4867_s9  ;;  %1551 = vst.msk [vmem:[#allocation3 + $0x70] sm:$0xff] %vm1536_vm7, %v1469_v54 }
 0x1fb   : > { %1866 = vrot.lane.b32.xlu0 %v1782_v40, %s4867_s9 }
 0x1fc   : > { %v1467_v57 = vpop.permute.xlu1 %1466 }
 0x1fd   : > { %1550 = vst.msk [vmem:[#allocation3 + $0x68] sm:$0xff] %vm1536_vm7, %v1467_v57  ;;  %v1473_v59 = vpop.permute.xlu0 %1472 }
 0x1fe   : > { %1675 = vrot.lane.b32.xlu1 %v1590_v52, %s4866_s6  ;;  %1553 = vst.msk [vmem:[#allocation3 + $0x80] sm:$0xff] %vm1536_vm7, %v1473_v59 }
 0x1ff   : > { %1677 = vrot.lane.b32.xlu0 %v1591_v55, %s4866_s6 }
 0x200   : > { %v1471_v61 = vpop.permute.xlu1 %1470 }
 0x201   : > { %1552 = vst.msk [vmem:[#allocation3 + $0x78] sm:$0xff] %vm1536_vm7, %v1471_v61  ;;  %v1477_v0 = vpop.permute.xlu0 %1476 }
 0x202   : > { %1868 = vrot.lane.b32.xlu1 %v1783_v58, %s4867_s9  ;;  %1555 = vst.msk [vmem:[#allocation3 + $0x90] sm:$0xff] %vm1536_vm7, %v1477_v0 }
 0x203   : > { %1870 = vrot.lane.b32.xlu0 %v1784_v60, %s4867_s9 }
 0x204   : > { %v1475_v8 = vpop.permute.xlu1 %1474 }
 0x205   : > { %1554 = vst.msk [vmem:[#allocation3 + $0x88] sm:$0xff] %vm1536_vm7, %v1475_v8  ;;  %v1481_v48 = vpop.permute.xlu0 %1480 }
 0x206   : > { %1679 = vrot.lane.b32.xlu1 %v1592_v62, %s4866_s6  ;;  %1557 = vst.msk [vmem:[#allocation3 + $0xa0] sm:$0xff] %vm1536_vm7, %v1481_v48 }
 0x207   : > { %1681 = vrot.lane.b32.xlu0 %v1593_v7, %s4866_s6 }
 0x208   : > { %v1479_v38 = vpop.permute.xlu1 %1478 }
 0x209   : > { %1556 = vst.msk [vmem:[#allocation3 + $0x98] sm:$0xff] %vm1536_vm7, %v1479_v38  ;;  %v1485_v36 = vpop.permute.xlu0 %1484 }
 0x20a   : > { %1872 = vrot.lane.b32.xlu1 %v1785_v45, %s4867_s9  ;;  %1559 = vst.msk [vmem:[#allocation3 + $0xb0] sm:$0xff] %vm1536_vm7, %v1485_v36 }
 0x20b   : > { %1874 = vrot.lane.b32.xlu0 %v1786_v37, %s4867_s9 }
 0x20c   : > { %v1483_v28 = vpop.permute.xlu1 %1482 }
 0x20d   : > { %1558 = vst.msk [vmem:[#allocation3 + $0xa8] sm:$0xff] %vm1536_vm7, %v1483_v28  ;;  %v1489_v33 = vpop.permute.xlu0 %1488 }
 0x20e   : > { %1683 = vrot.lane.b32.xlu1 %v1594_v35, %s4866_s6  ;;  %1561 = vst.msk [vmem:[#allocation3 + $0xc0] sm:$0xff] %vm1536_vm7, %v1489_v33 }
 0x20f   : > { %1685 = vrot.lane.b32.xlu0 %v1595_v41, %s4866_s6 }
 0x210   : > { %v1487_v21 = vpop.permute.xlu1 %1486 }
 0x211   : > { %1560 = vst.msk [vmem:[#allocation3 + $0xb8] sm:$0xff] %vm1536_vm7, %v1487_v21  ;;  %v1493_v29 = vpop.permute.xlu0 %1492 }
 0x212   : > { %1876 = vrot.lane.b32.xlu1 %v1787_v42, %s4867_s9  ;;  %1563 = vst.msk [vmem:[#allocation3 + $0xd0] sm:$0xff] %vm1536_vm7, %v1493_v29 }
 0x213   : > { %1878 = vrot.lane.b32.xlu0 %v1788_v43, %s4867_s9 }
 0x214   : > { %v1491_v17 = vpop.permute.xlu1 %1490 }
 0x215   : > { %1562 = vst.msk [vmem:[#allocation3 + $0xc8] sm:$0xff] %vm1536_vm7, %v1491_v17  ;;  %v1497_v47 = vpop.permute.xlu0 %1496 }
 0x216   : > { %1687 = vrot.lane.b32.xlu1 %v1596_v44, %s4866_s6  ;;  %1565 = vst.msk [vmem:[#allocation3 + $0xe0] sm:$0xff] %vm1536_vm7, %v1497_v47 }
 0x217   : > { %1689 = vrot.lane.b32.xlu0 %v5697_v11, %s4866_s6 }
 0x218   : > { %v1495_v22 = vpop.permute.xlu1 %1494 }
 0x219   : > { %1564 = vst.msk [vmem:[#allocation3 + $0xd8] sm:$0xff] %vm1536_vm7, %v1495_v22  ;;  %v1634_v53 = vpop.permute.xlu0 %1633 }
 0x21a   : > { %1880 = vrot.lane.b32.xlu1 %v1789_v50, %s4867_s9  ;;  %1730 = vst.msk [vmem:[#allocation3] sm:$0xff] %vm1729_vm8, %v1634_v53 }
 0x21b   : > { %1882 = vrot.lane.b32.xlu0 %v5797_v26, %s4867_s9 }
 0x21c   : > { %v1499_v13 = vpop.permute.xlu1 %1498 }
 0x21d   : > { %1566 = vst.msk [vmem:[#allocation3 + $0xe8] sm:$0xff] %vm1536_vm7, %v1499_v13  ;;  %v1827_v11 = vpop.permute.xlu0 %1826 }
 0x21e   : > { %1691 = vrot.lane.b32.xlu1 %v5707_v27, %s4866_s6  ;;  %1923 = vst.msk [vmem:[#allocation3] sm:$0xff] %vm1922_vm9, %v1827_v11 }
 0x21f   : > { %1500 = vrot.lane.b32.xlu0 %v1406_v56, %s4865_s30 }
 0x220   : > { %v1636_v63 = vpop.permute.xlu1 %1635 }
 0x221   : > { %1731 = vst.msk [vmem:[#allocation3 + $0x8] sm:$0xff] %vm1729_vm8, %v1636_v63  ;;  %v1638_v26 = vpop.permute.xlu0 %1637 }
 0x222   : > { %1884 = vrot.lane.b32.xlu1 %v5807_v31, %s4867_s9  ;;  %1732 = vst.msk [vmem:[#allocation3 + $0x10] sm:$0xff] %vm1729_vm8, %v1638_v26 }
 0x223   : > { %1693 = vrot.lane.b32.xlu0 %v1599_v18, %s4866_s6 }
 0x224   : > { %v1829_v23 = vpop.permute.xlu1 %1828 }
 0x225   : > { %1924 = vst.msk [vmem:[#allocation3 + $0x8] sm:$0xff] %vm1922_vm9, %v1829_v23  ;;  %v1831_v27 = vpop.permute.xlu0 %1830  ;;  %v1955_v2 = vld [vmem:[#allocation3] sm:$0xff] }
 0x226   : > { %1502 = vrot.lane.b32.xlu1 %v1407_v34, %s4865_s30  ;;  %1925 = vst.msk [vmem:[#allocation3 + $0x10] sm:$0xff] %vm1922_vm9, %v1831_v27  ;;  %4688 = vmatprep.mubr.msk.f32.mxu0 %vm2003_vm10, %v1955_v2 }
 0x228   : > { %v1640_v31 = vpop.permute.xlu1 %1639 }
 0x229   : > { %1733 = vst.msk [vmem:[#allocation3 + $0x18] sm:$0xff] %vm1729_vm8, %v1640_v31  ;;  %v1642_v19 = vpop.permute.xlu0 %1641 }
 0x22a   : > { %1695 = vrot.lane.b32.xlu1 %v1600_v24, %s4866_s6  ;;  %1734 = vst.msk [vmem:[#allocation3 + $0x20] sm:$0xff] %vm1729_vm8, %v1642_v19 }
 0x22c   : > { %v1833_v14 = vpop.permute.xlu1 %1832  ;;  %v1956_v20 = vld [vmem:[#allocation3 + $0x8] sm:$0xff] }
 0x22d   : > { %1926 = vst.msk [vmem:[#allocation3 + $0x18] sm:$0xff] %vm1922_vm9, %v1833_v14  ;;  %4689 = vmatmul.mubr.msk.f32.vlgmr.msra.gmra.mrb[0].mxu0 %vm2003_vm10, %v1956_v20  ;;  %v1835_v15 = vpop.permute.xlu0 %1834  ;;  %v1957_v10 = vld [vmem:[#allocation3 + $0x10] sm:$0xff] }
 0x22e   : > { %1927 = vst.msk [vmem:[#allocation3 + $0x20] sm:$0xff] %vm1922_vm9, %v1835_v15  ;;  %4691 = vmatprep.mubr.msk.f32.mxu0 %vm2003_vm10, %v1957_v10  ;;  %v1792_v15 = vld [vmem:[#allocation2 + $0x19a] sm:$0xff]  ;;  %v1793_v10 = vld [vmem:[#allocation2 + $0x1a2] sm:$0xff] }
 0x22f   : > { %1886 = vrot.lane.b32.xlu0 %v1792_v15, %s4867_s9  ;;  %1888 = vrot.lane.b32.xlu1 %v1793_v10, %s4867_s9 }
 0x230   : > { %v1644_v16 = vpop.permute.xlu1 %1643 }
 0x231   : > { %1735 = vst.msk [vmem:[#allocation3 + $0x28] sm:$0xff] %vm1729_vm8, %v1644_v16  ;;  %v1646_v49 = vpop.permute.xlu0 %1645 }
 0x232   : > { %1736 = vst.msk [vmem:[#allocation3 + $0x30] sm:$0xff] %vm1729_vm8, %v1646_v49 }
 0x234   : > { %v1837_v3 = vpop.permute.xlu1 %1836  ;;  %v1958_v1 = vld [vmem:[#allocation3 + $0x18] sm:$0xff] }
 0x235   : > { %1928 = vst.msk [vmem:[#allocation3 + $0x28] sm:$0xff] %vm1922_vm9, %v1837_v3  ;;  %4692 = vmatmul.mubr.msk.f32.gmra.mrb[2].mxu0 %vm2003_vm10, %v1958_v1  ;;  %v1839_v12 = vpop.permute.xlu0 %1838  ;;  %v1959_v25 = vld [vmem:[#allocation3 + $0x20] sm:$0xff] }
 0x236   : > { %1929 = vst.msk [vmem:[#allocation3 + $0x30] sm:$0xff] %vm1922_vm9, %v1839_v12  ;;  %4694 = vmatprep.mubr.msk.f32.mxu0 %vm2003_vm10, %v1959_v25  ;;  %v2454_v25 = vld [vmem:[#allocation2 + $0x9] sm:$0xff] }
 0x237   : > { %2519 = vrot.lane.b32.xlu1 %v2454_v25, %s4860_s25 }
 0x238   : > { %v1648_v46 = vpop.permute.xlu1 %1647 }
 0x239   : > { %1737 = vst.msk [vmem:[#allocation3 + $0x38] sm:$0xff] %vm1729_vm8, %v1648_v46  ;;  %v1650_v5 = vpop.permute.xlu0 %1649  ;;  %v2453_v46 = vld [vmem:[#allocation2 + $0x1] sm:$0xff] }
 0x23a   : > { %1738 = vst.msk [vmem:[#allocation3 + $0x40] sm:$0xff] %vm1729_vm8, %v1650_v5  ;;  %2517 = vrot.lane.b32.xlu0 %v2453_v46, %s4860_s25 }
 0x23c   : > { %v1841_v30 = vpop.permute.xlu1 %1840  ;;  %v1960_v6 = vld [vmem:[#allocation3 + $0x28] sm:$0xff] }
 0x23d   : > { %1930 = vst.msk [vmem:[#allocation3 + $0x38] sm:$0xff] %vm1922_vm9, %v1841_v30  ;;  %4695 = vmatmul.mubr.msk.f32.gmra.mrb[4].mxu0 %vm2003_vm10, %v1960_v6  ;;  %v1843_v32 = vpop.permute.xlu0 %1842  ;;  %v1961_v4 = vld [vmem:[#allocation3 + $0x30] sm:$0xff] }
 0x23e   : > { %1931 = vst.msk [vmem:[#allocation3 + $0x40] sm:$0xff] %vm1922_vm9, %v1843_v32  ;;  %4697 = vmatprep.mubr.msk.f32.mxu0 %vm2003_vm10, %v1961_v4 }
 0x240   : > { %v1652_v39 = vpop.permute.xlu1 %1651 }
 0x241   : > { %1739 = vst.msk [vmem:[#allocation3 + $0x48] sm:$0xff] %vm1729_vm8, %v1652_v39  ;;  %v1654_v9 = vpop.permute.xlu0 %1653 }
 0x242   : > { %1740 = vst.msk [vmem:[#allocation3 + $0x50] sm:$0xff] %vm1729_vm8, %v1654_v9 }
 0x244   : > { %v1845_v51 = vpop.permute.xlu1 %1844  ;;  %v1962_v40 = vld [vmem:[#allocation3 + $0x38] sm:$0xff] }
 0x245   : > { %1932 = vst.msk [vmem:[#allocation3 + $0x48] sm:$0xff] %vm1922_vm9, %v1845_v51  ;;  %4698 = vmatmul.mubr.msk.f32.gmra.mrb[6].mxu0 %vm2003_vm10, %v1962_v40  ;;  %v1847_v54 = vpop.permute.xlu0 %1846  ;;  %v1963_v52 = vld [vmem:[#allocation3 + $0x40] sm:$0xff] }
 0x246   : > { %1933 = vst.msk [vmem:[#allocation3 + $0x50] sm:$0xff] %vm1922_vm9, %v1847_v54  ;;  %4700 = vmatprep.mubr.msk.f32.mxu0 %vm2003_vm10, %v1963_v52 }
 0x248   : > { %v1656_v57 = vpop.permute.xlu1 %1655 }
 0x249   : > { %1741 = vst.msk [vmem:[#allocation3 + $0x58] sm:$0xff] %vm1729_vm8, %v1656_v57  ;;  %v1658_v55 = vpop.permute.xlu0 %1657 }
 0x24a   : > { %1742 = vst.msk [vmem:[#allocation3 + $0x60] sm:$0xff] %vm1729_vm8, %v1658_v55 }
 0x24c   : > { %v1849_v59 = vpop.permute.xlu1 %1848  ;;  %v1964_v58 = vld [vmem:[#allocation3 + $0x48] sm:$0xff] }
 0x24d   : > { %1934 = vst.msk [vmem:[#allocation3 + $0x58] sm:$0xff] %vm1922_vm9, %v1849_v59  ;;  %4701 = vmatmul.mubr.msk.f32.gmra.mrb[8].mxu0 %vm2003_vm10, %v1964_v58  ;;  %v1851_v61 = vpop.permute.xlu0 %1850  ;;  %v1965_v60 = vld [vmem:[#allocation3 + $0x50] sm:$0xff] }
 0x24e   : > { %1935 = vst.msk [vmem:[#allocation3 + $0x60] sm:$0xff] %vm1922_vm9, %v1851_v61  ;;  %4703 = vmatprep.mubr.msk.f32.mxu0 %vm2003_vm10, %v1965_v60  ;;  %v2390_v60 = vld [vmem:[#allocation2 + $0x8] sm:$0xff] }
 0x24f   : > { %2422 = vst.msk [vmem:[#allocation3 + $0x8] sm:$0xff] %vm225_vm0, %v2390_v60 }
 0x250   : > { %v1660_v0 = vpop.permute.xlu1 %1659 }
 0x251   : > { %1743 = vst.msk [vmem:[#allocation3 + $0x68] sm:$0xff] %vm1729_vm8, %v1660_v0  ;;  %v1662_v62 = vpop.permute.xlu0 %1661  ;;  %v2389_v0 = vld [vmem:[#allocation2] sm:$0xff] }
 0x252   : > { %1744 = vst.msk [vmem:[#allocation3 + $0x70] sm:$0xff] %vm1729_vm8, %v1662_v62 }
 0x253   : > { %2421 = vst.msk [vmem:[#allocation3] sm:$0xff] %vm225_vm0, %v2389_v0 }
 0x254   : > { %v1853_v8 = vpop.permute.xlu1 %1852  ;;  %v1966_v7 = vld [vmem:[#allocation3 + $0x58] sm:$0xff] }
 0x255   : > { %1936 = vst.msk [vmem:[#allocation3 + $0x68] sm:$0xff] %vm1922_vm9, %v1853_v8  ;;  %4704 = vmatmul.mubr.msk.f32.gmra.mrb[10].mxu0 %vm2003_vm10, %v1966_v7  ;;  %v1855_v48 = vpop.permute.xlu0 %1854  ;;  %v1967_v45 = vld [vmem:[#allocation3 + $0x60] sm:$0xff]  ;;  %v6162_v7 = vld [vmem:[%s7225_s2] ss:$0 sm:$0xff] }
 0x256   : > { %1937 = vst.msk [vmem:[#allocation3 + $0x70] sm:$0xff] %vm1922_vm9, %v1855_v48  ;;  %4706 = vmatprep.mubr.msk.f32.mxu0 %vm2003_vm10, %v1967_v45 }
 0x258   : > { %v1664_v38 = vpop.permute.xlu1 %1663 }
 0x259   : > { %1745 = vst.msk [vmem:[#allocation3 + $0x78] sm:$0xff] %vm1729_vm8, %v1664_v38  ;;  %v1666_v37 = vpop.permute.xlu0 %1665 }
 0x25a   : > { %1746 = vst.msk [vmem:[#allocation3 + $0x80] sm:$0xff] %vm1729_vm8, %v1666_v37 }
 0x25c   : > { %v1857_v36 = vpop.permute.xlu1 %1856  ;;  %v1968_v35 = vld [vmem:[#allocation3 + $0x68] sm:$0xff] }
 0x25d   : > { %1938 = vst.msk [vmem:[#allocation3 + $0x78] sm:$0xff] %vm1922_vm9, %v1857_v36  ;;  %4707 = vmatmul.mubr.msk.f32.gmra.mrb[12].mxu0 %vm2003_vm10, %v1968_v35  ;;  %v1859_v28 = vpop.permute.xlu0 %1858  ;;  %v1969_v41 = vld [vmem:[#allocation3 + $0x70] sm:$0xff] }
 0x25e   : > { %1939 = vst.msk [vmem:[#allocation3 + $0x80] sm:$0xff] %vm1922_vm9, %v1859_v28  ;;  %4709 = vmatprep.mubr.msk.f32.mxu0 %vm2003_vm10, %v1969_v41 }
 0x260   : > { %v1668_v33 = vpop.permute.xlu1 %1667 }
 0x261   : > { %1747 = vst.msk [vmem:[#allocation3 + $0x88] sm:$0xff] %vm1729_vm8, %v1668_v33  ;;  %v1670_v42 = vpop.permute.xlu0 %1669 }
 0x262   : > { %1748 = vst.msk [vmem:[#allocation3 + $0x90] sm:$0xff] %vm1729_vm8, %v1670_v42 }
 0x264   : > { %v1861_v21 = vpop.permute.xlu1 %1860  ;;  %v1970_v43 = vld [vmem:[#allocation3 + $0x78] sm:$0xff] }
 0x265   : > { %1940 = vst.msk [vmem:[#allocation3 + $0x88] sm:$0xff] %vm1922_vm9, %v1861_v21  ;;  %4710 = vmatmul.mubr.msk.f32.gmra.mrb[14].mxu0 %vm2003_vm10, %v1970_v43  ;;  %v1863_v29 = vpop.permute.xlu0 %1862  ;;  %v1971_v44 = vld [vmem:[#allocation3 + $0x80] sm:$0xff] }
 0x266   : > { %1941 = vst.msk [vmem:[#allocation3 + $0x90] sm:$0xff] %vm1922_vm9, %v1863_v29  ;;  %4712 = vmatprep.mubr.msk.f32.mxu0 %vm2003_vm10, %v1971_v44 }
 0x268   : > { %v1672_v17 = vpop.permute.xlu1 %1671 }
 0x269   : > { %1749 = vst.msk [vmem:[#allocation3 + $0x98] sm:$0xff] %vm1729_vm8, %v1672_v17  ;;  %v1674_v47 = vpop.permute.xlu0 %1673 }
 0x26a   : > { %1750 = vst.msk [vmem:[#allocation3 + $0xa0] sm:$0xff] %vm1729_vm8, %v1674_v47 }
 0x26c   : > { %v1865_v50 = vpop.permute.xlu1 %1864  ;;  %v1972_v22 = vld [vmem:[#allocation3 + $0x88] sm:$0xff] }
 0x26d   : > { %1942 = vst.msk [vmem:[#allocation3 + $0x98] sm:$0xff] %vm1922_vm9, %v1865_v50  ;;  %4713 = vmatmul.mubr.msk.f32.gmra.mrb[16].mxu0 %vm2003_vm10, %v1972_v22  ;;  %v1867_v53 = vpop.permute.xlu0 %1866  ;;  %v1973_v13 = vld [vmem:[#allocation3 + $0x90] sm:$0xff] }
 0x26e   : > { %1943 = vst.msk [vmem:[#allocation3 + $0xa0] sm:$0xff] %vm1922_vm9, %v1867_v53  ;;  %4715 = vmatprep.mubr.msk.f32.mxu0 %vm2003_vm10, %v1973_v13 }
 0x270   : > { %v1676_v56 = vpop.permute.xlu1 %1675 }
 0x271   : > { %1751 = vst.msk [vmem:[#allocation3 + $0xa8] sm:$0xff] %vm1729_vm8, %v1676_v56  ;;  %v1678_v11 = vpop.permute.xlu0 %1677 }
 0x272   : > { %1752 = vst.msk [vmem:[#allocation3 + $0xb0] sm:$0xff] %vm1729_vm8, %v1678_v11 }
 0x274   : > { %v1869_v63 = vpop.permute.xlu1 %1868  ;;  %v1974_v18 = vld [vmem:[#allocation3 + $0x98] sm:$0xff] }
 0x275   : > { %1944 = vst.msk [vmem:[#allocation3 + $0xa8] sm:$0xff] %vm1922_vm9, %v1869_v63  ;;  %4716 = vmatmul.mubr.msk.f32.gmra.mrb[18].mxu0 %vm2003_vm10, %v1974_v18  ;;  %v1871_v26 = vpop.permute.xlu0 %1870  ;;  %v1975_v34 = vld [vmem:[#allocation3 + $0xa0] sm:$0xff] }
 0x276   : > { %1945 = vst.msk [vmem:[#allocation3 + $0xb0] sm:$0xff] %vm1922_vm9, %v1871_v26  ;;  %4718 = vmatprep.mubr.msk.f32.mxu0 %vm2003_vm10, %v1975_v34 }
 0x278   : > { %v1680_v23 = vpop.permute.xlu1 %1679 }
 0x279   : > { %1753 = vst.msk [vmem:[#allocation3 + $0xb8] sm:$0xff] %vm1729_vm8, %v1680_v23  ;;  %v1682_v27 = vpop.permute.xlu0 %1681 }
 0x27a   : > { %1754 = vst.msk [vmem:[#allocation3 + $0xc0] sm:$0xff] %vm1729_vm8, %v1682_v27 }
 0x27c   : > { %v1873_v2 = vpop.permute.xlu1 %1872  ;;  %v1976_v24 = vld [vmem:[#allocation3 + $0xa8] sm:$0xff] }
 0x27d   : > { %1946 = vst.msk [vmem:[#allocation3 + $0xb8] sm:$0xff] %vm1922_vm9, %v1873_v2  ;;  %4719 = vmatmul.mubr.msk.f32.gmra.mrb[20].mxu0 %vm2003_vm10, %v1976_v24  ;;  %v1875_v31 = vpop.permute.xlu0 %1874  ;;  %v1977_v19 = vld [vmem:[#allocation3 + $0xb0] sm:$0xff] }
 0x27e   : > { %1947 = vst.msk [vmem:[#allocation3 + $0xc0] sm:$0xff] %vm1922_vm9, %v1875_v31  ;;  %4721 = vmatprep.mubr.msk.f32.mxu0 %vm2003_vm10, %v1977_v19 }
 0x280   : > { %v1684_v14 = vpop.permute.xlu1 %1683 }
 0x281   : > { %1755 = vst.msk [vmem:[#allocation3 + $0xc8] sm:$0xff] %vm1729_vm8, %v1684_v14  ;;  %v1686_v20 = vpop.permute.xlu0 %1685 }
 0x282   : > { %1756 = vst.msk [vmem:[#allocation3 + $0xd0] sm:$0xff] %vm1729_vm8, %v1686_v20 }
 0x284   : > { %v1877_v16 = vpop.permute.xlu1 %1876  ;;  %v1978_v49 = vld [vmem:[#allocation3 + $0xb8] sm:$0xff] }
 0x285   : > { %1948 = vst.msk [vmem:[#allocation3 + $0xc8] sm:$0xff] %vm1922_vm9, %v1877_v16  ;;  %4722 = vmatmul.mubr.msk.f32.gmra.mrb[22].mxu0 %vm2003_vm10, %v1978_v49  ;;  %v1879_v3 = vpop.permute.xlu0 %1878  ;;  %v1979_v1 = vld [vmem:[#allocation3 + $0xc0] sm:$0xff] }
 0x286   : > { %1949 = vst.msk [vmem:[#allocation3 + $0xd0] sm:$0xff] %vm1922_vm9, %v1879_v3  ;;  %4724 = vmatprep.mubr.msk.f32.mxu0 %vm2003_vm10, %v1979_v1 }
 0x288   : > { %v1688_v12 = vpop.permute.xlu1 %1687 }
 0x289   : > { %1757 = vst.msk [vmem:[#allocation3 + $0xd8] sm:$0xff] %vm1729_vm8, %v1688_v12  ;;  %v1690_v5 = vpop.permute.xlu0 %1689 }
 0x28a   : > { %1758 = vst.msk [vmem:[#allocation3 + $0xe0] sm:$0xff] %vm1729_vm8, %v1690_v5 }
 0x28c   : > { %v1881_v30 = vpop.permute.xlu1 %1880  ;;  %v1980_v6 = vld [vmem:[#allocation3 + $0xc8] sm:$0xff] }
 0x28d   : > { %1950 = vst.msk [vmem:[#allocation3 + $0xd8] sm:$0xff] %vm1922_vm9, %v1881_v30  ;;  %4725 = vmatmul.mubr.msk.f32.gmra.mrb[24].mxu0 %vm2003_vm10, %v1980_v6  ;;  %v1883_v32 = vpop.permute.xlu0 %1882  ;;  %v1981_v4 = vld [vmem:[#allocation3 + $0xd0] sm:$0xff] }
 0x28e   : > { %1951 = vst.msk [vmem:[#allocation3 + $0xe0] sm:$0xff] %vm1922_vm9, %v1883_v32  ;;  %4727 = vmatprep.mubr.msk.f32.mxu0 %vm2003_vm10, %v1981_v4 }
 0x290   : > { %v1692_v39 = vpop.permute.xlu1 %1691 }
 0x291   : > { %1759 = vst.msk [vmem:[#allocation3 + $0xe8] sm:$0xff] %vm1729_vm8, %v1692_v39  ;;  %v1501_v52 = vpop.permute.xlu0 %1500 }
 0x292   : > { %1567 = vst.msk [vmem:[#allocation3 + $0xf0] sm:$0xff] %vm1536_vm7, %v1501_v52 }
 0x294   : > { %v1885_v9 = vpop.permute.xlu1 %1884  ;;  %v1982_v51 = vld [vmem:[#allocation3 + $0xd8] sm:$0xff] }
 0x295   : > { %1952 = vst.msk [vmem:[#allocation3 + $0xe8] sm:$0xff] %vm1922_vm9, %v1885_v9  ;;  %4728 = vmatmul.mubr.msk.f32.gmra.mrb[26].mxu0 %vm2003_vm10, %v1982_v51  ;;  %v1983_v40 = vld [vmem:[#allocation3 + $0xe0] sm:$0xff]  ;;  %v1694_v55 = vpop.permute.xlu0 %1693 }
 0x296   : > { %4730 = vmatprep.mubr.msk.f32.mxu0 %vm2003_vm10, %v1983_v40  ;;  %1760 = vst.msk [vmem:[#allocation3 + $0xf0] sm:$0xff] %vm1729_vm8, %v1694_v55 }
 0x298   : > { %v1503_v57 = vpop.permute.xlu1 %1502 }
 0x299   : > { %1568 = vst.msk [vmem:[#allocation3 + $0xf8] sm:$0xff] %vm1536_vm7, %v1503_v57 }
 0x29c   : > { %v1984_v54 = vld [vmem:[#allocation3 + $0xe8] sm:$0xff]  ;;  %v1696_v59 = vpop.permute.xlu1 %1695 }
 0x29d   : > { %4731 = vmatmul.mubr.msk.f32.gmra.mrb[28].mxu0 %vm2003_vm10, %v1984_v54  ;;  %1761 = vst.msk [vmem:[#allocation3 + $0xf8] sm:$0xff] %vm1729_vm8, %v1696_v59 }
 0x2a1   : > { %v1887_v58 = vpop.permute.xlu0 %1886  ;;  %v1889_v61 = vpop.permute.xlu1 %1888 }
 0x2a2   : > { %1953 = vst.msk [vmem:[#allocation3 + $0xf0] sm:$0xff] %vm1922_vm9, %v1887_v58  ;;  %1954 = vst.msk [vmem:[#allocation3 + $0xf8] sm:$0xff] %vm1922_vm9, %v1889_v61 }
 0x2a9   : > { %v2520_v62 = vpop.permute.xlu1 %2519  ;;  %v1985_v48 = vld [vmem:[#allocation3 + $0xf0] sm:$0xff]  ;;  %v1986_v45 = vld [vmem:[#allocation3 + $0xf8] sm:$0xff] }
 0x2aa   : > { %2614 = vst.msk [vmem:[#allocation3 + $0x8] sm:$0xff] %vm570_vm2, %v2520_v62  ;;  %4733 = vmatprep.mubr.msk.f32.mxu0 %vm2003_vm10, %v1985_v48 }
 0x2ab   : > { %4734 = vmatmul.mubr.msk.f32.gmra.mrb[30].mxu0 %vm2003_vm10, %v1986_v45 }
 0x2ac   : > { %v2518_v8 = vpop.permute.xlu0 %2517 }
 0x2ad   : > { %2613 = vst.msk [vmem:[#allocation3] sm:$0xff] %vm570_vm2, %v2518_v8 }
 0x300   : > { %v4690_v38 = vpop.f32.mrb[0].mxu0 }
 0x301   : > { %v2172_v37 = vadd.f32 %v4690_v38, %v6162_v7  ;;  %v2166_v36 = vpop.f32.mrb[1].mxu0 }
 0x302   : > { %v2167_v35 = vadd.f32 %v6162_v7, %v2166_v36 }
 0x303   : > { %v2326_v28 = vmax.f32 %v2172_v37, 0.0 }
 0x304   : > { %v2325_v41 = vmax.f32 %v2167_v35, 0.0 }
 0x305   : > { %2358 = vst.msk [vmem:[#allocation2 + $0x21] sm:$0xff] %vm225_vm0, %v2326_v28 }
 0x306   : > { %2357 = vst.msk [vmem:[#allocation2 + $0x19] sm:$0xff] %vm225_vm0, %v2325_v41 }
 0x308   : > { %v4693_v33 = vpop.f32.mrb[2].mxu0 }
 0x309   : > { %v2182_v42 = vadd.f32 %v4693_v33, %v6162_v7  ;;  %v2176_v21 = vpop.f32.mrb[3].mxu0 }
 0x30a   : > { %v2177_v43 = vadd.f32 %v6162_v7, %v2176_v21 }
 0x30b   : > { %v2328_v29 = vmax.f32 %v2182_v42, 0.0 }
 0x30c   : > { %v2327_v44 = vmax.f32 %v2177_v43, 0.0  ;;  %v6172_v17 = vld [vmem:[#allocation2 + $0x21] sm:$0xff] }
 0x30d   : > { %2360 = vst.msk [vmem:[#allocation2 + $0x39] sm:$0xff] %vm225_vm0, %v2328_v29  ;;  %2523 = vrot.lane.b32.xlu1 %v6172_v17, %s4860_s25  ;;  %v6177_v47 = vld [vmem:[#allocation2 + $0x19] sm:$0xff] }
 0x30e   : > { %v6179_v50 = vld [vmem:[#allocation2 + $0x20] sm:$0xff]  ;;  %v6181_v22 = vld [vmem:[#allocation2 + $0x18] sm:$0xff]  ;;  %2359 = vst.msk [vmem:[#allocation2 + $0x31] sm:$0xff] %vm225_vm0, %v2327_v44  ;;  %2521 = vrot.lane.b32.xlu0 %v6177_v47, %s4860_s25 }
 0x30f   : > { %2424 = vst.msk [vmem:[#allocation3 + $0x18] sm:$0xff] %vm225_vm0, %v6179_v50  ;;  %2423 = vst.msk [vmem:[#allocation3 + $0x10] sm:$0xff] %vm225_vm0, %v6181_v22 }
 0x310   : > { %v4696_v53 = vpop.f32.mrb[4].mxu0 }
 0x311   : > { %v2192_v13 = vadd.f32 %v4696_v53, %v6162_v7  ;;  %v2186_v56 = vpop.f32.mrb[5].mxu0 }
 0x312   : > { %v2187_v11 = vadd.f32 %v6162_v7, %v2186_v56 }
 0x313   : > { %v2330_v63 = vmax.f32 %v2192_v13, 0.0 }
 0x314   : > { %v2329_v18 = vmax.f32 %v2187_v11, 0.0  ;;  %v6192_v26 = vld [vmem:[#allocation2 + $0x39] sm:$0xff] }
 0x315   : > { %2362 = vst.msk [vmem:[#allocation2 + $0x51] sm:$0xff] %vm225_vm0, %v2330_v63  ;;  %2527 = vrot.lane.b32.xlu1 %v6192_v26, %s4860_s25  ;;  %v6197_v34 = vld [vmem:[#allocation2 + $0x31] sm:$0xff] }
 0x316   : > { %v6199_v23 = vld [vmem:[#allocation2 + $0x38] sm:$0xff]  ;;  %v6201_v27 = vld [vmem:[#allocation2 + $0x30] sm:$0xff]  ;;  %2361 = vst.msk [vmem:[#allocation2 + $0x49] sm:$0xff] %vm225_vm0, %v2329_v18  ;;  %2525 = vrot.lane.b32.xlu0 %v6197_v34, %s4860_s25 }
 0x317   : > { %2426 = vst.msk [vmem:[#allocation3 + $0x28] sm:$0xff] %vm225_vm0, %v6199_v23  ;;  %2425 = vst.msk [vmem:[#allocation3 + $0x20] sm:$0xff] %vm225_vm0, %v6201_v27 }
 0x318   : > { %v4699_v2 = vpop.f32.mrb[6].mxu0 }
 0x319   : > { %v2202_v24 = vadd.f32 %v4699_v2, %v6162_v7  ;;  %v2196_v31 = vpop.f32.mrb[7].mxu0 }
 0x31a   : > { %v2197_v19 = vadd.f32 %v6162_v7, %v2196_v31 }
 0x31b   : > { %v2332_v14 = vmax.f32 %v2202_v24, 0.0 }
 0x31c   : > { %v2331_v20 = vmax.f32 %v2197_v19, 0.0  ;;  %v6212_v15 = vld [vmem:[#allocation2 + $0x51] sm:$0xff] }
 0x31d   : > { %2364 = vst.msk [vmem:[#allocation2 + $0x69] sm:$0xff] %vm225_vm0, %v2332_v14  ;;  %2531 = vrot.lane.b32.xlu1 %v6212_v15, %s4860_s25  ;;  %v6217_v10 = vld [vmem:[#allocation2 + $0x49] sm:$0xff] }
 0x31e   : > { %v6219_v16 = vld [vmem:[#allocation2 + $0x50] sm:$0xff]  ;;  %2363 = vst.msk [vmem:[#allocation2 + $0x61] sm:$0xff] %vm225_vm0, %v2331_v20  ;;  %2529 = vrot.lane.b32.xlu0 %v6217_v10, %s4860_s25  ;;  %v6226_v49 = vld [vmem:[#allocation2 + $0x48] sm:$0xff] }
 0x31f   : > { %2428 = vst.msk [vmem:[#allocation3 + $0x38] sm:$0xff] %vm225_vm0, %v6219_v16  ;;  %2427 = vst.msk [vmem:[#allocation3 + $0x30] sm:$0xff] %vm225_vm0, %v6226_v49 }
 0x320   : > { %v4702_v3 = vpop.f32.mrb[8].mxu0 }
 0x321   : > { %v2212_v1 = vadd.f32 %v4702_v3, %v6162_v7  ;;  %v2206_v12 = vpop.f32.mrb[9].mxu0 }
 0x322   : > { %v2207_v25 = vadd.f32 %v6162_v7, %v2206_v12 }
 0x323   : > { %v2334_v46 = vmax.f32 %v2212_v1, 0.0 }
 0x324   : > { %v2333_v5 = vmax.f32 %v2207_v25, 0.0  ;;  %v6232_v30 = vld [vmem:[#allocation2 + $0x69] sm:$0xff] }
 0x325   : > { %2366 = vst.msk [vmem:[#allocation2 + $0x81] sm:$0xff] %vm225_vm0, %v2334_v46  ;;  %2535 = vrot.lane.b32.xlu1 %v6232_v30, %s4860_s25  ;;  %v6237_v6 = vld [vmem:[#allocation2 + $0x61] sm:$0xff] }
 0x326   : > { %v6239_v32 = vld [vmem:[#allocation2 + $0x68] sm:$0xff]  ;;  %2365 = vst.msk [vmem:[#allocation2 + $0x79] sm:$0xff] %vm225_vm0, %v2333_v5  ;;  %2533 = vrot.lane.b32.xlu0 %v6237_v6, %s4860_s25  ;;  %v6246_v4 = vld [vmem:[#allocation2 + $0x60] sm:$0xff] }
 0x327   : > { %2430 = vst.msk [vmem:[#allocation3 + $0x48] sm:$0xff] %vm225_vm0, %v6239_v32  ;;  %2429 = vst.msk [vmem:[#allocation3 + $0x40] sm:$0xff] %vm225_vm0, %v6246_v4 }
 0x328   : > { %v4705_v39 = vpop.f32.mrb[10].mxu0 }
 0x329   : > { %v2222_v9 = vadd.f32 %v4705_v39, %v6162_v7  ;;  %v2216_v51 = vpop.f32.mrb[11].mxu0 }
 0x32a   : > { %v2217_v40 = vadd.f32 %v6162_v7, %v2216_v51 }
 0x32b   : > { %v2336_v54 = vmax.f32 %v2222_v9, 0.0 }
 0x32c   : > { %v2335_v52 = vmax.f32 %v2217_v40, 0.0  ;;  %v6252_v57 = vld [vmem:[#allocation2 + $0x81] sm:$0xff] }
 0x32d   : > { %2368 = vst.msk [vmem:[#allocation2 + $0x99] sm:$0xff] %vm225_vm0, %v2336_v54  ;;  %2539 = vrot.lane.b32.xlu1 %v6252_v57, %s4860_s25  ;;  %v6257_v55 = vld [vmem:[#allocation2 + $0x79] sm:$0xff] }
 0x32e   : > { %v6259_v59 = vld [vmem:[#allocation2 + $0x80] sm:$0xff]  ;;  %2367 = vst.msk [vmem:[#allocation2 + $0x91] sm:$0xff] %vm225_vm0, %v2335_v52  ;;  %2537 = vrot.lane.b32.xlu0 %v6257_v55, %s4860_s25  ;;  %v6266_v58 = vld [vmem:[#allocation2 + $0x78] sm:$0xff] }
 0x32f   : > { %2432 = vst.msk [vmem:[#allocation3 + $0x58] sm:$0xff] %vm225_vm0, %v6259_v59  ;;  %2431 = vst.msk [vmem:[#allocation3 + $0x50] sm:$0xff] %vm225_vm0, %v6266_v58 }
 0x330   : > { %v4708_v61 = vpop.f32.mrb[12].mxu0 }
 0x331   : > { %v2232_v60 = vadd.f32 %v4708_v61, %v6162_v7  ;;  %v2226_v0 = vpop.f32.mrb[13].mxu0 }
 0x332   : > { %v2227_v62 = vadd.f32 %v6162_v7, %v2226_v0 }
 0x333   : > { %v2338_v8 = vmax.f32 %v2232_v60, 0.0 }
 0x334   : > { %v2337_v48 = vmax.f32 %v2227_v62, 0.0  ;;  %v2466_v45 = vld [vmem:[#allocation2 + $0x99] sm:$0xff] }
 0x335   : > { %2370 = vst.msk [vmem:[#allocation2 + $0xb1] sm:$0xff] %vm225_vm0, %v2338_v8  ;;  %2543 = vrot.lane.b32.xlu1 %v2466_v45, %s4860_s25  ;;  %v6274_v38 = vld [vmem:[#allocation2 + $0x91] sm:$0xff] }
 0x336   : > { %v6276_v37 = vld [vmem:[#allocation2 + $0x98] sm:$0xff]  ;;  %2369 = vst.msk [vmem:[#allocation2 + $0xa9] sm:$0xff] %vm225_vm0, %v2337_v48  ;;  %2541 = vrot.lane.b32.xlu0 %v6274_v38, %s4860_s25  ;;  %v6283_v36 = vld [vmem:[#allocation2 + $0x90] sm:$0xff] }
 0x337   : > { %2434 = vst.msk [vmem:[#allocation3 + $0x68] sm:$0xff] %vm225_vm0, %v6276_v37  ;;  %2433 = vst.msk [vmem:[#allocation3 + $0x60] sm:$0xff] %vm225_vm0, %v6283_v36 }
 0x338   : > { %v4711_v35 = vpop.f32.mrb[14].mxu0 }
 0x339   : > { %v2242_v28 = vadd.f32 %v4711_v35, %v6162_v7  ;;  %v2236_v41 = vpop.f32.mrb[15].mxu0 }
 0x33a   : > { %v2237_v33 = vadd.f32 %v6162_v7, %v2236_v41 }
 0x33b   : > { %v2340_v42 = vmax.f32 %v2242_v28, 0.0 }
 0x33c   : > { %v2339_v21 = vmax.f32 %v2237_v33, 0.0  ;;  %v2468_v43 = vld [vmem:[#allocation2 + $0xb1] sm:$0xff] }
 0x33d   : > { %2372 = vst.msk [vmem:[#allocation2 + $0xc9] sm:$0xff] %vm225_vm0, %v2340_v42  ;;  %2547 = vrot.lane.b32.xlu1 %v2468_v43, %s4860_s25  ;;  %v2467_v29 = vld [vmem:[#allocation2 + $0xa9] sm:$0xff] }
 0x33e   : > { %v6291_v44 = vld [vmem:[#allocation2 + $0xb0] sm:$0xff]  ;;  %2371 = vst.msk [vmem:[#allocation2 + $0xc1] sm:$0xff] %vm225_vm0, %v2339_v21  ;;  %2545 = vrot.lane.b32.xlu0 %v2467_v29, %s4860_s25  ;;  %v6297_v53 = vld [vmem:[#allocation2 + $0xa8] sm:$0xff] }
 0x33f   : > { %2436 = vst.msk [vmem:[#allocation3 + $0x78] sm:$0xff] %vm225_vm0, %v6291_v44  ;;  %2435 = vst.msk [vmem:[#allocation3 + $0x70] sm:$0xff] %vm225_vm0, %v6297_v53 }
 0x340   : > { %v4714_v13 = vpop.f32.mrb[16].mxu0 }
 0x341   : > { %v2252_v56 = vadd.f32 %v4714_v13, %v6162_v7  ;;  %v2246_v11 = vpop.f32.mrb[17].mxu0 }
 0x342   : > { %v2247_v63 = vadd.f32 %v6162_v7, %v2246_v11 }
 0x343   : > { %v2342_v18 = vmax.f32 %v2252_v56, 0.0 }
 0x344   : > { %v2341_v2 = vmax.f32 %v2247_v63, 0.0  ;;  %v2470_v24 = vld [vmem:[#allocation2 + $0xc9] sm:$0xff] }
 0x345   : > { %2374 = vst.msk [vmem:[#allocation2 + $0xe1] sm:$0xff] %vm225_vm0, %v2342_v18  ;;  %2551 = vrot.lane.b32.xlu1 %v2470_v24, %s4860_s25  ;;  %v2469_v31 = vld [vmem:[#allocation2 + $0xc1] sm:$0xff] }
 0x346   : > { %v6305_v19 = vld [vmem:[#allocation2 + $0xc8] sm:$0xff]  ;;  %2373 = vst.msk [vmem:[#allocation2 + $0xd9] sm:$0xff] %vm225_vm0, %v2341_v2  ;;  %2549 = vrot.lane.b32.xlu0 %v2469_v31, %s4860_s25  ;;  %v6311_v14 = vld [vmem:[#allocation2 + $0xc0] sm:$0xff] }
 0x347   : > { %2438 = vst.msk [vmem:[#allocation3 + $0x88] sm:$0xff] %vm225_vm0, %v6305_v19  ;;  %2437 = vst.msk [vmem:[#allocation3 + $0x80] sm:$0xff] %vm225_vm0, %v6311_v14 }
 0x348   : > { %v4717_v20 = vpop.f32.mrb[18].mxu0 }
 0x349   : > { %v2262_v3 = vadd.f32 %v4717_v20, %v6162_v7  ;;  %v2256_v1 = vpop.f32.mrb[19].mxu0 }
 0x34a   : > { %v2257_v12 = vadd.f32 %v6162_v7, %v2256_v1 }
 0x34b   : > { %v2344_v25 = vmax.f32 %v2262_v3, 0.0 }
 0x34c   : > { %v2343_v46 = vmax.f32 %v2257_v12, 0.0  ;;  %v2472_v5 = vld [vmem:[#allocation2 + $0xe1] sm:$0xff] }
 0x34d   : > { %2376 = vst.msk [vmem:[#allocation2 + $0xf9] sm:$0xff] %vm225_vm0, %v2344_v25  ;;  %2555 = vrot.lane.b32.xlu1 %v2472_v5, %s4860_s25  ;;  %v2471_v39 = vld [vmem:[#allocation2 + $0xd9] sm:$0xff] }
 0x34e   : > { %v6319_v9 = vld [vmem:[#allocation2 + $0xe0] sm:$0xff]  ;;  %2375 = vst.msk [vmem:[#allocation2 + $0xf1] sm:$0xff] %vm225_vm0, %v2343_v46  ;;  %2553 = vrot.lane.b32.xlu0 %v2471_v39, %s4860_s25  ;;  %v6325_v51 = vld [vmem:[#allocation2 + $0xd8] sm:$0xff] }
 0x34f   : > { %2440 = vst.msk [vmem:[#allocation3 + $0x98] sm:$0xff] %vm225_vm0, %v6319_v9  ;;  %2439 = vst.msk [vmem:[#allocation3 + $0x90] sm:$0xff] %vm225_vm0, %v6325_v51 }
 0x350   : > { %v4720_v40 = vpop.f32.mrb[20].mxu0 }
 0x351   : > { %v2272_v54 = vadd.f32 %v4720_v40, %v6162_v7  ;;  %v2266_v52 = vpop.f32.mrb[21].mxu0 }
 0x352   : > { %v2267_v61 = vadd.f32 %v6162_v7, %v2266_v52 }
 0x353   : > { %v2346_v60 = vmax.f32 %v2272_v54, 0.0 }
 0x354   : > { %v2345_v0 = vmax.f32 %v2267_v61, 0.0  ;;  %v2474_v62 = vld [vmem:[#allocation2 + $0xf9] sm:$0xff] }
 0x355   : > { %2378 = vst.msk [vmem:[#allocation2 + $0x111] sm:$0xff] %vm225_vm0, %v2346_v60  ;;  %2559 = vrot.lane.b32.xlu1 %v2474_v62, %s4860_s25  ;;  %v2473_v8 = vld [vmem:[#allocation2 + $0xf1] sm:$0xff] }
 0x356   : > { %v6333_v48 = vld [vmem:[#allocation2 + $0xf8] sm:$0xff]  ;;  %2377 = vst.msk [vmem:[#allocation2 + $0x109] sm:$0xff] %vm225_vm0, %v2345_v0  ;;  %2557 = vrot.lane.b32.xlu0 %v2473_v8, %s4860_s25  ;;  %v6339_v45 = vld [vmem:[#allocation2 + $0xf0] sm:$0xff] }
 0x357   : > { %2442 = vst.msk [vmem:[#allocation3 + $0xa8] sm:$0xff] %vm225_vm0, %v6333_v48  ;;  %2441 = vst.msk [vmem:[#allocation3 + $0xa0] sm:$0xff] %vm225_vm0, %v6339_v45 }
 0x358   : > { %v4723_v35 = vpop.f32.mrb[22].mxu0 }
 0x359   : > { %v2282_v28 = vadd.f32 %v4723_v35, %v6162_v7  ;;  %v2276_v41 = vpop.f32.mrb[23].mxu0 }
 0x35a   : > { %v2277_v33 = vadd.f32 %v6162_v7, %v2276_v41 }
 0x35b   : > { %v2348_v42 = vmax.f32 %v2282_v28, 0.0 }
 0x35c   : > { %v2347_v21 = vmax.f32 %v2277_v33, 0.0  ;;  %v2476_v43 = vld [vmem:[#allocation2 + $0x111] sm:$0xff] }
 0x35d   : > { %2380 = vst.msk [vmem:[#allocation2 + $0x129] sm:$0xff] %vm225_vm0, %v2348_v42  ;;  %2563 = vrot.lane.b32.xlu1 %v2476_v43, %s4860_s25  ;;  %v2475_v29 = vld [vmem:[#allocation2 + $0x109] sm:$0xff] }
 0x35e   : > { %v6347_v13 = vld [vmem:[#allocation2 + $0x110] sm:$0xff]  ;;  %2379 = vst.msk [vmem:[#allocation2 + $0x121] sm:$0xff] %vm225_vm0, %v2347_v21  ;;  %2561 = vrot.lane.b32.xlu0 %v2475_v29, %s4860_s25  ;;  %v6353_v56 = vld [vmem:[#allocation2 + $0x108] sm:$0xff] }
 0x35f   : > { %2444 = vst.msk [vmem:[#allocation3 + $0xb8] sm:$0xff] %vm225_vm0, %v6347_v13  ;;  %2443 = vst.msk [vmem:[#allocation3 + $0xb0] sm:$0xff] %vm225_vm0, %v6353_v56 }
 0x360   : > { %v4726_v11 = vpop.f32.mrb[24].mxu0 }
 0x361   : > { %v2292_v63 = vadd.f32 %v4726_v11, %v6162_v7  ;;  %v2286_v18 = vpop.f32.mrb[25].mxu0 }
 0x362   : > { %v2287_v2 = vadd.f32 %v6162_v7, %v2286_v18 }
 0x363   : > { %v2350_v24 = vmax.f32 %v2292_v63, 0.0 }
 0x364   : > { %v2349_v31 = vmax.f32 %v2287_v2, 0.0  ;;  %v2478_v20 = vld [vmem:[#allocation2 + $0x129] sm:$0xff] }
 0x365   : > { %2382 = vst.msk [vmem:[#allocation2 + $0x141] sm:$0xff] %vm225_vm0, %v2350_v24  ;;  %2567 = vrot.lane.b32.xlu1 %v2478_v20, %s4860_s25  ;;  %v2477_v3 = vld [vmem:[#allocation2 + $0x121] sm:$0xff]  ;;  %v2646_v2 = vld [vmem:[#allocation2 + $0xa] sm:$0xff] }
 0x366   : > { %v2414_v1 = vld [vmem:[#allocation2 + $0x128] sm:$0xff]  ;;  %2381 = vst.msk [vmem:[#allocation2 + $0x139] sm:$0xff] %vm225_vm0, %v2349_v31  ;;  %2565 = vrot.lane.b32.xlu0 %v2477_v3, %s4860_s25  ;;  %v6364_v12 = vld [vmem:[#allocation2 + $0x120] sm:$0xff] }
 0x367   : > { %2446 = vst.msk [vmem:[#allocation3 + $0xc8] sm:$0xff] %vm225_vm0, %v2414_v1  ;;  %2445 = vst.msk [vmem:[#allocation3 + $0xc0] sm:$0xff] %vm225_vm0, %v6364_v12  ;;  %v2645_v20 = vld [vmem:[#allocation2 + $0x2] sm:$0xff] }
 0x368   : > { %v4729_v25 = vpop.f32.mrb[26].mxu0  ;;  %v6392_v1 = vld [vmem:[#allocation2 + $0x22] sm:$0xff] }
 0x369   : > { %v2302_v46 = vadd.f32 %v4729_v25, %v6162_v7  ;;  %v2296_v5 = vpop.f32.mrb[27].mxu0  ;;  %v6396_v25 = vld [vmem:[#allocation2 + $0x1a] sm:$0xff] }
 0x36a   : > { %v2297_v39 = vadd.f32 %v6162_v7, %v2296_v5 }
 0x36b   : > { %v2352_v40 = vmax.f32 %v2302_v46, 0.0 }
 0x36c   : > { %v2351_v54 = vmax.f32 %v2297_v39, 0.0  ;;  %v2480_v52 = vld [vmem:[#allocation2 + $0x141] sm:$0xff] }
 0x36d   : > { %2384 = vst.msk [vmem:[#allocation2 + $0x159] sm:$0xff] %vm225_vm0, %v2352_v40  ;;  %2571 = vrot.lane.b32.xlu1 %v2480_v52, %s4860_s25  ;;  %v2479_v61 = vld [vmem:[#allocation2 + $0x139] sm:$0xff]  ;;  %v6414_v52 = vld [vmem:[#allocation2 + $0x4a] sm:$0xff] }
 0x36e   : > { %v2416_v60 = vld [vmem:[#allocation2 + $0x140] sm:$0xff]  ;;  %2383 = vst.msk [vmem:[#allocation2 + $0x151] sm:$0xff] %vm225_vm0, %v2351_v54  ;;  %2569 = vrot.lane.b32.xlu0 %v2479_v61, %s4860_s25  ;;  %v2415_v0 = vld [vmem:[#allocation2 + $0x138] sm:$0xff] }
 0x36f   : > { %2448 = vst.msk [vmem:[#allocation3 + $0xd8] sm:$0xff] %vm225_vm0, %v2416_v60  ;;  %2447 = vst.msk [vmem:[#allocation3 + $0xd0] sm:$0xff] %vm225_vm0, %v2415_v0  ;;  %v6401_v39 = vld [vmem:[#allocation2 + $0x3a] sm:$0xff]  ;;  %v6406_v40 = vld [vmem:[#allocation2 + $0x32] sm:$0xff] }
 0x370   : > { %v4732_v62 = vpop.f32.mrb[28].mxu0  ;;  %v6410_v54 = vld [vmem:[#allocation2 + $0x52] sm:$0xff]  ;;  %v6419_v0 = vld [vmem:[#allocation2 + $0x6a] sm:$0xff] }
 0x371   : > { %v2312_v8 = vadd.f32 %v4732_v62, %v6162_v7  ;;  %v2306_v35 = vpop.f32.mrb[29].mxu0  ;;  %v6424_v62 = vld [vmem:[#allocation2 + $0x62] sm:$0xff] }
 0x372   : > { %v2307_v28 = vadd.f32 %v6162_v7, %v2306_v35  ;;  %v6432_v35 = vld [vmem:[#allocation2 + $0x7a] sm:$0xff] }
 0x373   : > { %v2354_v41 = vmax.f32 %v2312_v8, 0.0  ;;  %v6428_v8 = vld [vmem:[#allocation2 + $0x82] sm:$0xff] }
 0x374   : > { %v2353_v33 = vmax.f32 %v2307_v28, 0.0  ;;  %v2482_v42 = vld [vmem:[#allocation2 + $0x159] sm:$0xff] }
 0x375   : > { %2386 = vst.msk [vmem:[#allocation2 + $0x171] sm:$0xff] %vm225_vm0, %v2354_v41  ;;  %2575 = vrot.lane.b32.xlu1 %v2482_v42, %s4860_s25  ;;  %v2481_v21 = vld [vmem:[#allocation2 + $0x151] sm:$0xff] }
 0x376   : > { %v2418_v43 = vld [vmem:[#allocation2 + $0x158] sm:$0xff]  ;;  %2385 = vst.msk [vmem:[#allocation2 + $0x169] sm:$0xff] %vm225_vm0, %v2353_v33  ;;  %2573 = vrot.lane.b32.xlu0 %v2481_v21, %s4860_s25  ;;  %v2417_v29 = vld [vmem:[#allocation2 + $0x150] sm:$0xff] }
 0x377   : > { %2450 = vst.msk [vmem:[#allocation3 + $0xe8] sm:$0xff] %vm225_vm0, %v2418_v43  ;;  %2449 = vst.msk [vmem:[#allocation3 + $0xe0] sm:$0xff] %vm225_vm0, %v2417_v29  ;;  %v6437_v33 = vld [vmem:[#allocation2 + $0x9a] sm:$0xff]  ;;  %v6442_v42 = vld [vmem:[#allocation2 + $0x92] sm:$0xff] }
 0x378   : > { %v6446_v21 = vld [vmem:[#allocation2 + $0xb2] sm:$0xff]  ;;  %v6450_v43 = vld [vmem:[#allocation2 + $0xaa] sm:$0xff] }
 0x37c   : > { %v2484_v11 = vld [vmem:[#allocation2 + $0x171] sm:$0xff] }
 0x37d   : > { %2579 = vrot.lane.b32.xlu1 %v2484_v11, %s4860_s25  ;;  %v2483_v63 = vld [vmem:[#allocation2 + $0x169] sm:$0xff] }
 0x37e   : > { %v2420_v18 = vld [vmem:[#allocation2 + $0x170] sm:$0xff]  ;;  %2577 = vrot.lane.b32.xlu0 %v2483_v63, %s4860_s25  ;;  %v2419_v24 = vld [vmem:[#allocation2 + $0x168] sm:$0xff] }
 0x37f   : > { %2452 = vst.msk [vmem:[#allocation3 + $0xf8] sm:$0xff] %vm225_vm0, %v2420_v18  ;;  %v2524_v31 = vpop.permute.xlu1 %2523  ;;  %2451 = vst.msk [vmem:[#allocation3 + $0xf0] sm:$0xff] %vm225_vm0, %v2419_v24  ;;  %v6455_v63 = vld [vmem:[#allocation2 + $0xca] sm:$0xff]  ;;  %v6460_v18 = vld [vmem:[#allocation2 + $0xc2] sm:$0xff] }
 0x380   : > { %2616 = vst.msk [vmem:[#allocation3 + $0x18] sm:$0xff] %vm570_vm2, %v2524_v31  ;;  %v2522_v3 = vpop.permute.xlu0 %2521  ;;  %v6468_v24 = vld [vmem:[#allocation2 + $0xda] sm:$0xff] }
 0x381   : > { %2615 = vst.msk [vmem:[#allocation3 + $0x10] sm:$0xff] %vm570_vm2, %v2522_v3  ;;  %2711 = vrot.lane.b32.xlu1 %v2646_v2, %s4861_s26  ;;  %v6464_v2 = vld [vmem:[#allocation2 + $0xe2] sm:$0xff]  ;;  %v2666_v3 = vld [vmem:[#allocation2 + $0xfa] sm:$0xff] }
 0x382   : > { %2709 = vrot.lane.b32.xlu0 %v2645_v20, %s4861_s26 }
 0x385   : > { %2715 = vrot.lane.b32.xlu1 %v6392_v1, %s4861_s26 }
 0x386   : > { %2713 = vrot.lane.b32.xlu0 %v6396_v25, %s4861_s26 }
 0x387   : > { %v2528_v46 = vpop.permute.xlu1 %2527 }
 0x388   : > { %2618 = vst.msk [vmem:[#allocation3 + $0x28] sm:$0xff] %vm570_vm2, %v2528_v46  ;;  %v2526_v5 = vpop.permute.xlu0 %2525  ;;  %v2665_v46 = vld [vmem:[#allocation2 + $0xf2] sm:$0xff] }
 0x389   : > { %2617 = vst.msk [vmem:[#allocation3 + $0x20] sm:$0xff] %vm570_vm2, %v2526_v5  ;;  %2719 = vrot.lane.b32.xlu1 %v6401_v39, %s4861_s26  ;;  %v2668_v5 = vld [vmem:[#allocation2 + $0x112] sm:$0xff] }
 0x38a   : > { %2717 = vrot.lane.b32.xlu0 %v6406_v40, %s4861_s26 }
 0x38d   : > { %2723 = vrot.lane.b32.xlu1 %v6410_v54, %s4861_s26 }
 0x38e   : > { %2721 = vrot.lane.b32.xlu0 %v6414_v52, %s4861_s26 }
 0x38f   : > { %v2532_v61 = vpop.permute.xlu1 %2531 }
 0x390   : > { %2620 = vst.msk [vmem:[#allocation3 + $0x38] sm:$0xff] %vm570_vm2, %v2532_v61  ;;  %v2530_v60 = vpop.permute.xlu0 %2529  ;;  %v2667_v61 = vld [vmem:[#allocation2 + $0x10a] sm:$0xff] }
 0x391   : > { %2619 = vst.msk [vmem:[#allocation3 + $0x30] sm:$0xff] %vm570_vm2, %v2530_v60  ;;  %2727 = vrot.lane.b32.xlu1 %v6419_v0, %s4861_s26 }
 0x392   : > { %2725 = vrot.lane.b32.xlu0 %v6424_v62, %s4861_s26 }
 0x395   : > { %2731 = vrot.lane.b32.xlu1 %v6428_v8, %s4861_s26 }
 0x396   : > { %2729 = vrot.lane.b32.xlu0 %v6432_v35, %s4861_s26 }
 0x397   : > { %v2536_v28 = vpop.permute.xlu1 %2535 }
 0x398   : > { %2622 = vst.msk [vmem:[#allocation3 + $0x48] sm:$0xff] %vm570_vm2, %v2536_v28  ;;  %v2534_v41 = vpop.permute.xlu0 %2533 }
 0x399   : > { %2621 = vst.msk [vmem:[#allocation3 + $0x40] sm:$0xff] %vm570_vm2, %v2534_v41  ;;  %2735 = vrot.lane.b32.xlu1 %v6437_v33, %s4861_s26  ;;  %v2670_v41 = vld [vmem:[#allocation2 + $0x12a] sm:$0xff] }
 0x39a   : > { %2733 = vrot.lane.b32.xlu0 %v6442_v42, %s4861_s26 }
 0x39d   : > { %2739 = vrot.lane.b32.xlu1 %v6446_v21, %s4861_s26 }
 0x39e   : > { %2737 = vrot.lane.b32.xlu0 %v6450_v43, %s4861_s26 }
 0x39f   : > { %v2540_v29 = vpop.permute.xlu1 %2539 }
 0x3a0   : > { %2624 = vst.msk [vmem:[#allocation3 + $0x58] sm:$0xff] %vm570_vm2, %v2540_v29  ;;  %v2538_v11 = vpop.permute.xlu0 %2537  ;;  %v2669_v29 = vld [vmem:[#allocation2 + $0x122] sm:$0xff] }
 0x3a1   : > { %2623 = vst.msk [vmem:[#allocation3 + $0x50] sm:$0xff] %vm570_vm2, %v2538_v11  ;;  %2743 = vrot.lane.b32.xlu1 %v6455_v63, %s4861_s26  ;;  %v2672_v11 = vld [vmem:[#allocation2 + $0x142] sm:$0xff] }
 0x3a2   : > { %2741 = vrot.lane.b32.xlu0 %v6460_v18, %s4861_s26 }
 0x3a5   : > { %2747 = vrot.lane.b32.xlu1 %v6464_v2, %s4861_s26 }
 0x3a6   : > { %2745 = vrot.lane.b32.xlu0 %v6468_v24, %s4861_s26 }
 0x3a7   : > { %v2544_v31 = vpop.permute.xlu1 %2543 }
 0x3a8   : > { %2626 = vst.msk [vmem:[#allocation3 + $0x68] sm:$0xff] %vm570_vm2, %v2544_v31  ;;  %v2542_v20 = vpop.permute.xlu0 %2541  ;;  %v2671_v31 = vld [vmem:[#allocation2 + $0x13a] sm:$0xff] }
 0x3a9   : > { %2625 = vst.msk [vmem:[#allocation3 + $0x60] sm:$0xff] %vm570_vm2, %v2542_v20  ;;  %2751 = vrot.lane.b32.xlu1 %v2666_v3, %s4861_s26 }
 0x3aa   : > { %2749 = vrot.lane.b32.xlu0 %v2665_v46, %s4861_s26  ;;  %v2674_v46 = vld [vmem:[#allocation2 + $0x15a] sm:$0xff] }
 0x3ad   : > { %2755 = vrot.lane.b32.xlu1 %v2668_v5, %s4861_s26  ;;  %v2673_v5 = vld [vmem:[#allocation2 + $0x152] sm:$0xff] }
 0x3ae   : > { %2753 = vrot.lane.b32.xlu0 %v2667_v61, %s4861_s26  ;;  %v2676_v61 = vld [vmem:[#allocation2 + $0x172] sm:$0xff] }
 0x3af   : > { %v2548_v60 = vpop.permute.xlu1 %2547 }
 0x3b0   : > { %2628 = vst.msk [vmem:[#allocation3 + $0x78] sm:$0xff] %vm570_vm2, %v2548_v60  ;;  %v2546_v28 = vpop.permute.xlu0 %2545  ;;  %v2675_v60 = vld [vmem:[#allocation2 + $0x16a] sm:$0xff] }
 0x3b1   : > { %2627 = vst.msk [vmem:[#allocation3 + $0x70] sm:$0xff] %vm570_vm2, %v2546_v28  ;;  %2759 = vrot.lane.b32.xlu1 %v2670_v41, %s4861_s26 }
 0x3b2   : > { %2757 = vrot.lane.b32.xlu0 %v2669_v29, %s4861_s26 }
 0x3b5   : > { %2763 = vrot.lane.b32.xlu1 %v2672_v11, %s4861_s26 }
 0x3b6   : > { %2761 = vrot.lane.b32.xlu0 %v2671_v31, %s4861_s26 }
 0x3b7   : > { %v2552_v20 = vpop.permute.xlu1 %2551 }
 0x3b8   : > { %2630 = vst.msk [vmem:[#allocation3 + $0x88] sm:$0xff] %vm570_vm2, %v2552_v20  ;;  %v2550_v3 = vpop.permute.xlu0 %2549 }
 0x3b9   : > { %2629 = vst.msk [vmem:[#allocation3 + $0x80] sm:$0xff] %vm570_vm2, %v2550_v3  ;;  %2767 = vrot.lane.b32.xlu1 %v2674_v46, %s4861_s26 }
 0x3ba   : > { %2765 = vrot.lane.b32.xlu0 %v2673_v5, %s4861_s26  ;;  %v4021_v5 = vld [vmem:[%s7226_s3] sm:$0xff] }
 0x3bd   : > { %2771 = vrot.lane.b32.xlu1 %v2676_v61, %s4861_s26  ;;  %v4022_v61 = vld [vmem:[%s7226_s3 + $0x8] sm:$0xff] }
 0x3be   : > { %2769 = vrot.lane.b32.xlu0 %v2675_v60, %s4861_s26  ;;  %v4818_v60 = vpack.c.bf16 %v4022_v61, %v4021_v5 }
 0x3bf   : > { %v2556_v28 = vpop.permute.xlu1 %2555 }
 0x3c0   : > { %2632 = vst.msk [vmem:[#allocation3 + $0x98] sm:$0xff] %vm570_vm2, %v2556_v28  ;;  %v2554_v41 = vpop.permute.xlu0 %2553  ;;  %4819 = vmatprep.subr.bf16.mxu1 %v4818_v60  ;;  %v4023_v28 = vld [vmem:[%s7226_s3 + $0x10] sm:$0xff] }
 0x3c1   : > { %2631 = vst.msk [vmem:[#allocation3 + $0x90] sm:$0xff] %vm570_vm2, %v2554_v41  ;;  %2903 = vrot.lane.b32.xlu1 %v6179_v50, %s4862_s27  ;;  %4821 = vmatpush3.bf16.msra.mxu1 %v4818_v60  ;;  %v4024_v41 = vld [vmem:[%s7226_s3 + $0x18] sm:$0xff] }
 0x3c2   : > { %2901 = vrot.lane.b32.xlu0 %v6181_v22, %s4862_s27 }
 0x3c5   : > { %2907 = vrot.lane.b32.xlu1 %v6199_v23, %s4862_s27 }
 0x3c6   : > { %2905 = vrot.lane.b32.xlu0 %v6201_v27, %s4862_s27 }
 0x3c7   : > { %v2560_v29 = vpop.permute.xlu1 %2559 }
 0x3c8   : > { %2634 = vst.msk [vmem:[#allocation3 + $0xa8] sm:$0xff] %vm570_vm2, %v2560_v29  ;;  %v2558_v11 = vpop.permute.xlu0 %2557  ;;  %v4822_v29 = vpack.c.bf16 %v4024_v41, %v4023_v28 }
 0x3c9   : > { %2633 = vst.msk [vmem:[#allocation3 + $0xa0] sm:$0xff] %vm570_vm2, %v2558_v11  ;;  %2911 = vrot.lane.b32.xlu1 %v6219_v16, %s4862_s27 }
 0x3ca   : > { %2909 = vrot.lane.b32.xlu0 %v6226_v49, %s4862_s27  ;;  %4823 = vmatprep.subr.bf16.mxu1 %v4822_v29 }
 0x3cb   : > { %4825 = vmatpush3.bf16.msra.mxu1 %v4822_v29 }
 0x3cd   : > { %2915 = vrot.lane.b32.xlu1 %v6239_v32, %s4862_s27 }
 0x3ce   : > { %2913 = vrot.lane.b32.xlu0 %v6246_v4, %s4862_s27 }
 0x3cf   : > { %v2564_v50 = vpop.permute.xlu1 %2563 }
 0x3d0   : > { %2636 = vst.msk [vmem:[#allocation3 + $0xb8] sm:$0xff] %vm570_vm2, %v2564_v50  ;;  %v2562_v22 = vpop.permute.xlu0 %2561  ;;  %v4025_v50 = vld [vmem:[%s7226_s3 + $0x20] sm:$0xff] }
 0x3d1   : > { %2635 = vst.msk [vmem:[#allocation3 + $0xb0] sm:$0xff] %vm570_vm2, %v2562_v22  ;;  %2919 = vrot.lane.b32.xlu1 %v6259_v59, %s4862_s27  ;;  %v4026_v22 = vld [vmem:[%s7226_s3 + $0x28] sm:$0xff] }
 0x3d2   : > { %2917 = vrot.lane.b32.xlu0 %v6266_v58, %s4862_s27 }
 0x3d5   : > { %2923 = vrot.lane.b32.xlu1 %v6276_v37, %s4862_s27 }
 0x3d6   : > { %2921 = vrot.lane.b32.xlu0 %v6283_v36, %s4862_s27 }
 0x3d7   : > { %v2568_v31 = vpop.permute.xlu1 %2567 }
 0x3d8   : > { %2638 = vst.msk [vmem:[#allocation3 + $0xc8] sm:$0xff] %vm570_vm2, %v2568_v31  ;;  %v2566_v20 = vpop.permute.xlu0 %2565  ;;  %v4028_v31 = vld [vmem:[%s7226_s3 + $0x38] sm:$0xff] }
 0x3d9   : > { %2637 = vst.msk [vmem:[#allocation3 + $0xc0] sm:$0xff] %vm570_vm2, %v2566_v20  ;;  %2927 = vrot.lane.b32.xlu1 %v6291_v44, %s4862_s27 }
 0x3da   : > { %2925 = vrot.lane.b32.xlu0 %v6297_v53, %s4862_s27 }
 0x3dd   : > { %2931 = vrot.lane.b32.xlu1 %v6305_v19, %s4862_s27 }
 0x3de   : > { %2929 = vrot.lane.b32.xlu0 %v6311_v14, %s4862_s27 }
 0x3df   : > { %v2572_v3 = vpop.permute.xlu1 %2571 }
 0x3e0   : > { %2640 = vst.msk [vmem:[#allocation3 + $0xd8] sm:$0xff] %vm570_vm2, %v2572_v3  ;;  %v2570_v46 = vpop.permute.xlu0 %2569  ;;  %v4029_v3 = vld [vmem:[%s7226_s3 + $0x40] sm:$0xff] }
 0x3e1   : > { %2639 = vst.msk [vmem:[#allocation3 + $0xd0] sm:$0xff] %vm570_vm2, %v2570_v46  ;;  %3093 = vrot.lane.b32.xlu1 %v6177_v47, %s4863_s28 }
 0x3e2   : > { %2933 = vrot.lane.b32.xlu0 %v6325_v51, %s4862_s27 }
 0x3e5   : > { %3285 = vrot.lane.b32.xlu1 %v6396_v25, %s4864_s29  ;;  %v4027_v25 = vld [vmem:[%s7226_s3 + $0x30] sm:$0xff] }
 0x3e6   : > { %3095 = vrot.lane.b32.xlu0 %v6172_v17, %s4863_s28  ;;  %v4826_v17 = vpack.c.bf16 %v4026_v22, %v4025_v50  ;;  %v4830_v20 = vpack.c.bf16 %v4028_v31, %v4027_v25 }
 0x3e7   : > { %v2576_v47 = vpop.permute.xlu1 %2575 }
 0x3e8   : > { %2642 = vst.msk [vmem:[#allocation3 + $0xe8] sm:$0xff] %vm570_vm2, %v2576_v47  ;;  %v2574_v11 = vpop.permute.xlu0 %2573  ;;  %4827 = vmatprep.subr.bf16.mxu1 %v4826_v17  ;;  %v4735_v47 = vpop.f32.mrb[30].mxu0 }
 0x3e9   : > { %2641 = vst.msk [vmem:[#allocation3 + $0xe0] sm:$0xff] %vm570_vm2, %v2574_v11  ;;  %3477 = vrot.lane.b32.xlu1 %v6201_v27, %s4865_s30  ;;  %4829 = vmatpush3.bf16.msra.mxu1 %v4826_v17  ;;  %v2316_v11 = vpop.f32.mrb[31].mxu0 }
 0x3ea   : > { %3287 = vrot.lane.b32.xlu0 %v6392_v1, %s4864_s29  ;;  %4831 = vmatprep.subr.bf16.mxu1 %v4830_v20 }
 0x3ed   : > { %3669 = vrot.lane.b32.xlu1 %v6197_v34, %s4866_s6  ;;  %4833 = vmatpush3.bf16.msra.mxu1 %v4830_v20 }
 0x3ee   : > { %3479 = vrot.lane.b32.xlu0 %v6199_v23, %s4865_s30  ;;  %4752 = vmatprep.subr.mxu1 %v4029_v3 }
 0x3ef   : > { %v2580_v27 = vpop.permute.xlu1 %2579 }
 0x3f0   : > { %2644 = vst.msk [vmem:[#allocation3 + $0xf8] sm:$0xff] %vm570_vm2, %v2580_v27  ;;  %v2578_v1 = vpop.permute.xlu0 %2577 }
 0x3f1   : > { %2643 = vst.msk [vmem:[#allocation3 + $0xf0] sm:$0xff] %vm570_vm2, %v2578_v1  ;;  %3671 = vrot.lane.b32.xlu1 %v6192_v26, %s4866_s6  ;;  %4753 = vmatpush3.msra.mxu1 %v4029_v3 }
 0x3f2   : > { %3097 = vrot.lane.b32.xlu0 %v6197_v34, %s4863_s28 }
 0x3f3   : > { %v2712_v23 = vpop.permute.xlu1 %2711 }
 0x3f4   : > { %2806 = vst.msk [vmem:[#allocation3 + $0x8] sm:$0xff] %vm763_vm3, %v2712_v23  ;;  %v2710_v46 = vpop.permute.xlu0 %2709 }
 0x3f5   : > { %2805 = vst.msk [vmem:[#allocation3] sm:$0xff] %vm763_vm3, %v2710_v46  ;;  %3099 = vrot.lane.b32.xlu1 %v6192_v26, %s4863_s28 }
 0x3f6   : > { %3861 = vrot.lane.b32.xlu0 %v6406_v40, %s4867_s9 }
 0x3f7   : > { %v2716_v5 = vpop.permute.xlu1 %2715 }
 0x3f8   : > { %2808 = vst.msk [vmem:[#allocation3 + $0x18] sm:$0xff] %vm763_vm3, %v2716_v5  ;;  %v2714_v61 = vpop.permute.xlu0 %2713 }
 0x3f9   : > { %2807 = vst.msk [vmem:[#allocation3 + $0x10] sm:$0xff] %vm763_vm3, %v2714_v61  ;;  %3863 = vrot.lane.b32.xlu1 %v6401_v39, %s4867_s9 }
 0x3fa   : > { %3289 = vrot.lane.b32.xlu0 %v6406_v40, %s4864_s29 }
 0x3fb   : > { %v2720_v34 = vpop.permute.xlu1 %2719 }
 0x3fc   : > { %2810 = vst.msk [vmem:[#allocation3 + $0x28] sm:$0xff] %vm763_vm3, %v2720_v34  ;;  %v2718_v60 = vpop.permute.xlu0 %2717 }
 0x3fd   : > { %2809 = vst.msk [vmem:[#allocation3 + $0x20] sm:$0xff] %vm763_vm3, %v2718_v60  ;;  %3481 = vrot.lane.b32.xlu1 %v6226_v49, %s4865_s30 }
 0x3fe   : > { %3291 = vrot.lane.b32.xlu0 %v6401_v39, %s4864_s29 }
 0x3ff   : > { %v2724_v26 = vpop.permute.xlu1 %2723 }
 0x400   : > { %2812 = vst.msk [vmem:[#allocation3 + $0x38] sm:$0xff] %vm763_vm3, %v2724_v26  ;;  %v2722_v28 = vpop.permute.xlu0 %2721 }
 0x401   : > { %2811 = vst.msk [vmem:[#allocation3 + $0x30] sm:$0xff] %vm763_vm3, %v2722_v28  ;;  %3673 = vrot.lane.b32.xlu1 %v6217_v10, %s4866_s6 }
 0x402   : > { %3483 = vrot.lane.b32.xlu0 %v6219_v16, %s4865_s30 }
 0x403   : > { %v2728_v40 = vpop.permute.xlu1 %2727 }
 0x404   : > { %2814 = vst.msk [vmem:[#allocation3 + $0x48] sm:$0xff] %vm763_vm3, %v2728_v40  ;;  %v2726_v41 = vpop.permute.xlu0 %2725 }
 0x405   : > { %2813 = vst.msk [vmem:[#allocation3 + $0x40] sm:$0xff] %vm763_vm3, %v2726_v41  ;;  %3675 = vrot.lane.b32.xlu1 %v6212_v15, %s4866_s6 }
 0x406   : > { %3101 = vrot.lane.b32.xlu0 %v6217_v10, %s4863_s28  ;;  %v2322_v10 = vadd.f32 %v4735_v47, %v6162_v7 }
 0x407   : > { %v2732_v49 = vpop.permute.xlu1 %2731 }
 0x408   : > { %2816 = vst.msk [vmem:[#allocation3 + $0x58] sm:$0xff] %vm763_vm3, %v2732_v49  ;;  %v2730_v39 = vpop.permute.xlu0 %2729  ;;  %v2356_v22 = vmax.f32 %v2322_v10, 0.0 }
 0x409   : > { %2815 = vst.msk [vmem:[#allocation3 + $0x50] sm:$0xff] %vm763_vm3, %v2730_v39  ;;  %3103 = vrot.lane.b32.xlu1 %v6212_v15, %s4863_s28  ;;  %v2317_v15 = vadd.f32 %v6162_v7, %v2316_v11  ;;  %v3615_v39 = vld [vmem:[#allocation2 + $0xa9] sm:$0xff] }
 0x40a   : > { %3865 = vrot.lane.b32.xlu0 %v6414_v52, %s4867_s9  ;;  %2388 = vst.msk [vmem:[#allocation2 + $0x189] sm:$0xff] %vm225_vm0, %v2356_v22  ;;  %v3617_v22 = vld [vmem:[#allocation2 + $0xc1] sm:$0xff] }
 0x40b   : > { %v2736_v16 = vpop.permute.xlu1 %2735  ;;  %v2355_v25 = vmax.f32 %v2317_v15, 0.0 }
 0x40c   : > { %2818 = vst.msk [vmem:[#allocation3 + $0x68] sm:$0xff] %vm763_vm3, %v2736_v16  ;;  %v2734_v29 = vpop.permute.xlu0 %2733 }
 0x40d   : > { %2817 = vst.msk [vmem:[#allocation3 + $0x60] sm:$0xff] %vm763_vm3, %v2734_v29  ;;  %3867 = vrot.lane.b32.xlu1 %v6410_v54, %s4867_s9 }
 0x40e   : > { %3293 = vrot.lane.b32.xlu0 %v6414_v52, %s4864_s29  ;;  %2387 = vst.msk [vmem:[#allocation2 + $0x181] sm:$0xff] %vm225_vm0, %v2355_v25 }
 0x40f   : > { %v2740_v50 = vpop.permute.xlu1 %2739 }
 0x410   : > { %2820 = vst.msk [vmem:[#allocation3 + $0x78] sm:$0xff] %vm763_vm3, %v2740_v50  ;;  %v2738_v17 = vpop.permute.xlu0 %2737 }
 0x411   : > { %2819 = vst.msk [vmem:[#allocation3 + $0x70] sm:$0xff] %vm763_vm3, %v2738_v17  ;;  %3485 = vrot.lane.b32.xlu1 %v6246_v4, %s4865_s30 }
 0x412   : > { %3295 = vrot.lane.b32.xlu0 %v6410_v54, %s4864_s29 }
 0x413   : > { %v2744_v52 = vpop.permute.xlu1 %2743 }
 0x414   : > { %2822 = vst.msk [vmem:[#allocation3 + $0x88] sm:$0xff] %vm763_vm3, %v2744_v52  ;;  %v2742_v7 = vpop.permute.xlu0 %2741 }
 0x415   : > { %2821 = vst.msk [vmem:[#allocation3 + $0x80] sm:$0xff] %vm763_vm3, %v2742_v7  ;;  %3677 = vrot.lane.b32.xlu1 %v6237_v6, %s4866_s6 }
 0x416   : > { %3487 = vrot.lane.b32.xlu0 %v6239_v32, %s4865_s30 }
 0x417   : > { %v2748_v4 = vpop.permute.xlu1 %2747 }
 0x418   : > { %2824 = vst.msk [vmem:[#allocation3 + $0x98] sm:$0xff] %vm763_vm3, %v2748_v4  ;;  %v2746_v31 = vpop.permute.xlu0 %2745 }
 0x419   : > { %2823 = vst.msk [vmem:[#allocation3 + $0x90] sm:$0xff] %vm763_vm3, %v2746_v31  ;;  %3679 = vrot.lane.b32.xlu1 %v6232_v30, %s4866_s6 }
 0x41a   : > { %3105 = vrot.lane.b32.xlu0 %v6237_v6, %s4863_s28 }
 0x41b   : > { %v2752_v54 = vpop.permute.xlu1 %2751 }
 0x41c   : > { %2826 = vst.msk [vmem:[#allocation3 + $0xa8] sm:$0xff] %vm763_vm3, %v2752_v54  ;;  %v2750_v20 = vpop.permute.xlu0 %2749 }
 0x41d   : > { %2825 = vst.msk [vmem:[#allocation3 + $0xa0] sm:$0xff] %vm763_vm3, %v2750_v20  ;;  %3107 = vrot.lane.b32.xlu1 %v6232_v30, %s4863_s28 }
 0x41e   : > { %3869 = vrot.lane.b32.xlu0 %v6424_v62, %s4867_s9 }
 0x41f   : > { %v2756_v32 = vpop.permute.xlu1 %2755 }
 0x420   : > { %2828 = vst.msk [vmem:[#allocation3 + $0xb8] sm:$0xff] %vm763_vm3, %v2756_v32  ;;  %v2754_v27 = vpop.permute.xlu0 %2753 }
 0x421   : > { %2827 = vst.msk [vmem:[#allocation3 + $0xb0] sm:$0xff] %vm763_vm3, %v2754_v27  ;;  %3871 = vrot.lane.b32.xlu1 %v6419_v0, %s4867_s9 }
 0x422   : > { %3297 = vrot.lane.b32.xlu0 %v6424_v62, %s4864_s29 }
 0x423   : > { %v2760_v6 = vpop.permute.xlu1 %2759 }
 0x424   : > { %2830 = vst.msk [vmem:[#allocation3 + $0xc8] sm:$0xff] %vm763_vm3, %v2760_v6  ;;  %v2758_v1 = vpop.permute.xlu0 %2757 }
 0x425   : > { %2829 = vst.msk [vmem:[#allocation3 + $0xc0] sm:$0xff] %vm763_vm3, %v2758_v1  ;;  %3489 = vrot.lane.b32.xlu1 %v6266_v58, %s4865_s30  ;;  %v3620_v1 = vld [vmem:[#allocation2 + $0xe1] sm:$0xff] }
 0x426   : > { %3299 = vrot.lane.b32.xlu0 %v6419_v0, %s4864_s29 }
 0x427   : > { %v2764_v30 = vpop.permute.xlu1 %2763 }
 0x428   : > { %2832 = vst.msk [vmem:[#allocation3 + $0xd8] sm:$0xff] %vm763_vm3, %v2764_v30  ;;  %v2762_v3 = vpop.permute.xlu0 %2761 }
 0x429   : > { %2831 = vst.msk [vmem:[#allocation3 + $0xd0] sm:$0xff] %vm763_vm3, %v2762_v3  ;;  %3681 = vrot.lane.b32.xlu1 %v6257_v55, %s4866_s6 }
 0x42a   : > { %3491 = vrot.lane.b32.xlu0 %v6259_v59, %s4865_s30 }
 0x42b   : > { %v2768_v62 = vpop.permute.xlu1 %2767 }
 0x42c   : > { %2834 = vst.msk [vmem:[#allocation3 + $0xe8] sm:$0xff] %vm763_vm3, %v2768_v62  ;;  %v2766_v23 = vpop.permute.xlu0 %2765 }
 0x42d   : > { %2833 = vst.msk [vmem:[#allocation3 + $0xe0] sm:$0xff] %vm763_vm3, %v2766_v23  ;;  %3683 = vrot.lane.b32.xlu1 %v6252_v57, %s4866_s6 }
 0x42e   : > { %3109 = vrot.lane.b32.xlu0 %v6257_v55, %s4863_s28 }
 0x42f   : > { %v2772_v58 = vpop.permute.xlu1 %2771 }
 0x430   : > { %2836 = vst.msk [vmem:[#allocation3 + $0xf8] sm:$0xff] %vm763_vm3, %v2772_v58  ;;  %v2770_v0 = vpop.permute.xlu0 %2769 }
 0x431   : > { %2835 = vst.msk [vmem:[#allocation3 + $0xf0] sm:$0xff] %vm763_vm3, %v2770_v0  ;;  %3111 = vrot.lane.b32.xlu1 %v6252_v57, %s4863_s28 }
 0x432   : > { %3873 = vrot.lane.b32.xlu0 %v6432_v35, %s4867_s9 }
 0x433   : > { %v2904_v59 = vpop.permute.xlu1 %2903 }
 0x434   : > { %2998 = vst.msk [vmem:[#allocation3 + $0x8] sm:$0xff] %vm956_vm4, %v2904_v59  ;;  %v2902_v46 = vpop.permute.xlu0 %2901 }
 0x435   : > { %2997 = vst.msk [vmem:[#allocation3] sm:$0xff] %vm956_vm4, %v2902_v46  ;;  %3875 = vrot.lane.b32.xlu1 %v6428_v8, %s4867_s9 }
 0x436   : > { %3301 = vrot.lane.b32.xlu0 %v6432_v35, %s4864_s29 }
 0x437   : > { %v2908_v55 = vpop.permute.xlu1 %2907 }
 0x438   : > { %3000 = vst.msk [vmem:[#allocation3 + $0x18] sm:$0xff] %vm956_vm4, %v2908_v55  ;;  %v2906_v5 = vpop.permute.xlu0 %2905  ;;  %v3621_v55 = vld [vmem:[#allocation2 + $0xf1] sm:$0xff] }
 0x439   : > { %2999 = vst.msk [vmem:[#allocation3 + $0x10] sm:$0xff] %vm956_vm4, %v2906_v5  ;;  %3493 = vrot.lane.b32.xlu1 %v6283_v36, %s4865_s30  ;;  %v3614_v36 = vld [vmem:[#allocation2 + $0x99] sm:$0xff] }
 0x43a   : > { %3303 = vrot.lane.b32.xlu0 %v6428_v8, %s4864_s29  ;;  %v3039_v8 = vld [vmem:[#allocation2 + $0x91] sm:$0xff] }
 0x43b   : > { %v2912_v57 = vpop.permute.xlu1 %2911 }
 0x43c   : > { %3002 = vst.msk [vmem:[#allocation3 + $0x28] sm:$0xff] %vm956_vm4, %v2912_v57  ;;  %v2910_v61 = vpop.permute.xlu0 %2909 }
 0x43d   : > { %3001 = vst.msk [vmem:[#allocation3 + $0x20] sm:$0xff] %vm956_vm4, %v2910_v61  ;;  %3685 = vrot.lane.b32.xlu1 %v6274_v38, %s4866_s6  ;;  %v3813_v61 = vld [vmem:[#allocation2 + $0xf2] sm:$0xff] }
 0x43e   : > { %3495 = vrot.lane.b32.xlu0 %v6276_v37, %s4865_s30 }
 0x43f   : > { %v2916_v35 = vpop.permute.xlu1 %2915 }
 0x440   : > { %3004 = vst.msk [vmem:[#allocation3 + $0x38] sm:$0xff] %vm956_vm4, %v2916_v35  ;;  %v2914_v34 = vpop.permute.xlu0 %2913 }
 0x441   : > { %3003 = vst.msk [vmem:[#allocation3 + $0x30] sm:$0xff] %vm956_vm4, %v2914_v34  ;;  %3687 = vrot.lane.b32.xlu1 %v3614_v36, %s4866_s6  ;;  %v3622_v34 = vld [vmem:[#allocation2 + $0xf9] sm:$0xff] }
 0x442   : > { %3113 = vrot.lane.b32.xlu0 %v3039_v8, %s4863_s28 }
 0x443   : > { %v2920_v60 = vpop.permute.xlu1 %2919 }
 0x444   : > { %3006 = vst.msk [vmem:[#allocation3 + $0x48] sm:$0xff] %vm956_vm4, %v2920_v60  ;;  %v2918_v26 = vpop.permute.xlu0 %2917 }
 0x445   : > { %3005 = vst.msk [vmem:[#allocation3 + $0x40] sm:$0xff] %vm956_vm4, %v2918_v26  ;;  %3115 = vrot.lane.b32.xlu1 %v3614_v36, %s4863_s28 }
 0x446   : > { %3877 = vrot.lane.b32.xlu0 %v6442_v42, %s4867_s9 }
 0x447   : > { %v2924_v38 = vpop.permute.xlu1 %2923 }
 0x448   : > { %3008 = vst.msk [vmem:[#allocation3 + $0x58] sm:$0xff] %vm956_vm4, %v2924_v38  ;;  %v2922_v37 = vpop.permute.xlu0 %2921  ;;  %v3240_v38 = vld [vmem:[#allocation2 + $0xfa] sm:$0xff] }
 0x449   : > { %3007 = vst.msk [vmem:[#allocation3 + $0x50] sm:$0xff] %vm956_vm4, %v2922_v37  ;;  %3879 = vrot.lane.b32.xlu1 %v6437_v33, %s4867_s9 }
 0x44a   : > { %3305 = vrot.lane.b32.xlu0 %v6442_v42, %s4864_s29 }
 0x44b   : > { %v2928_v28 = vpop.permute.xlu1 %2927 }
 0x44c   : > { %3010 = vst.msk [vmem:[#allocation3 + $0x68] sm:$0xff] %vm956_vm4, %v2928_v28  ;;  %v2926_v40 = vpop.permute.xlu0 %2925 }
 0x44d   : > { %3009 = vst.msk [vmem:[#allocation3 + $0x60] sm:$0xff] %vm956_vm4, %v2926_v40  ;;  %3497 = vrot.lane.b32.xlu1 %v6297_v53, %s4865_s30  ;;  %v3616_v53 = vld [vmem:[#allocation2 + $0xb1] sm:$0xff] }
 0x44e   : > { %3307 = vrot.lane.b32.xlu0 %v6437_v33, %s4864_s29 }
 0x44f   : > { %v2932_v41 = vpop.permute.xlu1 %2931 }
 0x450   : > { %3012 = vst.msk [vmem:[#allocation3 + $0x78] sm:$0xff] %vm956_vm4, %v2932_v41  ;;  %v2930_v49 = vpop.permute.xlu0 %2929 }
 0x451   : > { %3011 = vst.msk [vmem:[#allocation3 + $0x70] sm:$0xff] %vm956_vm4, %v2930_v49  ;;  %3689 = vrot.lane.b32.xlu1 %v3615_v39, %s4866_s6  ;;  %v3623_v49 = vld [vmem:[#allocation2 + $0x109] sm:$0xff] }
 0x452   : > { %3499 = vrot.lane.b32.xlu0 %v6291_v44, %s4865_s30 }
 0x453   : > { %v3094_v42 = vpop.permute.xlu1 %3093 }
 0x454   : > { %3189 = vst.msk [vmem:[#allocation3] sm:$0xff] %vm1149_vm5, %v3094_v42  ;;  %v2934_v16 = vpop.permute.xlu0 %2933 }
 0x455   : > { %3013 = vst.msk [vmem:[#allocation3 + $0x80] sm:$0xff] %vm956_vm4, %v2934_v16  ;;  %3691 = vrot.lane.b32.xlu1 %v3616_v53, %s4866_s6 }
 0x456   : > { %3117 = vrot.lane.b32.xlu0 %v3615_v39, %s4863_s28 }
 0x457   : > { %v3286_v33 = vpop.permute.xlu1 %3285 }
 0x458   : > { %3381 = vst.msk [vmem:[#allocation3] sm:$0xff] %vm1342_vm6, %v3286_v33  ;;  %v3096_v29 = vpop.permute.xlu0 %3095 }
 0x459   : > { %3190 = vst.msk [vmem:[#allocation3 + $0x8] sm:$0xff] %vm1149_vm5, %v3096_v29  ;;  %3119 = vrot.lane.b32.xlu1 %v3616_v53, %s4863_s28  ;;  %v3815_v29 = vld [vmem:[#allocation2 + $0x10a] sm:$0xff] }
 0x45a   : > { %3881 = vrot.lane.b32.xlu0 %v6450_v43, %s4867_s9 }
 0x45b   : > { %v3478_v44 = vpop.permute.xlu1 %3477 }
 0x45c   : > { %3573 = vst.msk [vmem:[#allocation3] sm:$0xff] %vm1536_vm7, %v3478_v44  ;;  %v3288_v47 = vpop.permute.xlu0 %3287  ;;  %v3624_v44 = vld [vmem:[#allocation2 + $0x111] sm:$0xff] }
 0x45d   : > { %3382 = vst.msk [vmem:[#allocation3 + $0x8] sm:$0xff] %vm1342_vm6, %v3288_v47  ;;  %3883 = vrot.lane.b32.xlu1 %v6446_v21, %s4867_s9 }
 0x45e   : > { %3309 = vrot.lane.b32.xlu0 %v6450_v43, %s4864_s29 }
 0x45f   : > { %v3670_v10 = vpop.permute.xlu1 %3669 }
 0x460   : > { %3765 = vst.msk [vmem:[#allocation3] sm:$0xff] %vm1729_vm8, %v3670_v10  ;;  %v3480_v11 = vpop.permute.xlu0 %3479 }
 0x461   : > { %3574 = vst.msk [vmem:[#allocation3 + $0x8] sm:$0xff] %vm1536_vm7, %v3480_v11  ;;  %3501 = vrot.lane.b32.xlu1 %v6311_v14, %s4865_s30  ;;  %v3618_v14 = vld [vmem:[#allocation2 + $0xc9] sm:$0xff] }
 0x462   : > { %3311 = vrot.lane.b32.xlu0 %v6446_v21, %s4864_s29 }
 0x463   : > { %v3672_v15 = vpop.permute.xlu1 %3671 }
 0x464   : > { %3766 = vst.msk [vmem:[#allocation3 + $0x8] sm:$0xff] %vm1729_vm8, %v3672_v15  ;;  %v3098_v50 = vpop.permute.xlu0 %3097  ;;  %v3242_v15 = vld [vmem:[#allocation2 + $0x112] sm:$0xff] }
 0x465   : > { %3191 = vst.msk [vmem:[#allocation3 + $0x10] sm:$0xff] %vm1149_vm5, %v3098_v50  ;;  %3693 = vrot.lane.b32.xlu1 %v3617_v22, %s4866_s6 }
 0x466   : > { %3503 = vrot.lane.b32.xlu0 %v6305_v19, %s4865_s30 }
 0x467   : > { %v3100_v43 = vpop.permute.xlu1 %3099 }
 0x468   : > { %3192 = vst.msk [vmem:[#allocation3 + $0x18] sm:$0xff] %vm1149_vm5, %v3100_v43  ;;  %v3862_v17 = vpop.permute.xlu0 %3861 }
 0x469   : > { %3957 = vst.msk [vmem:[#allocation3] sm:$0xff] %vm1922_vm9, %v3862_v17  ;;  %3695 = vrot.lane.b32.xlu1 %v3618_v14, %s4866_s6 }
 0x46a   : > { %3121 = vrot.lane.b32.xlu0 %v3617_v22, %s4863_s28 }
 0x46b   : > { %v3864_v21 = vpop.permute.xlu1 %3863 }
 0x46c   : > { %3958 = vst.msk [vmem:[#allocation3 + $0x8] sm:$0xff] %vm1922_vm9, %v3864_v21  ;;  %v3290_v25 = vpop.permute.xlu0 %3289 }
 0x46d   : > { %3383 = vst.msk [vmem:[#allocation3 + $0x10] sm:$0xff] %vm1342_vm6, %v3290_v25  ;;  %3123 = vrot.lane.b32.xlu1 %v3618_v14, %s4863_s28  ;;  %v3625_v14 = vld [vmem:[#allocation2 + $0x121] sm:$0xff] }
 0x46e   : > { %3885 = vrot.lane.b32.xlu0 %v6460_v18, %s4867_s9  ;;  %v3434_v25 = vld [vmem:[#allocation2 + $0x128] sm:$0xff] }
 0x46f   : > { %v3482_v19 = vpop.permute.xlu1 %3481 }
 0x470   : > { %3575 = vst.msk [vmem:[#allocation3 + $0x10] sm:$0xff] %vm1536_vm7, %v3482_v19  ;;  %v3292_v52 = vpop.permute.xlu0 %3291  ;;  %v3989_v7 = vld [vmem:[#allocation3] sm:$0xff] }
 0x471   : > { %3384 = vst.msk [vmem:[#allocation3 + $0x18] sm:$0xff] %vm1342_vm6, %v3292_v52  ;;  %3887 = vrot.lane.b32.xlu1 %v6455_v63, %s4867_s9  ;;  %4754 = vmatprep.mubr.msk.f32.mxu1 %vm2003_vm10, %v3989_v7 }
 0x472   : > { %3313 = vrot.lane.b32.xlu0 %v6460_v18, %s4864_s29  ;;  %v3619_v18 = vld [vmem:[#allocation2 + $0xd9] sm:$0xff] }
 0x473   : > { %v3674_v4 = vpop.permute.xlu1 %3673  ;;  %v3990_v31 = vld [vmem:[#allocation3 + $0x8] sm:$0xff] }
 0x474   : > { %3767 = vst.msk [vmem:[#allocation3 + $0x10] sm:$0xff] %vm1729_vm8, %v3674_v4  ;;  %4755 = vmatmul.mubr.msk.f32.vlgmr.msra.gmra.mrb[0].mxu1 %vm2003_vm10, %v3990_v31  ;;  %v3484_v54 = vpop.permute.xlu0 %3483  ;;  %v3817_v31 = vld [vmem:[#allocation2 + $0x122] sm:$0xff] }
 0x475   : > { %3576 = vst.msk [vmem:[#allocation3 + $0x18] sm:$0xff] %vm1536_vm7, %v3484_v54  ;;  %3505 = vrot.lane.b32.xlu1 %v6325_v51, %s4865_s30  ;;  %v3626_v54 = vld [vmem:[#allocation2 + $0x129] sm:$0xff] }
 0x476   : > { %3315 = vrot.lane.b32.xlu0 %v6455_v63, %s4864_s29 }
 0x477   : > { %v3676_v20 = vpop.permute.xlu1 %3675 }
 0x478   : > { %3768 = vst.msk [vmem:[#allocation3 + $0x18] sm:$0xff] %vm1729_vm8, %v3676_v20  ;;  %v3102_v32 = vpop.permute.xlu0 %3101 }
 0x479   : > { %3193 = vst.msk [vmem:[#allocation3 + $0x20] sm:$0xff] %vm1149_vm5, %v3102_v32  ;;  %3697 = vrot.lane.b32.xlu1 %v3619_v18, %s4866_s6 }
 0x47a   : > { %3507 = vrot.lane.b32.xlu0 %v6319_v9, %s4865_s30 }
 0x47b   : > { %v3104_v27 = vpop.permute.xlu1 %3103 }
 0x47c   : > { %3194 = vst.msk [vmem:[#allocation3 + $0x28] sm:$0xff] %vm1149_vm5, %v3104_v27  ;;  %v3866_v6 = vpop.permute.xlu0 %3865 }
 0x47d   : > { %3959 = vst.msk [vmem:[#allocation3 + $0x10] sm:$0xff] %vm1922_vm9, %v3866_v6  ;;  %3125 = vrot.lane.b32.xlu1 %v3619_v18, %s4863_s28  ;;  %v3244_v6 = vld [vmem:[#allocation2 + $0x12a] sm:$0xff] }
 0x47e   : > { %2935 = vrot.lane.b32.xlu0 %v6319_v9, %s4862_s27 }
 0x47f   : > { %v3868_v51 = vpop.permute.xlu1 %3867 }
 0x480   : > { %3960 = vst.msk [vmem:[#allocation3 + $0x18] sm:$0xff] %vm1922_vm9, %v3868_v51  ;;  %v3294_v63 = vpop.permute.xlu0 %3293 }
 0x481   : > { %3385 = vst.msk [vmem:[#allocation3 + $0x20] sm:$0xff] %vm1342_vm6, %v3294_v63  ;;  %3889 = vrot.lane.b32.xlu1 %v6468_v24, %s4867_s9 }
 0x482   : > { %3699 = vrot.lane.b32.xlu0 %v3620_v1, %s4866_s6 }
 0x483   : > { %v3486_v30 = vpop.permute.xlu1 %3485 }
 0x484   : > { %3577 = vst.msk [vmem:[#allocation3 + $0x20] sm:$0xff] %vm1536_vm7, %v3486_v30  ;;  %v3296_v3 = vpop.permute.xlu0 %3295  ;;  %v3991_v62 = vld [vmem:[#allocation3 + $0x10] sm:$0xff] }
 0x485   : > { %3386 = vst.msk [vmem:[#allocation3 + $0x28] sm:$0xff] %vm1342_vm6, %v3296_v3  ;;  %3317 = vrot.lane.b32.xlu1 %v6468_v24, %s4864_s29  ;;  %4757 = vmatprep.mubr.msk.f32.mxu1 %vm2003_vm10, %v3991_v62 }
 0x486   : > { %3127 = vrot.lane.b32.xlu0 %v3620_v1, %s4863_s28  ;;  %v2861_v1 = vld [vmem:[#allocation2 + $0x138] sm:$0xff] }
 0x487   : > { %v3678_v9 = vpop.permute.xlu1 %3677  ;;  %v3992_v23 = vld [vmem:[#allocation3 + $0x18] sm:$0xff] }
 0x488   : > { %3769 = vst.msk [vmem:[#allocation3 + $0x20] sm:$0xff] %vm1729_vm8, %v3678_v9  ;;  %4758 = vmatmul.mubr.msk.f32.gmra.mrb[2].mxu1 %vm2003_vm10, %v3992_v23  ;;  %v3488_v58 = vpop.permute.xlu0 %3487  ;;  %v3627_v23 = vld [vmem:[#allocation2 + $0x139] sm:$0xff] }
 0x489   : > { %3578 = vst.msk [vmem:[#allocation3 + $0x28] sm:$0xff] %vm1536_vm7, %v3488_v58  ;;  %3319 = vrot.lane.b32.xlu1 %v6464_v2, %s4864_s29  ;;  %v3436_v58 = vld [vmem:[#allocation2 + $0x140] sm:$0xff] }
 0x48a   : > { %3891 = vrot.lane.b32.xlu0 %v6464_v2, %s4867_s9 }
 0x48b   : > { %v3680_v24 = vpop.permute.xlu1 %3679 }
 0x48c   : > { %3770 = vst.msk [vmem:[#allocation3 + $0x28] sm:$0xff] %vm1729_vm8, %v3680_v24  ;;  %v3106_v0 = vpop.permute.xlu0 %3105 }
 0x48d   : > { %3195 = vst.msk [vmem:[#allocation3 + $0x30] sm:$0xff] %vm1149_vm5, %v3106_v0  ;;  %2937 = vrot.lane.b32.xlu1 %v6339_v45, %s4862_s27 }
 0x48e   : > { %3509 = vrot.lane.b32.xlu0 %v6339_v45, %s4865_s30 }
 0x48f   : > { %v3108_v59 = vpop.permute.xlu1 %3107 }
 0x490   : > { %3196 = vst.msk [vmem:[#allocation3 + $0x38] sm:$0xff] %vm1149_vm5, %v3108_v59  ;;  %v3870_v46 = vpop.permute.xlu0 %3869 }
 0x491   : > { %3961 = vst.msk [vmem:[#allocation3 + $0x20] sm:$0xff] %vm1922_vm9, %v3870_v46  ;;  %3701 = vrot.lane.b32.xlu1 %v3621_v55, %s4866_s6 }
 0x492   : > { %3511 = vrot.lane.b32.xlu0 %v6333_v48, %s4865_s30 }
 0x493   : > { %v3872_v2 = vpop.permute.xlu1 %3871 }
 0x494   : > { %3962 = vst.msk [vmem:[#allocation3 + $0x28] sm:$0xff] %vm1922_vm9, %v3872_v2  ;;  %v3298_v5 = vpop.permute.xlu0 %3297  ;;  %v3628_v2 = vld [vmem:[#allocation2 + $0x141] sm:$0xff] }
 0x495   : > { %3387 = vst.msk [vmem:[#allocation3 + $0x30] sm:$0xff] %vm1342_vm6, %v3298_v5  ;;  %3129 = vrot.lane.b32.xlu1 %v3621_v55, %s4863_s28  ;;  %v3819_v55 = vld [vmem:[#allocation2 + $0x13a] sm:$0xff] }
 0x496   : > { %2939 = vrot.lane.b32.xlu0 %v6333_v48, %s4862_s27 }
 0x497   : > { %v3490_v45 = vpop.permute.xlu1 %3489 }
 0x498   : > { %3579 = vst.msk [vmem:[#allocation3 + $0x30] sm:$0xff] %vm1536_vm7, %v3490_v45  ;;  %v3300_v57 = vpop.permute.xlu0 %3299  ;;  %v3993_v35 = vld [vmem:[#allocation3 + $0x20] sm:$0xff] }
 0x499   : > { %3388 = vst.msk [vmem:[#allocation3 + $0x38] sm:$0xff] %vm1342_vm6, %v3300_v57  ;;  %3893 = vrot.lane.b32.xlu1 %v3813_v61, %s4867_s9  ;;  %4760 = vmatprep.mubr.msk.f32.mxu1 %vm2003_vm10, %v3993_v35  ;;  %v3246_v35 = vld [vmem:[#allocation2 + $0x142] sm:$0xff] }
 0x49a   : > { %3703 = vrot.lane.b32.xlu0 %v3622_v34, %s4866_s6 }
 0x49b   : > { %v3682_v36 = vpop.permute.xlu1 %3681  ;;  %v3994_v8 = vld [vmem:[#allocation3 + $0x28] sm:$0xff] }
 0x49c   : > { %3771 = vst.msk [vmem:[#allocation3 + $0x30] sm:$0xff] %vm1729_vm8, %v3682_v36  ;;  %v3492_v48 = vpop.permute.xlu0 %3491  ;;  %4761 = vmatmul.mubr.msk.f32.gmra.mrb[4].mxu1 %vm2003_vm10, %v3994_v8 }
 0x49d   : > { %3580 = vst.msk [vmem:[#allocation3 + $0x38] sm:$0xff] %vm1536_vm7, %v3492_v48  ;;  %3321 = vrot.lane.b32.xlu1 %v3813_v61, %s4864_s29 }
 0x49e   : > { %3131 = vrot.lane.b32.xlu0 %v3622_v34, %s4863_s28 }
 0x49f   : > { %v3684_v60 = vpop.permute.xlu1 %3683 }
 0x4a0   : > { %3772 = vst.msk [vmem:[#allocation3 + $0x38] sm:$0xff] %vm1729_vm8, %v3684_v60  ;;  %v3110_v26 = vpop.permute.xlu0 %3109  ;;  %v2863_v60 = vld [vmem:[#allocation2 + $0x150] sm:$0xff] }
 0x4a1   : > { %3197 = vst.msk [vmem:[#allocation3 + $0x40] sm:$0xff] %vm1149_vm5, %v3110_v26  ;;  %3323 = vrot.lane.b32.xlu1 %v3240_v38, %s4864_s29 }
 0x4a2   : > { %3895 = vrot.lane.b32.xlu0 %v3240_v38, %s4867_s9 }
 0x4a3   : > { %v3112_v37 = vpop.permute.xlu1 %3111 }
 0x4a4   : > { %3198 = vst.msk [vmem:[#allocation3 + $0x48] sm:$0xff] %vm1149_vm5, %v3112_v37  ;;  %v3874_v28 = vpop.permute.xlu0 %3873  ;;  %v3629_v37 = vld [vmem:[#allocation2 + $0x151] sm:$0xff] }
 0x4a5   : > { %3963 = vst.msk [vmem:[#allocation3 + $0x30] sm:$0xff] %vm1922_vm9, %v3874_v28  ;;  %2941 = vrot.lane.b32.xlu1 %v6353_v56, %s4862_s27  ;;  %v3438_v28 = vld [vmem:[#allocation2 + $0x158] sm:$0xff] }
 0x4a6   : > { %3513 = vrot.lane.b32.xlu0 %v6353_v56, %s4865_s30 }
 0x4a7   : > { %v3876_v40 = vpop.permute.xlu1 %3875 }
 0x4a8   : > { %3964 = vst.msk [vmem:[#allocation3 + $0x38] sm:$0xff] %vm1922_vm9, %v3876_v40  ;;  %v3302_v41 = vpop.permute.xlu0 %3301 }
 0x4a9   : > { %3389 = vst.msk [vmem:[#allocation3 + $0x40] sm:$0xff] %vm1342_vm6, %v3302_v41  ;;  %3705 = vrot.lane.b32.xlu1 %v3623_v49, %s4866_s6 }
 0x4aa   : > { %3515 = vrot.lane.b32.xlu0 %v6347_v13, %s4865_s30 }
 0x4ab   : > { %v3494_v39 = vpop.permute.xlu1 %3493 }
 0x4ac   : > { %3581 = vst.msk [vmem:[#allocation3 + $0x40] sm:$0xff] %vm1536_vm7, %v3494_v39  ;;  %v3304_v42 = vpop.permute.xlu0 %3303  ;;  %v3995_v16 = vld [vmem:[#allocation3 + $0x30] sm:$0xff] }
 0x4ad   : > { %3390 = vst.msk [vmem:[#allocation3 + $0x48] sm:$0xff] %vm1342_vm6, %v3304_v42  ;;  %3133 = vrot.lane.b32.xlu1 %v3623_v49, %s4863_s28  ;;  %4763 = vmatprep.mubr.msk.f32.mxu1 %vm2003_vm10, %v3995_v16  ;;  %v3821_v42 = vld [vmem:[#allocation2 + $0x152] sm:$0xff] }
 0x4ae   : > { %2943 = vrot.lane.b32.xlu0 %v6347_v13, %s4862_s27  ;;  %v3630_v16 = vld [vmem:[#allocation2 + $0x159] sm:$0xff] }
 0x4af   : > { %v3686_v56 = vpop.permute.xlu1 %3685  ;;  %v3996_v53 = vld [vmem:[#allocation3 + $0x38] sm:$0xff] }
 0x4b0   : > { %3773 = vst.msk [vmem:[#allocation3 + $0x40] sm:$0xff] %vm1729_vm8, %v3686_v56  ;;  %v3496_v33 = vpop.permute.xlu0 %3495  ;;  %4764 = vmatmul.mubr.msk.f32.gmra.mrb[6].mxu1 %vm2003_vm10, %v3996_v53 }
 0x4b1   : > { %3582 = vst.msk [vmem:[#allocation3 + $0x48] sm:$0xff] %vm1536_vm7, %v3496_v33  ;;  %3897 = vrot.lane.b32.xlu1 %v3815_v29, %s4867_s9 }
 0x4b2   : > { %3707 = vrot.lane.b32.xlu0 %v3624_v44, %s4866_s6 }
 0x4b3   : > { %v3688_v47 = vpop.permute.xlu1 %3687 }
 0x4b4   : > { %3774 = vst.msk [vmem:[#allocation3 + $0x48] sm:$0xff] %vm1729_vm8, %v3688_v47  ;;  %v3114_v10 = vpop.permute.xlu0 %3113  ;;  %v3248_v47 = vld [vmem:[#allocation2 + $0x15a] sm:$0xff] }
 0x4b5   : > { %3199 = vst.msk [vmem:[#allocation3 + $0x50] sm:$0xff] %vm1149_vm5, %v3114_v10  ;;  %3325 = vrot.lane.b32.xlu1 %v3815_v29, %s4864_s29 }
 0x4b6   : > { %3135 = vrot.lane.b32.xlu0 %v3624_v44, %s4863_s28 }
 0x4b7   : > { %v3116_v13 = vpop.permute.xlu1 %3115 }
 0x4b8   : > { %3200 = vst.msk [vmem:[#allocation3 + $0x58] sm:$0xff] %vm1149_vm5, %v3116_v13  ;;  %v3878_v11 = vpop.permute.xlu0 %3877 }
 0x4b9   : > { %3965 = vst.msk [vmem:[#allocation3 + $0x40] sm:$0xff] %vm1922_vm9, %v3878_v11  ;;  %3327 = vrot.lane.b32.xlu1 %v3242_v15, %s4864_s29  ;;  %v2865_v11 = vld [vmem:[#allocation2 + $0x168] sm:$0xff] }
 0x4ba   : > { %3899 = vrot.lane.b32.xlu0 %v3242_v15, %s4867_s9 }
 0x4bb   : > { %v3880_v50 = vpop.permute.xlu1 %3879 }
 0x4bc   : > { %3966 = vst.msk [vmem:[#allocation3 + $0x48] sm:$0xff] %vm1922_vm9, %v3880_v50  ;;  %v3306_v22 = vpop.permute.xlu0 %3305 }
 0x4bd   : > { %3391 = vst.msk [vmem:[#allocation3 + $0x50] sm:$0xff] %vm1342_vm6, %v3306_v22  ;;  %2945 = vrot.lane.b32.xlu1 %v6364_v12, %s4862_s27 }
 0x4be   : > { %3517 = vrot.lane.b32.xlu0 %v6364_v12, %s4865_s30 }
 0x4bf   : > { %v3498_v43 = vpop.permute.xlu1 %3497 }
 0x4c0   : > { %3583 = vst.msk [vmem:[#allocation3 + $0x50] sm:$0xff] %vm1536_vm7, %v3498_v43  ;;  %v3308_v17 = vpop.permute.xlu0 %3307  ;;  %v3997_v21 = vld [vmem:[#allocation3 + $0x40] sm:$0xff] }
 0x4c1   : > { %3392 = vst.msk [vmem:[#allocation3 + $0x58] sm:$0xff] %vm1342_vm6, %v3308_v17  ;;  %3709 = vrot.lane.b32.xlu1 %v3625_v14, %s4866_s6  ;;  %4766 = vmatprep.mubr.msk.f32.mxu1 %vm2003_vm10, %v3997_v21  ;;  %v3631_v43 = vld [vmem:[#allocation2 + $0x169] sm:$0xff] }
 0x4c2   : > { %3519 = vrot.lane.b32.xlu0 %v3434_v25, %s4865_s30  ;;  %v3440_v17 = vld [vmem:[#allocation2 + $0x170] sm:$0xff] }
 0x4c3   : > { %v3690_v19 = vpop.permute.xlu1 %3689  ;;  %v3998_v52 = vld [vmem:[#allocation3 + $0x48] sm:$0xff] }
 0x4c4   : > { %3775 = vst.msk [vmem:[#allocation3 + $0x50] sm:$0xff] %vm1729_vm8, %v3690_v19  ;;  %v3500_v12 = vpop.permute.xlu0 %3499  ;;  %4767 = vmatmul.mubr.msk.f32.gmra.mrb[8].mxu1 %vm2003_vm10, %v3998_v52  ;;  %v3823_v52 = vld [vmem:[#allocation2 + $0x16a] sm:$0xff] }
 0x4c5   : > { %3584 = vst.msk [vmem:[#allocation3 + $0x58] sm:$0xff] %vm1536_vm7, %v3500_v12  ;;  %3137 = vrot.lane.b32.xlu1 %v3625_v14, %s4863_s28  ;;  %v3632_v12 = vld [vmem:[#allocation2 + $0x171] sm:$0xff] }
 0x4c6   : > { %2947 = vrot.lane.b32.xlu0 %v3434_v25, %s4862_s27 }
 0x4c7   : > { %v3692_v7 = vpop.permute.xlu1 %3691 }
 0x4c8   : > { %3776 = vst.msk [vmem:[#allocation3 + $0x58] sm:$0xff] %vm1729_vm8, %v3692_v7  ;;  %v3118_v4 = vpop.permute.xlu0 %3117 }
 0x4c9   : > { %3201 = vst.msk [vmem:[#allocation3 + $0x60] sm:$0xff] %vm1149_vm5, %v3118_v4  ;;  %3901 = vrot.lane.b32.xlu1 %v3817_v31, %s4867_s9 }
 0x4ca   : > { %3711 = vrot.lane.b32.xlu0 %v3626_v54, %s4866_s6 }
 0x4cb   : > { %v3120_v20 = vpop.permute.xlu1 %3119 }
 0x4cc   : > { %3202 = vst.msk [vmem:[#allocation3 + $0x68] sm:$0xff] %vm1149_vm5, %v3120_v20  ;;  %v3882_v32 = vpop.permute.xlu0 %3881 }
 0x4cd   : > { %3967 = vst.msk [vmem:[#allocation3 + $0x50] sm:$0xff] %vm1922_vm9, %v3882_v32  ;;  %3329 = vrot.lane.b32.xlu1 %v3817_v31, %s4864_s29  ;;  %v3250_v32 = vld [vmem:[#allocation2 + $0x172] sm:$0xff] }
 0x4ce   : > { %3139 = vrot.lane.b32.xlu0 %v3626_v54, %s4863_s28 }
 0x4cf   : > { %v3884_v18 = vpop.permute.xlu1 %3883 }
 0x4d0   : > { %3968 = vst.msk [vmem:[#allocation3 + $0x58] sm:$0xff] %vm1922_vm9, %v3884_v18  ;;  %v3310_v27 = vpop.permute.xlu0 %3309 }
 0x4d1   : > { %3393 = vst.msk [vmem:[#allocation3 + $0x60] sm:$0xff] %vm1342_vm6, %v3310_v27  ;;  %3331 = vrot.lane.b32.xlu1 %v3244_v6, %s4864_s29 }
 0x4d2   : > { %3903 = vrot.lane.b32.xlu0 %v3244_v6, %s4867_s9  ;;  %v2867_v6 = vld [vmem:[#allocation2 + $0x180] sm:$0xff] }
 0x4d3   : > { %v3502_v51 = vpop.permute.xlu1 %3501 }
 0x4d4   : > { %3585 = vst.msk [vmem:[#allocation3 + $0x60] sm:$0xff] %vm1536_vm7, %v3502_v51  ;;  %v3312_v63 = vpop.permute.xlu0 %3311  ;;  %v3999_v30 = vld [vmem:[#allocation3 + $0x50] sm:$0xff] }
 0x4d5   : > { %3394 = vst.msk [vmem:[#allocation3 + $0x68] sm:$0xff] %vm1342_vm6, %v3312_v63  ;;  %2949 = vrot.lane.b32.xlu1 %v2861_v1, %s4862_s27  ;;  %4769 = vmatprep.mubr.msk.f32.mxu1 %vm2003_vm10, %v3999_v30  ;;  %v3633_v30 = vld [vmem:[#allocation2 + $0x181] sm:$0xff] }
 0x4d6   : > { %3521 = vrot.lane.b32.xlu0 %v2861_v1, %s4865_s30 }
 0x4d7   : > { %v3694_v3 = vpop.permute.xlu1 %3693  ;;  %v4000_v62 = vld [vmem:[#allocation3 + $0x58] sm:$0xff] }
 0x4d8   : > { %3777 = vst.msk [vmem:[#allocation3 + $0x60] sm:$0xff] %vm1729_vm8, %v3694_v3  ;;  %v3504_v9 = vpop.permute.xlu0 %3503  ;;  %4770 = vmatmul.mubr.msk.f32.gmra.mrb[10].mxu1 %vm2003_vm10, %v4000_v62  ;;  %v3442_v3 = vld [vmem:[#allocation2 + $0x188] sm:$0xff] }
 0x4d9   : > { %3586 = vst.msk [vmem:[#allocation3 + $0x68] sm:$0xff] %vm1536_vm7, %v3504_v9  ;;  %3713 = vrot.lane.b32.xlu1 %v3627_v23, %s4866_s6 }
 0x4da   : > { %3523 = vrot.lane.b32.xlu0 %v3436_v58, %s4865_s30 }
 0x4db   : > { %v3696_v24 = vpop.permute.xlu1 %3695 }
 0x4dc   : > { %3778 = vst.msk [vmem:[#allocation3 + $0x68] sm:$0xff] %vm1729_vm8, %v3696_v24  ;;  %v3122_v0 = vpop.permute.xlu0 %3121  ;;  %v3825_v24 = vld [vmem:[#allocation2 + $0x182] sm:$0xff] }
 0x4dd   : > { %3203 = vst.msk [vmem:[#allocation3 + $0x70] sm:$0xff] %vm1149_vm5, %v3122_v0  ;;  %3141 = vrot.lane.b32.xlu1 %v3627_v23, %s4863_s28  ;;  %v3634_v0 = vld [vmem:[#allocation2 + $0x189] sm:$0xff] }
 0x4de   : > { %2951 = vrot.lane.b32.xlu0 %v3436_v58, %s4862_s27 }
 0x4df   : > { %v3124_v59 = vpop.permute.xlu1 %3123 }
 0x4e0   : > { %3204 = vst.msk [vmem:[#allocation3 + $0x78] sm:$0xff] %vm1149_vm5, %v3124_v59  ;;  %v3886_v46 = vpop.permute.xlu0 %3885 }
 0x4e1   : > { %3969 = vst.msk [vmem:[#allocation3 + $0x60] sm:$0xff] %vm1922_vm9, %v3886_v46  ;;  %3905 = vrot.lane.b32.xlu1 %v3819_v55, %s4867_s9 }
 0x4e2   : > { %3715 = vrot.lane.b32.xlu0 %v3628_v2, %s4866_s6 }
 0x4e3   : > { %v3888_v5 = vpop.permute.xlu1 %3887 }
 0x4e4   : > { %3970 = vst.msk [vmem:[#allocation3 + $0x68] sm:$0xff] %vm1922_vm9, %v3888_v5  ;;  %v3314_v45 = vpop.permute.xlu0 %3313 }
 0x4e5   : > { %3395 = vst.msk [vmem:[#allocation3 + $0x70] sm:$0xff] %vm1342_vm6, %v3314_v45  ;;  %3333 = vrot.lane.b32.xlu1 %v3819_v55, %s4864_s29  ;;  %v3252_v45 = vld [vmem:[#allocation2 + $0x18a] sm:$0xff] }
 0x4e6   : > { %3143 = vrot.lane.b32.xlu0 %v3628_v2, %s4863_s28 }
 0x4e7   : > { %v3506_v57 = vpop.permute.xlu1 %3505 }
 0x4e8   : > { %3587 = vst.msk [vmem:[#allocation3 + $0x70] sm:$0xff] %vm1536_vm7, %v3506_v57  ;;  %v3316_v61 = vpop.permute.xlu0 %3315  ;;  %v4001_v34 = vld [vmem:[#allocation3 + $0x60] sm:$0xff]  ;;  %v3444_v57 = vld [vmem:[#allocation2 + $0x1a0] sm:$0xff] }
 0x4e9   : > { %3396 = vst.msk [vmem:[#allocation3 + $0x78] sm:$0xff] %vm1342_vm6, %v3316_v61  ;;  %3335 = vrot.lane.b32.xlu1 %v3246_v35, %s4864_s29  ;;  %4772 = vmatprep.mubr.msk.f32.mxu1 %vm2003_vm10, %v4001_v34 }
 0x4ea   : > { %3907 = vrot.lane.b32.xlu0 %v3246_v35, %s4867_s9  ;;  %v3443_v35 = vld [vmem:[#allocation2 + $0x198] sm:$0xff] }
 0x4eb   : > { %v3698_v36 = vpop.permute.xlu1 %3697  ;;  %v4002_v8 = vld [vmem:[#allocation3 + $0x68] sm:$0xff] }
 0x4ec   : > { %3779 = vst.msk [vmem:[#allocation3 + $0x70] sm:$0xff] %vm1729_vm8, %v3698_v36  ;;  %v3508_v48 = vpop.permute.xlu0 %3507  ;;  %4773 = vmatmul.mubr.msk.f32.gmra.mrb[12].mxu1 %vm2003_vm10, %v4002_v8  ;;  %v3636_v8 = vld [vmem:[#allocation2 + $0x1a1] sm:$0xff] }
 0x4ed   : > { %3588 = vst.msk [vmem:[#allocation3 + $0x78] sm:$0xff] %vm1536_vm7, %v3508_v48  ;;  %2953 = vrot.lane.b32.xlu1 %v2863_v60, %s4862_s27 }
 0x4ee   : > { %3525 = vrot.lane.b32.xlu0 %v2863_v60, %s4865_s30  ;;  %v3635_v60 = vld [vmem:[#allocation2 + $0x199] sm:$0xff] }
 0x4ef   : > { %v3126_v26 = vpop.permute.xlu1 %3125 }
 0x4f0   : > { %3205 = vst.msk [vmem:[#allocation3 + $0x80] sm:$0xff] %vm1149_vm5, %v3126_v26  ;;  %v2936_v38 = vpop.permute.xlu0 %2935 }
 0x4f1   : > { %3014 = vst.msk [vmem:[#allocation3 + $0x88] sm:$0xff] %vm956_vm4, %v2936_v38  ;;  %3717 = vrot.lane.b32.xlu1 %v3629_v37, %s4866_s6  ;;  %v3828_v38 = vld [vmem:[#allocation2 + $0x1a2] sm:$0xff] }
 0x4f2   : > { %3527 = vrot.lane.b32.xlu0 %v3438_v28, %s4865_s30 }
 0x4f3   : > { %v3890_v40 = vpop.permute.xlu1 %3889 }
 0x4f4   : > { %3971 = vst.msk [vmem:[#allocation3 + $0x70] sm:$0xff] %vm1922_vm9, %v3890_v40  ;;  %v3700_v41 = vpop.permute.xlu0 %3699 }
 0x4f5   : > { %3780 = vst.msk [vmem:[#allocation3 + $0x78] sm:$0xff] %vm1729_vm8, %v3700_v41  ;;  %3145 = vrot.lane.b32.xlu1 %v3629_v37, %s4863_s28 }
 0x4f6   : > { %2955 = vrot.lane.b32.xlu0 %v3438_v28, %s4862_s27  ;;  %v3827_v28 = vld [vmem:[#allocation2 + $0x19a] sm:$0xff] }
 0x4f7   : > { %v3318_v49 = vpop.permute.xlu1 %3317 }
 0x4f8   : > { %3397 = vst.msk [vmem:[#allocation3 + $0x80] sm:$0xff] %vm1342_vm6, %v3318_v49  ;;  %v3128_v39 = vpop.permute.xlu0 %3127 }
 0x4f9   : > { %3206 = vst.msk [vmem:[#allocation3 + $0x88] sm:$0xff] %vm1149_vm5, %v3128_v39  ;;  %3909 = vrot.lane.b32.xlu1 %v3821_v42, %s4867_s9 }
 0x4fa   : > { %3719 = vrot.lane.b32.xlu0 %v3630_v16, %s4866_s6 }
 0x4fb   : > { %v3320_v56 = vpop.permute.xlu1 %3319  ;;  %v4003_v53 = vld [vmem:[#allocation3 + $0x70] sm:$0xff] }
 0x4fc   : > { %3398 = vst.msk [vmem:[#allocation3 + $0x88] sm:$0xff] %vm1342_vm6, %v3320_v56  ;;  %v3892_v33 = vpop.permute.xlu0 %3891  ;;  %4775 = vmatprep.mubr.msk.f32.mxu1 %vm2003_vm10, %v4003_v53  ;;  %v7018_v56 = vld [vmem:[%s7227_s4] ss:$0 sm:$0xff] }
 0x4fd   : > { %3972 = vst.msk [vmem:[#allocation3 + $0x78] sm:$0xff] %vm1922_vm9, %v3892_v33  ;;  %3337 = vrot.lane.b32.xlu1 %v3821_v42, %s4864_s29 }
 0x4fe   : > { %3147 = vrot.lane.b32.xlu0 %v3630_v16, %s4863_s28 }
 0x4ff   : > { %v2938_v29 = vpop.permute.xlu1 %2937 }
 0x500   : > { %3015 = vst.msk [vmem:[#allocation3 + $0x90] sm:$0xff] %vm956_vm4, %v2938_v29  ;;  %v3510_v44 = vpop.permute.xlu0 %3509 }
 0x501   : > { %3589 = vst.msk [vmem:[#allocation3 + $0x80] sm:$0xff] %vm1536_vm7, %v3510_v44  ;;  %3339 = vrot.lane.b32.xlu1 %v3248_v47, %s4864_s29 }
 0x502   : > { %3911 = vrot.lane.b32.xlu0 %v3248_v47, %s4867_s9 }
 0x503   : > { %v3702_v10 = vpop.permute.xlu1 %3701 }
 0x504   : > { %3781 = vst.msk [vmem:[#allocation3 + $0x80] sm:$0xff] %vm1729_vm8, %v3702_v10  ;;  %v3512_v13 = vpop.permute.xlu0 %3511  ;;  %v4004_v15 = vld [vmem:[#allocation3 + $0x78] sm:$0xff] }
 0x505   : > { %3590 = vst.msk [vmem:[#allocation3 + $0x88] sm:$0xff] %vm1536_vm7, %v3512_v13  ;;  %2957 = vrot.lane.b32.xlu1 %v2865_v11, %s4862_s27  ;;  %4776 = vmatmul.mubr.msk.f32.gmra.mrb[14].mxu1 %vm2003_vm10, %v4004_v15  ;;  %v7384_v13 = vld [vmem:[#allocation5_spill] sm:$0xff]  ;;  %v7385_v15 = vld [vmem:[#allocation4_spill] sm:$0xff] }
 0x506   : > { %3529 = vrot.lane.b32.xlu0 %v2865_v11, %s4865_s30 }
 0x507   : > { %v3130_v50 = vpop.permute.xlu1 %3129 }
 0x508   : > { %3207 = vst.msk [vmem:[#allocation3 + $0x90] sm:$0xff] %vm1149_vm5, %v3130_v50  ;;  %v2940_v22 = vpop.permute.xlu0 %2939 }
 0x509   : > { %3016 = vst.msk [vmem:[#allocation3 + $0x98] sm:$0xff] %vm956_vm4, %v2940_v22  ;;  %3721 = vrot.lane.b32.xlu1 %v3631_v43, %s4866_s6 }
 0x50a   : > { %3531 = vrot.lane.b32.xlu0 %v3440_v17, %s4865_s30 }
 0x50b   : > { %v3894_v14 = vpop.permute.xlu1 %3893 }
 0x50c   : > { %3973 = vst.msk [vmem:[#allocation3 + $0x80] sm:$0xff] %vm1922_vm9, %v3894_v14  ;;  %v3704_v21 = vpop.permute.xlu0 %3703 }
 0x50d   : > { %3782 = vst.msk [vmem:[#allocation3 + $0x88] sm:$0xff] %vm1729_vm8, %v3704_v21  ;;  %3149 = vrot.lane.b32.xlu1 %v3631_v43, %s4863_s28 }
 0x50e   : > { %2959 = vrot.lane.b32.xlu0 %v3440_v17, %s4862_s27 }
 0x50f   : > { %v3322_v25 = vpop.permute.xlu1 %3321 }
 0x510   : > { %3399 = vst.msk [vmem:[#allocation3 + $0x90] sm:$0xff] %vm1342_vm6, %v3322_v25  ;;  %v3132_v19 = vpop.permute.xlu0 %3131 }
 0x511   : > { %3208 = vst.msk [vmem:[#allocation3 + $0x98] sm:$0xff] %vm1149_vm5, %v3132_v19  ;;  %3913 = vrot.lane.b32.xlu1 %v3823_v52, %s4867_s9 }
 0x512   : > { %3723 = vrot.lane.b32.xlu0 %v3632_v12, %s4866_s6 }
 0x513   : > { %v3324_v7 = vpop.permute.xlu1 %3323  ;;  %v4005_v4 = vld [vmem:[#allocation3 + $0x80] sm:$0xff] }
 0x514   : > { %3400 = vst.msk [vmem:[#allocation3 + $0x98] sm:$0xff] %vm1342_vm6, %v3324_v7  ;;  %v3896_v31 = vpop.permute.xlu0 %3895  ;;  %4778 = vmatprep.mubr.msk.f32.mxu1 %vm2003_vm10, %v4005_v4 }
 0x515   : > { %3974 = vst.msk [vmem:[#allocation3 + $0x88] sm:$0xff] %vm1922_vm9, %v3896_v31  ;;  %3341 = vrot.lane.b32.xlu1 %v3823_v52, %s4864_s29 }
 0x516   : > { %3151 = vrot.lane.b32.xlu0 %v3632_v12, %s4863_s28 }
 0x517   : > { %v2942_v54 = vpop.permute.xlu1 %2941 }
 0x518   : > { %3017 = vst.msk [vmem:[#allocation3 + $0xa0] sm:$0xff] %vm956_vm4, %v2942_v54  ;;  %v3514_v20 = vpop.permute.xlu0 %3513 }
 0x519   : > { %3591 = vst.msk [vmem:[#allocation3 + $0x90] sm:$0xff] %vm1536_vm7, %v3514_v20  ;;  %3343 = vrot.lane.b32.xlu1 %v3250_v32, %s4864_s29 }
 0x51a   : > { %3915 = vrot.lane.b32.xlu0 %v3250_v32, %s4867_s9 }
 0x51b   : > { %v3706_v18 = vpop.permute.xlu1 %3705 }
 0x51c   : > { %3783 = vst.msk [vmem:[#allocation3 + $0x90] sm:$0xff] %vm1729_vm8, %v3706_v18  ;;  %v3516_v27 = vpop.permute.xlu0 %3515  ;;  %v4006_v51 = vld [vmem:[#allocation3 + $0x88] sm:$0xff] }
 0x51d   : > { %3592 = vst.msk [vmem:[#allocation3 + $0x98] sm:$0xff] %vm1536_vm7, %v3516_v27  ;;  %2961 = vrot.lane.b32.xlu1 %v2867_v6, %s4862_s27  ;;  %4779 = vmatmul.mubr.msk.f32.gmra.mrb[16].mxu1 %vm2003_vm10, %v4006_v51  ;;  %v7386_v51 = vld [vmem:[#allocation7_spill] sm:$0xff] }
 0x51e   : > { %3533 = vrot.lane.b32.xlu0 %v2867_v6, %s4865_s30 }
 0x51f   : > { %v3134_v63 = vpop.permute.xlu1 %3133 }
 0x520   : > { %3209 = vst.msk [vmem:[#allocation3 + $0xa0] sm:$0xff] %vm1149_vm5, %v3134_v63  ;;  %v2944_v1 = vpop.permute.xlu0 %2943 }
 0x521   : > { %3018 = vst.msk [vmem:[#allocation3 + $0xa8] sm:$0xff] %vm956_vm4, %v2944_v1  ;;  %3725 = vrot.lane.b32.xlu1 %v3633_v30, %s4866_s6  ;;  %v7387_v1 = vld [vmem:[#allocation6_spill] sm:$0xff] }
 0x522   : > { %3535 = vrot.lane.b32.xlu0 %v3442_v3, %s4865_s30 }
 0x523   : > { %v3898_v62 = vpop.permute.xlu1 %3897 }
 0x524   : > { %3975 = vst.msk [vmem:[#allocation3 + $0x90] sm:$0xff] %vm1922_vm9, %v3898_v62  ;;  %v3708_v9 = vpop.permute.xlu0 %3707 }
 0x525   : > { %3784 = vst.msk [vmem:[#allocation3 + $0x98] sm:$0xff] %vm1729_vm8, %v3708_v9  ;;  %3153 = vrot.lane.b32.xlu1 %v3633_v30, %s4863_s28 }
 0x526   : > { %2963 = vrot.lane.b32.xlu0 %v3442_v3, %s4862_s27 }
 0x527   : > { %v3326_v23 = vpop.permute.xlu1 %3325 }
 0x528   : > { %3401 = vst.msk [vmem:[#allocation3 + $0xa0] sm:$0xff] %vm1342_vm6, %v3326_v23  ;;  %v3136_v58 = vpop.permute.xlu0 %3135 }
 0x529   : > { %3210 = vst.msk [vmem:[#allocation3 + $0xa8] sm:$0xff] %vm1149_vm5, %v3136_v58  ;;  %3917 = vrot.lane.b32.xlu1 %v3825_v24, %s4867_s9 }
 0x52a   : > { %3727 = vrot.lane.b32.xlu0 %v3634_v0, %s4866_s6 }
 0x52b   : > { %v3328_v59 = vpop.permute.xlu1 %3327  ;;  %v4007_v46 = vld [vmem:[#allocation3 + $0x90] sm:$0xff] }
 0x52c   : > { %3402 = vst.msk [vmem:[#allocation3 + $0xa8] sm:$0xff] %vm1342_vm6, %v3328_v59  ;;  %v3900_v55 = vpop.permute.xlu0 %3899  ;;  %4781 = vmatprep.mubr.msk.f32.mxu1 %vm2003_vm10, %v4007_v46 }
 0x52d   : > { %3976 = vst.msk [vmem:[#allocation3 + $0x98] sm:$0xff] %vm1922_vm9, %v3900_v55  ;;  %3345 = vrot.lane.b32.xlu1 %v3825_v24, %s4864_s29 }
 0x52e   : > { %3155 = vrot.lane.b32.xlu0 %v3634_v0, %s4863_s28 }
 0x52f   : > { %v2946_v2 = vpop.permute.xlu1 %2945 }
 0x530   : > { %3019 = vst.msk [vmem:[#allocation3 + $0xb0] sm:$0xff] %vm956_vm4, %v2946_v2  ;;  %v3518_v5 = vpop.permute.xlu0 %3517 }
 0x531   : > { %3593 = vst.msk [vmem:[#allocation3 + $0xa0] sm:$0xff] %vm1536_vm7, %v3518_v5  ;;  %3347 = vrot.lane.b32.xlu1 %v3252_v45, %s4864_s29 }
 0x532   : > { %3919 = vrot.lane.b32.xlu0 %v3252_v45, %s4867_s9 }
 0x533   : > { %v3710_v61 = vpop.permute.xlu1 %3709 }
 0x534   : > { %3785 = vst.msk [vmem:[#allocation3 + $0xa0] sm:$0xff] %vm1729_vm8, %v3710_v61  ;;  %v3520_v34 = vpop.permute.xlu0 %3519  ;;  %v4008_v36 = vld [vmem:[#allocation3 + $0x98] sm:$0xff] }
 0x535   : > { %3594 = vst.msk [vmem:[#allocation3 + $0xa8] sm:$0xff] %vm1536_vm7, %v3520_v34  ;;  %4782 = vmatmul.mubr.msk.f32.gmra.mrb[18].mxu1 %vm2003_vm10, %v4008_v36  ;;  %3539 = vrot.lane.b32.xlu1 %v3444_v57, %s4865_s30  ;;  %v7388_v36 = vld [vmem:[#allocation9_spill] sm:$0xff] }
 0x536   : > { %3537 = vrot.lane.b32.xlu0 %v3443_v35, %s4865_s30 }
 0x537   : > { %v3138_v48 = vpop.permute.xlu1 %3137 }
 0x538   : > { %3211 = vst.msk [vmem:[#allocation3 + $0xb0] sm:$0xff] %vm1149_vm5, %v3138_v48  ;;  %v2948_v26 = vpop.permute.xlu0 %2947  ;;  %v7389_v48 = vld [vmem:[#allocation8_spill] sm:$0xff] }
 0x539   : > { %3020 = vst.msk [vmem:[#allocation3 + $0xb8] sm:$0xff] %vm956_vm4, %v2948_v26  ;;  %3731 = vrot.lane.b32.xlu1 %v3636_v8, %s4866_s6 }
 0x53a   : > { %3729 = vrot.lane.b32.xlu0 %v3635_v60, %s4866_s6  ;;  %s7030_s6 = scalar_lea.vmem %s7228_s5, %s4586_s21 }
 0x53b   : > { %v3902_v37 = vpop.permute.xlu1 %3901 }
 0x53c   : > { %3977 = vst.msk [vmem:[#allocation3 + $0xa0] sm:$0xff] %vm1922_vm9, %v3902_v37  ;;  %v3712_v40 = vpop.permute.xlu0 %3711 }
 0x53d   : > { %3786 = vst.msk [vmem:[#allocation3 + $0xa8] sm:$0xff] %vm1729_vm8, %v3712_v40  ;;  %3923 = vrot.lane.b32.xlu1 %v3828_v38, %s4867_s9 }
 0x53e   : > { %3921 = vrot.lane.b32.xlu0 %v3827_v28, %s4867_s9 }
 0x53f   : > { %v3330_v41 = vpop.permute.xlu1 %3329 }
 0x540   : > { %3403 = vst.msk [vmem:[#allocation3 + $0xb0] sm:$0xff] %vm1342_vm6, %v3330_v41  ;;  %v3140_v49 = vpop.permute.xlu0 %3139 }
 0x541   : > { %3212 = vst.msk [vmem:[#allocation3 + $0xb8] sm:$0xff] %vm1149_vm5, %v3140_v49 }
 0x543   : > { %v3332_v39 = vpop.permute.xlu1 %3331  ;;  %v4009_v42 = vld [vmem:[#allocation3 + $0xa0] sm:$0xff] }
 0x544   : > { %3404 = vst.msk [vmem:[#allocation3 + $0xb8] sm:$0xff] %vm1342_vm6, %v3332_v39  ;;  %v3904_v16 = vpop.permute.xlu0 %3903  ;;  %4784 = vmatprep.mubr.msk.f32.mxu1 %vm2003_vm10, %v4009_v42 }
 0x545   : > { %3978 = vst.msk [vmem:[#allocation3 + $0xa8] sm:$0xff] %vm1922_vm9, %v3904_v16 }
 0x547   : > { %v2950_v53 = vpop.permute.xlu1 %2949  ;;  %v4756_v33 = vpop.f32.mrb[0].mxu1 }
 0x548   : > { %3021 = vst.msk [vmem:[#allocation3 + $0xc0] sm:$0xff] %vm956_vm4, %v2950_v53  ;;  %v4205_v29 = vadd.f32 %v4756_v33, %v7018_v56  ;;  %v4199_v44 = vpop.f32.mrb[1].mxu1  ;;  %v3522_v47 = vpop.permute.xlu0 %3521 }
 0x549   : > { %v4200_v10 = vadd.f32 %v7018_v56, %v4199_v44  ;;  %3595 = vst.msk [vmem:[#allocation3 + $0xb0] sm:$0xff] %vm1536_vm7, %v3522_v47 }
 0x54a   : > { %v4359_v11 = vadd.f32 %v4205_v29, %v7384_v13 }
 0x54b   : > { %v4358_v50 = vadd.f32 %v4200_v10, %v7385_v15  ;;  %v3714_v22 = vpop.permute.xlu1 %3713  ;;  %v7390_v15 = vld [vmem:[#allocation11_spill] sm:$0xff] }
 0x54c   : > { %v4391_v43 = vmax.f32 %v4359_v11, 0.0  ;;  %3787 = vst.msk [vmem:[#allocation3 + $0xb0] sm:$0xff] %vm1729_vm8, %v3714_v22  ;;  %v3524_v17 = vpop.permute.xlu0 %3523  ;;  %v4010_v14 = vld [vmem:[#allocation3 + $0xa8] sm:$0xff]  ;;  %v7391_v22 = vld [vmem:[#allocation10_spill] sm:$0xff] }
 0x54d   : > { %v4390_v21 = vmax.f32 %v4358_v50, 0.0  ;;  %3596 = vst.msk [vmem:[#allocation3 + $0xb8] sm:$0xff] %vm1536_vm7, %v3524_v17  ;;  %4785 = vmatmul.mubr.msk.f32.gmra.mrb[20].mxu1 %vm2003_vm10, %v4010_v14 }
 0x54e   : > { %4423 = vst.msk [vmem:[%s7030_s6 + $0x8] sm:$0xff] %vm225_vm0, %v4391_v43 }
 0x54f   : > { %4422 = vst.msk [vmem:[%s7030_s6] sm:$0xff] %vm225_vm0, %v4390_v21  ;;  %v3142_v25 = vpop.permute.xlu1 %3141 }
 0x550   : > { %3213 = vst.msk [vmem:[#allocation3 + $0xc0] sm:$0xff] %vm1149_vm5, %v3142_v25  ;;  %v2952_v19 = vpop.permute.xlu0 %2951 }
 0x551   : > { %3022 = vst.msk [vmem:[#allocation3 + $0xc8] sm:$0xff] %vm956_vm4, %v2952_v19 }
 0x553   : > { %v3906_v52 = vpop.permute.xlu1 %3905 }
 0x554   : > { %3979 = vst.msk [vmem:[#allocation3 + $0xb0] sm:$0xff] %vm1922_vm9, %v3906_v52  ;;  %v3716_v12 = vpop.permute.xlu0 %3715 }
 0x555   : > { %3788 = vst.msk [vmem:[#allocation3 + $0xb8] sm:$0xff] %vm1729_vm8, %v3716_v12 }
 0x557   : > { %v3334_v7 = vpop.permute.xlu1 %3333 }
 0x558   : > { %3405 = vst.msk [vmem:[#allocation3 + $0xc0] sm:$0xff] %vm1342_vm6, %v3334_v7  ;;  %v3144_v4 = vpop.permute.xlu0 %3143 }
 0x559   : > { %3214 = vst.msk [vmem:[#allocation3 + $0xc8] sm:$0xff] %vm1149_vm5, %v3144_v4 }
 0x55b   : > { %v3336_v31 = vpop.permute.xlu1 %3335  ;;  %v4759_v54 = vpop.f32.mrb[2].mxu1  ;;  %v4011_v20 = vld [vmem:[#allocation3 + $0xb0] sm:$0xff] }
 0x55c   : > { %3406 = vst.msk [vmem:[#allocation3 + $0xc8] sm:$0xff] %vm1342_vm6, %v3336_v31  ;;  %v4215_v32 = vadd.f32 %v4759_v54, %v7018_v56  ;;  %v4209_v18 = vpop.f32.mrb[3].mxu1  ;;  %v3908_v27 = vpop.permute.xlu0 %3907  ;;  %4787 = vmatprep.mubr.msk.f32.mxu1 %vm2003_vm10, %v4011_v20 }
 0x55d   : > { %v4210_v6 = vadd.f32 %v7018_v56, %v4209_v18  ;;  %3980 = vst.msk [vmem:[#allocation3 + $0xb8] sm:$0xff] %vm1922_vm9, %v3908_v27 }
 0x55e   : > { %v4361_v63 = vadd.f32 %v4215_v32, %v7386_v51 }
 0x55f   : > { %v4360_v30 = vadd.f32 %v4210_v6, %v7387_v1  ;;  %v2954_v3 = vpop.permute.xlu1 %2953  ;;  %v7392_v1 = vld [vmem:[#allocation13_spill] sm:$0xff] }
 0x560   : > { %v4393_v62 = vmax.f32 %v4361_v63, 0.0  ;;  %3023 = vst.msk [vmem:[#allocation3 + $0xd0] sm:$0xff] %vm956_vm4, %v2954_v3  ;;  %v3526_v9 = vpop.permute.xlu0 %3525  ;;  %v7393_v3 = vld [vmem:[#allocation12_spill] sm:$0xff] }
 0x561   : > { %v4392_v23 = vmax.f32 %v4360_v30, 0.0  ;;  %3597 = vst.msk [vmem:[#allocation3 + $0xc0] sm:$0xff] %vm1536_vm7, %v3526_v9 }
 0x562   : > { %4425 = vst.msk [vmem:[%s7030_s6 + $0x18] sm:$0xff] %vm225_vm0, %v4393_v62 }
 0x563   : > { %4424 = vst.msk [vmem:[%s7030_s6 + $0x10] sm:$0xff] %vm225_vm0, %v4392_v23  ;;  %v3718_v58 = vpop.permute.xlu1 %3717 }
 0x564   : > { %3789 = vst.msk [vmem:[#allocation3 + $0xc0] sm:$0xff] %vm1729_vm8, %v3718_v58  ;;  %v3528_v24 = vpop.permute.xlu0 %3527  ;;  %v4012_v0 = vld [vmem:[#allocation3 + $0xb8] sm:$0xff] }
 0x565   : > { %3598 = vst.msk [vmem:[#allocation3 + $0xc8] sm:$0xff] %vm1536_vm7, %v3528_v24  ;;  %4788 = vmatmul.mubr.msk.f32.gmra.mrb[22].mxu1 %vm2003_vm10, %v4012_v0 }
 0x567   : > { %v3146_v59 = vpop.permute.xlu1 %3145 }
 0x568   : > { %3215 = vst.msk [vmem:[#allocation3 + $0xd0] sm:$0xff] %vm1149_vm5, %v3146_v59  ;;  %v2956_v46 = vpop.permute.xlu0 %2955 }
 0x569   : > { %3024 = vst.msk [vmem:[#allocation3 + $0xd8] sm:$0xff] %vm956_vm4, %v2956_v46 }
 0x56b   : > { %v3910_v55 = vpop.permute.xlu1 %3909 }
 0x56c   : > { %3981 = vst.msk [vmem:[#allocation3 + $0xc0] sm:$0xff] %vm1922_vm9, %v3910_v55  ;;  %v3720_v2 = vpop.permute.xlu0 %3719 }
 0x56d   : > { %3790 = vst.msk [vmem:[#allocation3 + $0xc8] sm:$0xff] %vm1729_vm8, %v3720_v2 }
 0x56f   : > { %v3338_v5 = vpop.permute.xlu1 %3337  ;;  %v4762_v45 = vpop.f32.mrb[4].mxu1 }
 0x570   : > { %3407 = vst.msk [vmem:[#allocation3 + $0xd0] sm:$0xff] %vm1342_vm6, %v3338_v5  ;;  %v4225_v57 = vadd.f32 %v4762_v45, %v7018_v56  ;;  %v3148_v61 = vpop.permute.xlu0 %3147  ;;  %v4219_v35 = vpop.f32.mrb[5].mxu1 }
 0x571   : > { %3216 = vst.msk [vmem:[#allocation3 + $0xd8] sm:$0xff] %vm1149_vm5, %v3148_v61  ;;  %v4220_v34 = vadd.f32 %v7018_v56, %v4219_v35 }
 0x572   : > { %v4363_v8 = vadd.f32 %v4225_v57, %v7388_v36 }
 0x573   : > { %v4362_v60 = vadd.f32 %v4220_v34, %v7389_v48  ;;  %v3340_v26 = vpop.permute.xlu1 %3339  ;;  %v4013_v38 = vld [vmem:[#allocation3 + $0xc0] sm:$0xff] }
 0x574   : > { %v4395_v37 = vmax.f32 %v4363_v8, 0.0  ;;  %3408 = vst.msk [vmem:[#allocation3 + $0xd8] sm:$0xff] %vm1342_vm6, %v3340_v26  ;;  %v3912_v28 = vpop.permute.xlu0 %3911  ;;  %4790 = vmatprep.mubr.msk.f32.mxu1 %vm2003_vm10, %v4013_v38  ;;  %v7395_v38 = vld [vmem:[#allocation14_spill] sm:$0xff] }
 0x575   : > { %v4394_v40 = vmax.f32 %v4362_v60, 0.0  ;;  %3982 = vst.msk [vmem:[#allocation3 + $0xc8] sm:$0xff] %vm1922_vm9, %v3912_v28  ;;  %v7394_v60 = vld [vmem:[#allocation15_spill] sm:$0xff] }
 0x576   : > { %4427 = vst.msk [vmem:[%s7030_s6 + $0x28] sm:$0xff] %vm225_vm0, %v4395_v37 }
 0x577   : > { %4426 = vst.msk [vmem:[%s7030_s6 + $0x20] sm:$0xff] %vm225_vm0, %v4394_v40  ;;  %v2958_v41 = vpop.permute.xlu1 %2957 }
 0x578   : > { %3025 = vst.msk [vmem:[#allocation3 + $0xe0] sm:$0xff] %vm956_vm4, %v2958_v41  ;;  %v3530_v49 = vpop.permute.xlu0 %3529 }
 0x579   : > { %3599 = vst.msk [vmem:[#allocation3 + $0xd0] sm:$0xff] %vm1536_vm7, %v3530_v49 }
 0x57b   : > { %v3722_v39 = vpop.permute.xlu1 %3721 }
 0x57c   : > { %3791 = vst.msk [vmem:[#allocation3 + $0xd0] sm:$0xff] %vm1729_vm8, %v3722_v39  ;;  %v3532_v42 = vpop.permute.xlu0 %3531  ;;  %v4014_v16 = vld [vmem:[#allocation3 + $0xc8] sm:$0xff] }
 0x57d   : > { %3600 = vst.msk [vmem:[#allocation3 + $0xd8] sm:$0xff] %vm1536_vm7, %v3532_v42  ;;  %4791 = vmatmul.mubr.msk.f32.gmra.mrb[24].mxu1 %vm2003_vm10, %v4014_v16 }
 0x57f   : > { %v3150_v53 = vpop.permute.xlu1 %3149 }
 0x580   : > { %3217 = vst.msk [vmem:[#allocation3 + $0xe0] sm:$0xff] %vm1149_vm5, %v3150_v53  ;;  %v2960_v33 = vpop.permute.xlu0 %2959 }
 0x581   : > { %3026 = vst.msk [vmem:[#allocation3 + $0xe8] sm:$0xff] %vm956_vm4, %v2960_v33 }
 0x583   : > { %v3914_v29 = vpop.permute.xlu1 %3913  ;;  %v4765_v44 = vpop.f32.mrb[6].mxu1 }
 0x584   : > { %3983 = vst.msk [vmem:[#allocation3 + $0xd0] sm:$0xff] %vm1922_vm9, %v3914_v29  ;;  %v4235_v47 = vadd.f32 %v4765_v44, %v7018_v56  ;;  %v3724_v10 = vpop.permute.xlu0 %3723  ;;  %v4229_v13 = vpop.f32.mrb[7].mxu1  ;;  %v7396_v44 = vld [vmem:[#allocation17_spill] sm:$0xff] }
 0x585   : > { %3792 = vst.msk [vmem:[#allocation3 + $0xd8] sm:$0xff] %vm1729_vm8, %v3724_v10  ;;  %v4230_v11 = vadd.f32 %v7018_v56, %v4229_v13  ;;  %v7397_v10 = vld [vmem:[#allocation16_spill] sm:$0xff] }
 0x586   : > { %v4365_v50 = vadd.f32 %v4235_v47, %v7390_v15 }
 0x587   : > { %v4364_v43 = vadd.f32 %v4230_v11, %v7391_v22  ;;  %v3342_v17 = vpop.permute.xlu1 %3341 }
 0x588   : > { %v4397_v14 = vmax.f32 %v4365_v50, 0.0  ;;  %3409 = vst.msk [vmem:[#allocation3 + $0xe0] sm:$0xff] %vm1342_vm6, %v3342_v17  ;;  %v3152_v21 = vpop.permute.xlu0 %3151 }
 0x589   : > { %v4396_v25 = vmax.f32 %v4364_v43, 0.0  ;;  %3218 = vst.msk [vmem:[#allocation3 + $0xe8] sm:$0xff] %vm1149_vm5, %v3152_v21 }
 0x58a   : > { %4429 = vst.msk [vmem:[%s7030_s6 + $0x38] sm:$0xff] %vm225_vm0, %v4397_v14  ;;  %v7398_v14 = vld [vmem:[#allocation19_spill] sm:$0xff] }
 0x58b   : > { %4428 = vst.msk [vmem:[%s7030_s6 + $0x30] sm:$0xff] %vm225_vm0, %v4396_v25  ;;  %v3344_v19 = vpop.permute.xlu1 %3343  ;;  %v4015_v52 = vld [vmem:[#allocation3 + $0xd0] sm:$0xff] }
 0x58c   : > { %3410 = vst.msk [vmem:[#allocation3 + $0xe8] sm:$0xff] %vm1342_vm6, %v3344_v19  ;;  %v3916_v12 = vpop.permute.xlu0 %3915  ;;  %4793 = vmatprep.mubr.msk.f32.mxu1 %vm2003_vm10, %v4015_v52  ;;  %v7399_v25 = vld [vmem:[#allocation18_spill] sm:$0xff] }
 0x58d   : > { %3984 = vst.msk [vmem:[#allocation3 + $0xd8] sm:$0xff] %vm1922_vm9, %v3916_v12 }
 0x58f   : > { %v2962_v7 = vpop.permute.xlu1 %2961 }
 0x590   : > { %3027 = vst.msk [vmem:[#allocation3 + $0xf0] sm:$0xff] %vm956_vm4, %v2962_v7  ;;  %v3534_v4 = vpop.permute.xlu0 %3533 }
 0x591   : > { %3601 = vst.msk [vmem:[#allocation3 + $0xe0] sm:$0xff] %vm1536_vm7, %v3534_v4 }
 0x593   : > { %v3726_v31 = vpop.permute.xlu1 %3725 }
 0x594   : > { %3793 = vst.msk [vmem:[#allocation3 + $0xe0] sm:$0xff] %vm1729_vm8, %v3726_v31  ;;  %v3536_v54 = vpop.permute.xlu0 %3535  ;;  %v4016_v20 = vld [vmem:[#allocation3 + $0xd8] sm:$0xff] }
 0x595   : > { %3602 = vst.msk [vmem:[#allocation3 + $0xe8] sm:$0xff] %vm1536_vm7, %v3536_v54  ;;  %4794 = vmatmul.mubr.msk.f32.gmra.mrb[26].mxu1 %vm2003_vm10, %v4016_v20  ;;  %v7400_v20 = vld [vmem:[#allocation21_spill] sm:$0xff] }
 0x597   : > { %v3154_v32 = vpop.permute.xlu1 %3153  ;;  %v4768_v18 = vpop.f32.mrb[8].mxu1 }
 0x598   : > { %3219 = vst.msk [vmem:[#allocation3 + $0xf0] sm:$0xff] %vm1149_vm5, %v3154_v32  ;;  %v4245_v27 = vadd.f32 %v4768_v18, %v7018_v56  ;;  %v2964_v6 = vpop.permute.xlu0 %2963  ;;  %v4239_v51 = vpop.f32.mrb[9].mxu1  ;;  %v7401_v18 = vld [vmem:[#allocation20_spill] sm:$0xff] }
 0x599   : > { %3028 = vst.msk [vmem:[#allocation3 + $0xf8] sm:$0xff] %vm956_vm4, %v2964_v6  ;;  %v4240_v63 = vadd.f32 %v7018_v56, %v4239_v51 }
 0x59a   : > { %v4367_v30 = vadd.f32 %v4245_v27, %v7392_v1 }
 0x59b   : > { %v4366_v62 = vadd.f32 %v4240_v63, %v7393_v3  ;;  %v3918_v9 = vpop.permute.xlu1 %3917 }
 0x59c   : > { %v4399_v23 = vmax.f32 %v4367_v30, 0.0  ;;  %3985 = vst.msk [vmem:[#allocation3 + $0xe0] sm:$0xff] %vm1922_vm9, %v3918_v9  ;;  %v3728_v58 = vpop.permute.xlu0 %3727 }
 0x59d   : > { %v4398_v24 = vmax.f32 %v4366_v62, 0.0  ;;  %3794 = vst.msk [vmem:[#allocation3 + $0xe8] sm:$0xff] %vm1729_vm8, %v3728_v58  ;;  %v7402_v62 = vld [vmem:[#allocation23_spill] sm:$0xff] }
 0x59e   : > { %4431 = vst.msk [vmem:[%s7030_s6 + $0x48] sm:$0xff] %vm225_vm0, %v4399_v23  ;;  %v7403_v23 = vld [vmem:[#allocation22_spill] sm:$0xff] }
 0x59f   : > { %4430 = vst.msk [vmem:[%s7030_s6 + $0x40] sm:$0xff] %vm225_vm0, %v4398_v24  ;;  %v3346_v0 = vpop.permute.xlu1 %3345 }
 0x5a0   : > { %3411 = vst.msk [vmem:[#allocation3 + $0xf0] sm:$0xff] %vm1342_vm6, %v3346_v0  ;;  %v3156_v59 = vpop.permute.xlu0 %3155 }
 0x5a1   : > { %3220 = vst.msk [vmem:[#allocation3 + $0xf8] sm:$0xff] %vm1149_vm5, %v3156_v59 }
 0x5a3   : > { %v3348_v46 = vpop.permute.xlu1 %3347  ;;  %v4017_v55 = vld [vmem:[#allocation3 + $0xe0] sm:$0xff] }
 0x5a4   : > { %3412 = vst.msk [vmem:[#allocation3 + $0xf8] sm:$0xff] %vm1342_vm6, %v3348_v46  ;;  %v3920_v2 = vpop.permute.xlu0 %3919  ;;  %4796 = vmatprep.mubr.msk.f32.mxu1 %vm2003_vm10, %v4017_v55 }
 0x5a5   : > { %3986 = vst.msk [vmem:[#allocation3 + $0xe8] sm:$0xff] %vm1922_vm9, %v3920_v2 }
 0x5a7   : > { %v3540_v5 = vpop.permute.xlu1 %3539 }
 0x5a8   : > { %v3538_v45 = vpop.permute.xlu0 %3537  ;;  %3604 = vst.msk [vmem:[#allocation3 + $0xf8] sm:$0xff] %vm1536_vm7, %v3540_v5  ;;  %v7404_v5 = vld [vmem:[#allocation25_spill] sm:$0xff] }
 0x5a9   : > { %3603 = vst.msk [vmem:[#allocation3 + $0xf0] sm:$0xff] %vm1536_vm7, %v3538_v45 }
 0x5ab   : > { %v4771_v57 = vpop.f32.mrb[10].mxu1  ;;  %v3732_v61 = vpop.permute.xlu1 %3731 }
 0x5ac   : > { %v4255_v35 = vadd.f32 %v4771_v57, %v7018_v56  ;;  %v3730_v34 = vpop.permute.xlu0 %3729  ;;  %v4249_v36 = vpop.f32.mrb[11].mxu1  ;;  %3796 = vst.msk [vmem:[#allocation3 + $0xf8] sm:$0xff] %vm1729_vm8, %v3732_v61  ;;  %v4018_v8 = vld [vmem:[#allocation3 + $0xe8] sm:$0xff]  ;;  %v7405_v57 = vld [vmem:[#allocation24_spill] sm:$0xff] }
 0x5ad   : > { %3795 = vst.msk [vmem:[#allocation3 + $0xf0] sm:$0xff] %vm1729_vm8, %v3730_v34  ;;  %v4250_v48 = vadd.f32 %v7018_v56, %v4249_v36  ;;  %4797 = vmatmul.mubr.msk.f32.gmra.mrb[28].mxu1 %vm2003_vm10, %v4018_v8 }
 0x5ae   : > { %v4369_v26 = vadd.f32 %v4255_v35, %v7394_v60 }
 0x5af   : > { %v4368_v37 = vadd.f32 %v4250_v48, %v7395_v38  ;;  %v3924_v28 = vpop.permute.xlu1 %3923 }
 0x5b0   : > { %v4401_v40 = vmax.f32 %v4369_v26, 0.0  ;;  %v3922_v41 = vpop.permute.xlu0 %3921  ;;  %3988 = vst.msk [vmem:[#allocation3 + $0xf8] sm:$0xff] %vm1922_vm9, %v3924_v28  ;;  %v7406_v26 = vld [vmem:[#allocation27_spill] sm:$0xff] }
 0x5b1   : > { %v4400_v49 = vmax.f32 %v4368_v37, 0.0  ;;  %3987 = vst.msk [vmem:[#allocation3 + $0xf0] sm:$0xff] %vm1922_vm9, %v3922_v41  ;;  %v7407_v37 = vld [vmem:[#allocation26_spill] sm:$0xff] }
 0x5b2   : > { %4433 = vst.msk [vmem:[%s7030_s6 + $0x58] sm:$0xff] %vm225_vm0, %v4401_v40 }
 0x5b3   : > { %4432 = vst.msk [vmem:[%s7030_s6 + $0x50] sm:$0xff] %vm225_vm0, %v4400_v49 }
 0x5b7   : > { %v4020_v39 = vld [vmem:[#allocation3 + $0xf8] sm:$0xff] }
 0x5b8   : > { %v4019_v42 = vld [vmem:[#allocation3 + $0xf0] sm:$0xff] }
 0x5b9   : > { %4799 = vmatprep.mubr.msk.f32.mxu1 %vm2003_vm10, %v4019_v42 }
 0x5ba   : > { %4800 = vmatmul.mubr.msk.f32.gmra.mrb[30].mxu1 %vm2003_vm10, %v4020_v39 }
 0x5bf   : > { %v4774_v16 = vpop.f32.mrb[12].mxu1 }
 0x5c0   : > { %v4265_v53 = vadd.f32 %v4774_v16, %v7018_v56  ;;  %v4259_v33 = vpop.f32.mrb[13].mxu1 }
 0x5c1   : > { %v4260_v29 = vadd.f32 %v7018_v56, %v4259_v33 }
 0x5c2   : > { %v4371_v47 = vadd.f32 %v4265_v53, %v7396_v44  ;;  %v7408_v53 = vld [vmem:[#allocation29_spill] sm:$0xff] }
 0x5c3   : > { %v4370_v13 = vadd.f32 %v4260_v29, %v7397_v10  ;;  %v7409_v29 = vld [vmem:[#allocation28_spill] sm:$0xff] }
 0x5c4   : > { %v4403_v11 = vmax.f32 %v4371_v47, 0.0 }
 0x5c5   : > { %v4402_v15 = vmax.f32 %v4370_v13, 0.0 }
 0x5c6   : > { %4435 = vst.msk [vmem:[%s7030_s6 + $0x68] sm:$0xff] %vm225_vm0, %v4403_v11 }
 0x5c7   : > { %4434 = vst.msk [vmem:[%s7030_s6 + $0x60] sm:$0xff] %vm225_vm0, %v4402_v15 }
 0x5d8   : > { %v4777_v50 = vpop.f32.mrb[14].mxu1 }
 0x5d9   : > { %v4275_v22 = vadd.f32 %v4777_v50, %v7018_v56  ;;  %v4269_v43 = vpop.f32.mrb[15].mxu1 }
 0x5da   : > { %v4270_v17 = vadd.f32 %v7018_v56, %v4269_v43 }
 0x5db   : > { %v4373_v21 = vadd.f32 %v4275_v22, %v7398_v14  ;;  %v7410_v22 = vld [vmem:[#allocation31_spill] sm:$0xff] }
 0x5dc   : > { %v4372_v19 = vadd.f32 %v4270_v17, %v7399_v25  ;;  %v7411_v17 = vld [vmem:[#allocation30_spill] sm:$0xff] }
 0x5dd   : > { %v4405_v52 = vmax.f32 %v4373_v21, 0.0 }
 0x5de   : > { %v4404_v12 = vmax.f32 %v4372_v19, 0.0 }
 0x5df   : > { %4437 = vst.msk [vmem:[%s7030_s6 + $0x78] sm:$0xff] %vm225_vm0, %v4405_v52 }
 0x5e0   : > { %4436 = vst.msk [vmem:[%s7030_s6 + $0x70] sm:$0xff] %vm225_vm0, %v4404_v12 }
 0x5f0   : > { %v4780_v7 = vpop.f32.mrb[16].mxu1 }
 0x5f1   : > { %v4285_v4 = vadd.f32 %v4780_v7, %v7018_v56  ;;  %v4279_v31 = vpop.f32.mrb[17].mxu1 }
 0x5f2   : > { %v4280_v54 = vadd.f32 %v7018_v56, %v4279_v31 }
 0x5f3   : > { %v4375_v32 = vadd.f32 %v4285_v4, %v7400_v20  ;;  %v7412_v4 = vld [vmem:[#allocation33_spill] sm:$0xff] }
 0x5f4   : > { %v4374_v27 = vadd.f32 %v4280_v54, %v7401_v18  ;;  %v7413_v54 = vld [vmem:[#allocation32_spill] sm:$0xff] }
 0x5f5   : > { %v4407_v6 = vmax.f32 %v4375_v32, 0.0 }
 0x5f6   : > { %v4406_v51 = vmax.f32 %v4374_v27, 0.0 }
 0x5f7   : > { %4439 = vst.msk [vmem:[%s7030_s6 + $0x88] sm:$0xff] %vm225_vm0, %v4407_v6 }
 0x5f8   : > { %4438 = vst.msk [vmem:[%s7030_s6 + $0x80] sm:$0xff] %vm225_vm0, %v4406_v51 }
 0x608   : > { %v4783_v63 = vpop.f32.mrb[18].mxu1 }
 0x609   : > { %v4295_v1 = vadd.f32 %v4783_v63, %v7018_v56  ;;  %v4289_v30 = vpop.f32.mrb[19].mxu1 }
 0x60a   : > { %v4290_v3 = vadd.f32 %v7018_v56, %v4289_v30 }
 0x60b   : > { %v4377_v9 = vadd.f32 %v4295_v1, %v7402_v62  ;;  %v7414_v1 = vld [vmem:[#allocation37_spill] sm:$0xff] }
 0x60c   : > { %v4376_v58 = vadd.f32 %v4290_v3, %v7403_v23  ;;  %v7415_v3 = vld [vmem:[#allocation35_spill] sm:$0xff] }
 0x60d   : > { %v4409_v24 = vmax.f32 %v4377_v9, 0.0 }
 0x60e   : > { %v4408_v0 = vmax.f32 %v4376_v58, 0.0 }
 0x60f   : > { %4441 = vst.msk [vmem:[%s7030_s6 + $0x98] sm:$0xff] %vm225_vm0, %v4409_v24 }
 0x610   : > { %4440 = vst.msk [vmem:[%s7030_s6 + $0x90] sm:$0xff] %vm225_vm0, %v4408_v0 }
 0x620   : > { %v4786_v59 = vpop.f32.mrb[20].mxu1 }
 0x621   : > { %v4305_v46 = vadd.f32 %v4786_v59, %v7018_v56  ;;  %v4299_v55 = vpop.f32.mrb[21].mxu1 }
 0x622   : > { %v4300_v2 = vadd.f32 %v7018_v56, %v4299_v55 }
 0x623   : > { %v4379_v45 = vadd.f32 %v4305_v46, %v7404_v5 }
 0x624   : > { %v4378_v61 = vadd.f32 %v4300_v2, %v7405_v57 }
 0x625   : > { %v4411_v35 = vmax.f32 %v4379_v45, 0.0 }
 0x626   : > { %v4410_v34 = vmax.f32 %v4378_v61, 0.0 }
 0x627   : > { %4443 = vst.msk [vmem:[%s7030_s6 + $0xa8] sm:$0xff] %vm225_vm0, %v4411_v35 }
 0x628   : > { %4442 = vst.msk [vmem:[%s7030_s6 + $0xa0] sm:$0xff] %vm225_vm0, %v4410_v34 }
 0x638   : > { %v4789_v36 = vpop.f32.mrb[22].mxu1 }
 0x639   : > { %v4315_v8 = vadd.f32 %v4789_v36, %v7018_v56  ;;  %v4309_v48 = vpop.f32.mrb[23].mxu1 }
 0x63a   : > { %v4310_v60 = vadd.f32 %v7018_v56, %v4309_v48 }
 0x63b   : > { %v4381_v38 = vadd.f32 %v4315_v8, %v7406_v26 }
 0x63c   : > { %v4380_v28 = vadd.f32 %v4310_v60, %v7407_v37 }
 0x63d   : > { %v4413_v40 = vmax.f32 %v4381_v38, 0.0 }
 0x63e   : > { %v4412_v41 = vmax.f32 %v4380_v28, 0.0 }
 0x63f   : > { %4445 = vst.msk [vmem:[%s7030_s6 + $0xb8] sm:$0xff] %vm225_vm0, %v4413_v40 }
 0x640   : > { %4444 = vst.msk [vmem:[%s7030_s6 + $0xb0] sm:$0xff] %vm225_vm0, %v4412_v41 }
 0x650   : > { %v4792_v49 = vpop.f32.mrb[24].mxu1 }
 0x651   : > { %v4325_v39 = vadd.f32 %v4792_v49, %v7018_v56  ;;  %v4319_v42 = vpop.f32.mrb[25].mxu1 }
 0x652   : > { %v4320_v16 = vadd.f32 %v7018_v56, %v4319_v42 }
 0x653   : > { %v4383_v33 = vadd.f32 %v4325_v39, %v7408_v53 }
 0x654   : > { %v4382_v44 = vadd.f32 %v4320_v16, %v7409_v29 }
 0x655   : > { %v4415_v47 = vmax.f32 %v4383_v33, 0.0 }
 0x656   : > { %v4414_v10 = vmax.f32 %v4382_v44, 0.0 }
 0x657   : > { %4447 = vst.msk [vmem:[%s7030_s6 + $0xc8] sm:$0xff] %vm225_vm0, %v4415_v47 }
 0x658   : > { %4446 = vst.msk [vmem:[%s7030_s6 + $0xc0] sm:$0xff] %vm225_vm0, %v4414_v10 }
 0x668   : > { %v4795_v13 = vpop.f32.mrb[26].mxu1 }
 0x669   : > { %v4335_v11 = vadd.f32 %v4795_v13, %v7018_v56  ;;  %v4329_v15 = vpop.f32.mrb[27].mxu1 }
 0x66a   : > { %v4330_v50 = vadd.f32 %v7018_v56, %v4329_v15 }
 0x66b   : > { %v4385_v43 = vadd.f32 %v4335_v11, %v7410_v22 }
 0x66c   : > { %v4384_v14 = vadd.f32 %v4330_v50, %v7411_v17 }
 0x66d   : > { %v4417_v21 = vmax.f32 %v4385_v43, 0.0 }
 0x66e   : > { %v4416_v25 = vmax.f32 %v4384_v14, 0.0 }
 0x66f   : > { %4449 = vst.msk [vmem:[%s7030_s6 + $0xd8] sm:$0xff] %vm225_vm0, %v4417_v21 }
 0x670   : > { %4448 = vst.msk [vmem:[%s7030_s6 + $0xd0] sm:$0xff] %vm225_vm0, %v4416_v25 }
 0x680   : > { %v4798_v19 = vpop.f32.mrb[28].mxu1 }
 0x681   : > { %v4345_v52 = vadd.f32 %v4798_v19, %v7018_v56  ;;  %v4339_v12 = vpop.f32.mrb[29].mxu1 }
 0x682   : > { %v4340_v7 = vadd.f32 %v7018_v56, %v4339_v12 }
 0x683   : > { %v4387_v31 = vadd.f32 %v4345_v52, %v7412_v4 }
 0x684   : > { %v4386_v20 = vadd.f32 %v4340_v7, %v7413_v54 }
 0x685   : > { %v4419_v32 = vmax.f32 %v4387_v31, 0.0 }
 0x686   : > { %v4418_v18 = vmax.f32 %v4386_v20, 0.0 }
 0x687   : > { %4451 = vst.msk [vmem:[%s7030_s6 + $0xe8] sm:$0xff] %vm225_vm0, %v4419_v32 }
 0x688   : > { %4450 = vst.msk [vmem:[%s7030_s6 + $0xe0] sm:$0xff] %vm225_vm0, %v4418_v18 }
 0x68d   : > { %v4801_v27 = vpop.f32.mrb[30].mxu1 }
 0x68e   : > { %v4355_v6 = vadd.f32 %v4801_v27, %v7018_v56  ;;  %v4349_v51 = vpop.f32.mrb[31].mxu1 }
 0x68f   : > { %v4350_v63 = vadd.f32 %v7018_v56, %v4349_v51 }
 0x690   : > { %v4389_v30 = vadd.f32 %v4355_v6, %v7414_v1 }
 0x691   : > { %v4388_v62 = vadd.f32 %v4350_v63, %v7415_v3 }
 0x692   : > { %v4421_v9 = vmax.f32 %v4389_v30, 0.0 }
 0x693   : > { %v4420_v23 = vmax.f32 %v4388_v62, 0.0 }
 0x694   : > { %4453 = vst.msk [vmem:[%s7030_s6 + $0xf8] sm:$0xff] %vm225_vm0, %v4421_v9 }
 0x695   : > { %4452 = vst.msk [vmem:[%s7030_s6 + $0xf0] sm:$0xff] %vm225_vm0, %v4420_v23 }
 0x696 PF: > { %s15_s18 = sadd.s32 1, %s4857_s18  }
 0x697   : > { %p12_p4 = scmp.ge.s32.totalorder %s15_s18, 4  }
 0x699   :  { %14 = sbr.rel (!%p12_p4) target bundleno = 1 (0x1), region = 72 }

</bundles_post_ra>
